<compile_context>
chip_gen: v7x
topology: tpu7x:2x2x1
jax: 0.10.0
libtpu: 0.0.40
codegen_flags: <defaults>
</compile_context>

<pallas_src>
import math
import jax
import jax.numpy as jnp
from jax.experimental import pallas as pl
from jax.experimental.pallas import tpu as pltpu

# ----------------------------- model config ---------------------------------
HID_DIM = 32
N_HEADS = 4
HEAD_DIM = HID_DIM // N_HEADS
PF_DIM = 64
OUTPUT_DIM = 12          # vocab size
N_LAYERS = 2
MAX_LENGTH = 100
LN_EPS = 1e-5            # PyTorch nn.LayerNorm default
NEG_INF = -1e10


# ----------------------------- in-kernel helpers -----------------------------
def _layer_norm(x, gamma, beta):
    mean = jnp.mean(x, axis=-1, keepdims=True)
    var = jnp.mean((x - mean) ** 2, axis=-1, keepdims=True)
    return (x - mean) * jax.lax.rsqrt(var + LN_EPS) * gamma + beta


def _attend(q, k, v, mask_add, wo, bo, need_attn):
    """Multi-head attention core on one batch element.

    q: (T, H), k/v: (S, H), mask_add: additive float mask broadcastable to
    (T, S), wo: (H, H), bo: (1, H).
    The per-head output projection is accumulated directly into a (T, H)
    accumulator (no slice+concat relayout).
    Returns (out (T, H), attn_cat (T, N_HEADS*S) or None).
    """
    inv_scale = 1.0 / math.sqrt(HEAD_DIM)
    acc = None
    attns = []
    for h in range(N_HEADS):                      # static unroll over heads
        sl = slice(h * HEAD_DIM, (h + 1) * HEAD_DIM)
        energy = jnp.dot(q[:, sl], k[:, sl].T,
                         preferred_element_type=jnp.float32) * inv_scale + mask_add
        m = jnp.max(energy, axis=-1, keepdims=True)
        e = jnp.exp(energy - m)
        attn = e * (1.0 / jnp.sum(e, axis=-1, keepdims=True))   # hoisted reciprocal
        ctx = jnp.dot(attn, v[:, sl], preferred_element_type=jnp.float32)   # (T, HD)
        contrib = jnp.dot(ctx, wo[sl, :], preferred_element_type=jnp.float32)  # (T, H)
        acc = contrib if acc is None else acc + contrib
        if need_attn:
            attns.append(attn)
    out = acc + bo
    attn_cat = jnp.concatenate(attns, axis=-1) if need_attn else None
    return out, attn_cat


# ----------------------------- fused decoder kernel --------------------------
def decoder_kernel(trg_ref, enc_ref, tmask_ref, smask_ref,
                   sa_wqkv_ref, sa_bqkv_ref, sa_wo_ref, sa_bo_ref,
                   ca_wq_ref, ca_bq_ref, ca_wkv_ref, ca_bkv_ref,
                   ca_wo_ref, ca_bo_ref,
                   ff_w1_ref, ff_b1_ref, ff_w2_ref, ff_b2_ref,
                   ln_g_ref, ln_b_ref, fc_w_ref, fc_b_ref,
                   out_ref, attn_ref):
    H = HID_DIM
    x = trg_ref[0]            # (T, H)
    enc = enc_ref[0]          # (S, H)
    tmask = tmask_ref[0, 0]   # (T, T) additive float mask
    smask = smask_ref[0, 0]   # (1, S) additive float mask

    attn_cat = None
    for l in range(N_LAYERS):                     # static unroll over layers
        last = (l == N_LAYERS - 1)
        lng = ln_g_ref[l]     # (3, H)
        lnb = ln_b_ref[l]     # (3, H)

        # --- self attention (fused QKV projection) + residual + layer norm ---
        qkv = jnp.dot(x, sa_wqkv_ref[l],
                      preferred_element_type=jnp.float32) + sa_bqkv_ref[l]
        sa_out, _ = _attend(qkv[:, :H], qkv[:, H:2 * H], qkv[:, 2 * H:], tmask,
                            sa_wo_ref[l], sa_bo_ref[l], need_attn=False)
        x = _layer_norm(x + sa_out, lng[0][None, :], lnb[0][None, :])

        # --- encoder (cross) attention (fused KV projection) ---
        q = jnp.dot(x, ca_wq_ref[l],
                    preferred_element_type=jnp.float32) + ca_bq_ref[l]
        kv = jnp.dot(enc, ca_wkv_ref[l],
                     preferred_element_type=jnp.float32) + ca_bkv_ref[l]
        ca_out, attn_l = _attend(q, kv[:, :H], kv[:, H:], smask,
                                 ca_wo_ref[l], ca_bo_ref[l], need_attn=last)
        x = _layer_norm(x + ca_out, lng[1][None, :], lnb[1][None, :])
        if last:
            attn_cat = attn_l                      # only last layer's attn is live

        # --- position-wise feed-forward + residual + layer norm ---
        ff = jnp.maximum(
            jnp.dot(x, ff_w1_ref[l],
                    preferred_element_type=jnp.float32) + ff_b1_ref[l], 0.0)
        ff = jnp.dot(ff, ff_w2_ref[l],
                     preferred_element_type=jnp.float32) + ff_b2_ref[l]
        x = _layer_norm(x + ff, lng[2][None, :], lnb[2][None, :])

    # --- final output projection (fc_out), fused into the same kernel ---
    out_ref[0] = jnp.dot(x, fc_w_ref[...],
                         preferred_element_type=jnp.float32) + fc_b_ref[...]
    attn_ref[0] = attn_cat     # single lane-dense (T, N_HEADS*S) store


# ----------------------------- param packing ---------------------------------
def pack_params(params):
    """Stack per-layer weights on a leading N_LAYERS axis and fuse QKV / KV."""
    def stack(fn):
        return jnp.stack([fn(lp) for lp in params["layers"]], axis=0)

    sa_wqkv = stack(lambda lp: jnp.concatenate([lp[0][0], lp[0][1], lp[0][2]], axis=1))
    sa_bqkv = stack(lambda lp: jnp.concatenate([lp[1][0], lp[1][1], lp[1][2]])[None, :])
    sa_wo   = stack(lambda lp: lp[0][3])
    sa_bo   = stack(lambda lp: lp[1][3][None, :])
    ca_wq   = stack(lambda lp: lp[2][0])
    ca_bq   = stack(lambda lp: lp[3][0][None, :])
    ca_wkv  = stack(lambda lp: jnp.concatenate([lp[2][1], lp[2][2]], axis=1))
    ca_bkv  = stack(lambda lp: jnp.concatenate([lp[3][1], lp[3][2]])[None, :])
    ca_wo   = stack(lambda lp: lp[2][3])
    ca_bo   = stack(lambda lp: lp[3][3][None, :])
    ff_w1   = stack(lambda lp: lp[4])
    ff_b1   = stack(lambda lp: lp[5])
    ff_w2   = stack(lambda lp: lp[6])
    ff_b2   = stack(lambda lp: lp[7])
    ln_g    = stack(lambda lp: lp[8])
    ln_b    = stack(lambda lp: lp[9])
    return (sa_wqkv, sa_bqkv, sa_wo, sa_bo, ca_wq, ca_bq, ca_wkv, ca_bkv,
            ca_wo, ca_bo, ff_w1, ff_b1, ff_w2, ff_b2, ln_g, ln_b)


def _zero_map(n):
    return lambda b: (0,) * n


# ----------------------------- full decoder forward --------------------------
def decoder_forward(trg_tokens, enc_src, trg_mask, src_mask, params):
    B, T = trg_tokens.shape
    S = enc_src.shape[1]
    H, V = HID_DIM, OUTPUT_DIM
    scale = math.sqrt(HID_DIM)

    # Embedding gather kept as plain-JAX glue (data movement, not a hot matmul).
    x = params["tok_emb"][trg_tokens] * scale \
        + params["pos_emb"][jnp.arange(T)][None, :, :]

    # Additive float masks precomputed once outside the kernel.
    tmask_add = jnp.where(trg_mask == 0, NEG_INF, 0.0).astype(jnp.float32)
    smask_add = jnp.where(src_mask == 0, NEG_INF, 0.0).astype(jnp.float32)

    packed = pack_params(params)

    in_specs = [
        pl.BlockSpec((1, T, H), lambda b: (b, 0, 0)),
        pl.BlockSpec((1, S, H), lambda b: (b, 0, 0)),
        pl.BlockSpec((1, 1, T, T), lambda b: (b, 0, 0, 0)),
        pl.BlockSpec((1, 1, 1, S), lambda b: (b, 0, 0, 0)),
    ]
    # Stacked per-layer weights: full-block, constant index_map (no re-DMA).
    in_specs += [pl.BlockSpec(w.shape, _zero_map(w.ndim)) for w in packed]
    # fc_out weights.
    in_specs += [
        pl.BlockSpec((H, V), lambda b: (0, 0)),
        pl.BlockSpec((1, V), lambda b: (0, 0)),
    ]

    out_shapes = (jax.ShapeDtypeStruct((B, T, V), jnp.float32),
                  jax.ShapeDtypeStruct((B, T, N_HEADS * S), jnp.float32))
    out_specs = (pl.BlockSpec((1, T, V), lambda b: (b, 0, 0)),
                 pl.BlockSpec((1, T, N_HEADS * S), lambda b: (b, 0, 0)))

    out, attn_flat = pl.pallas_call(
        decoder_kernel,
        out_shape=out_shapes,
        grid=(B,),
        in_specs=in_specs,
        out_specs=out_specs,
        compiler_params=pltpu.CompilerParams(
            dimension_semantics=("parallel",)),   # batch axis independent -> megacore
    )(x, enc_src, tmask_add, smask_add, *packed, params["fc_w"], params["fc_b"])

    # Re-layout the lane-dense attn slab to the PyTorch (B, n_heads, T, S) shape.
    attn = attn_flat.reshape(B, T, N_HEADS, S).transpose(0, 2, 1, 3)
    return out, attn


# ----------------------------- pure-JAX reference ----------------------------
def _ref_mha(xq, xkv, mask, w, b):
    B, T, H = xq.shape
    q = xq @ w[0] + b[0]
    k = xkv @ w[1] + b[1]
    v = xkv @ w[2] + b[2]
    split = lambda t: t.reshape(B, -1, N_HEADS, HEAD_DIM).transpose(0, 2, 1, 3)
    q, k, v = split(q), split(k), split(v)
    energy = jnp.einsum("bhtd,bhsd->bhts", q, k) / math.sqrt(HEAD_DIM)
    energy = jnp.where(mask == 0, NEG_INF, energy)
    attn = jax.nn.softmax(energy, axis=-1)
    x = jnp.einsum("bhts,bhsd->bhtd", attn, v)
    x = x.transpose(0, 2, 1, 3).reshape(B, T, H)
    return x @ w[3] + b[3], attn


def _ref_ln(x, g, bta):
    mean = jnp.mean(x, axis=-1, keepdims=True)
    var = jnp.mean((x - mean) ** 2, axis=-1, keepdims=True)
    return (x - mean) * jax.lax.rsqrt(var + LN_EPS) * g + bta


def decoder_forward_ref(trg_tokens, enc_src, trg_mask, src_mask, params):
    B, T = trg_tokens.shape
    x = params["tok_emb"][trg_tokens] * math.sqrt(HID_DIM) \
        + params["pos_emb"][jnp.arange(T)][None]
    attn = None
    for (sa_w, sa_b, ca_w, ca_b, w1, b1, w2, b2, lng, lnb) in params["layers"]:
        s, _ = _ref_mha(x, x, trg_mask, sa_w, sa_b)
        x = _ref_ln(x + s, lng[0], lnb[0])
        c, attn = _ref_mha(x, enc_src, src_mask, ca_w, ca_b)
        x = _ref_ln(x + c, lng[1], lnb[1])
        f = jax.nn.relu(x @ w1 + b1[0]) @ w2 + b2[0]
        x = _ref_ln(x + f, lng[2], lnb[2])
    out = x @ params["fc_w"] + params["fc_b"][0]
    return out, attn


# ----------------------------- param init ------------------------------------
def init_params(key):
    ks = iter(jax.random.split(key, 64))
    nrm = lambda shape, s=0.05: (s * jax.random.normal(next(ks), shape)).astype(jnp.float32)
    layers = []
    for _ in range(N_LAYERS):
        layers.append((
            nrm((4, HID_DIM, HID_DIM)),            # self-attn Wq/Wk/Wv/Wo (in, out)
            nrm((4, HID_DIM)),                     # self-attn biases
            nrm((4, HID_DIM, HID_DIM)),            # cross-attn W
            nrm((4, HID_DIM)),                     # cross-attn biases
            nrm((HID_DIM, PF_DIM)),                # ffn W1
            nrm((1, PF_DIM)),                      # ffn b1
            nrm((PF_DIM, HID_DIM)),                # ffn W2
            nrm((1, HID_DIM)),                     # ffn b2
            jnp.ones((3, HID_DIM), jnp.float32),   # layer-norm gamma (PyTorch default)
            jnp.zeros((3, HID_DIM), jnp.float32),  # layer-norm beta
        ))
    return {
        "tok_emb": nrm((OUTPUT_DIM, HID_DIM), 1.0),
        "pos_emb": nrm((MAX_LENGTH, HID_DIM), 1.0),
        "layers": layers,
        "fc_w": nrm((HID_DIM, OUTPUT_DIM)),
        "fc_b": nrm((1, OUTPUT_DIM)),
    }


# ----------------------------- main -------------------------------------------
if __name__ == "__main__":
    key = jax.random.PRNGKey(0)
    kp, kt, ke = jax.random.split(key, 3)

    B, T, S = 2, 8, 10
    params = init_params(kp)

    trg_tokens = jax.random.randint(kt, (B, T), 0, OUTPUT_DIM, dtype=jnp.int32)
    enc_src = jax.random.normal(ke, (B, S, HID_DIM), dtype=jnp.float32)
    trg_mask = jnp.broadcast_to(
        jnp.tril(jnp.ones((T, T), jnp.int32))[None, None], (B, 1, T, T))
    src_mask = jnp.ones((B, 1, 1, S), jnp.int32)

    out, attn = decoder_forward(trg_tokens, enc_src, trg_mask, src_mask, params)
    out = jax.block_until_ready(out)
    attn = jax.block_until_ready(attn)

    out_ref, attn_ref = decoder_forward_ref(trg_tokens, enc_src, trg_mask,
                                            src_mask, params)
    assert out.shape == (B, T, OUTPUT_DIM)
    assert attn.shape == (B, N_HEADS, T, S)
    assert jnp.allclose(out, out_ref, atol=1e-4, rtol=1e-4)
    assert jnp.allclose(attn, attn_ref, atol=1e-4, rtol=1e-4)

    print("KERNEL_OK")
</pallas_src>

<mosaic_0001>
module attributes {stable_mosaic.version = 11 : i64} {
  func.func @decoder_kernel(%arg0: i32, %arg1: memref<1x8x32xf32, #tpu.memory_space<vmem>>, %arg2: memref<1x10x32xf32, #tpu.memory_space<vmem>>, %arg3: memref<1x1x8x8xf32, #tpu.memory_space<vmem>>, %arg4: memref<1x1x1x10xf32, #tpu.memory_space<vmem>>, %arg5: memref<2x32x96xf32, #tpu.memory_space<vmem>>, %arg6: memref<2x1x96xf32, #tpu.memory_space<vmem>>, %arg7: memref<2x32x32xf32, #tpu.memory_space<vmem>>, %arg8: memref<2x1x32xf32, #tpu.memory_space<vmem>>, %arg9: memref<2x32x32xf32, #tpu.memory_space<vmem>>, %arg10: memref<2x1x32xf32, #tpu.memory_space<vmem>>, %arg11: memref<2x32x64xf32, #tpu.memory_space<vmem>>, %arg12: memref<2x1x64xf32, #tpu.memory_space<vmem>>, %arg13: memref<2x32x32xf32, #tpu.memory_space<vmem>>, %arg14: memref<2x1x32xf32, #tpu.memory_space<vmem>>, %arg15: memref<2x32x64xf32, #tpu.memory_space<vmem>>, %arg16: memref<2x1x64xf32, #tpu.memory_space<vmem>>, %arg17: memref<2x64x32xf32, #tpu.memory_space<vmem>>, %arg18: memref<2x1x32xf32, #tpu.memory_space<vmem>>, %arg19: memref<2x3x32xf32, #tpu.memory_space<vmem>>, %arg20: memref<2x3x32xf32, #tpu.memory_space<vmem>>, %arg21: memref<32x12xf32, #tpu.memory_space<vmem>>, %arg22: memref<1x12xf32, #tpu.memory_space<vmem>>, %arg23: memref<1x8x12xf32, #tpu.memory_space<vmem>>, %arg24: memref<1x8x40xf32, #tpu.memory_space<vmem>>) attributes {dimension_semantics = [#tpu.dimension_semantics<parallel>], iteration_bounds = array<i64: 2>, scalar_prefetch = 0 : i64, scratch_operands = 0 : i64, tpu.core_type = #tpu.core_type<tc>, window_params = [{transform_indices = @transform_0, window_bounds = array<i64: 1, 8, 32>}, {transform_indices = @transform_1, window_bounds = array<i64: 1, 10, 32>}, {transform_indices = @transform_2, window_bounds = array<i64: 1, 1, 8, 8>}, {transform_indices = @transform_3, window_bounds = array<i64: 1, 1, 1, 10>}, {pipeline_mode = #tpu.pipeline_mode<synchronous>, transform_indices = @transform_4, window_bounds = array<i64: 2, 32, 96>}, {pipeline_mode = #tpu.pipeline_mode<synchronous>, transform_indices = @transform_5, window_bounds = array<i64: 2, 1, 96>}, {pipeline_mode = #tpu.pipeline_mode<synchronous>, transform_indices = @transform_6, window_bounds = array<i64: 2, 32, 32>}, {pipeline_mode = #tpu.pipeline_mode<synchronous>, transform_indices = @transform_7, window_bounds = array<i64: 2, 1, 32>}, {pipeline_mode = #tpu.pipeline_mode<synchronous>, transform_indices = @transform_8, window_bounds = array<i64: 2, 32, 32>}, {pipeline_mode = #tpu.pipeline_mode<synchronous>, transform_indices = @transform_9, window_bounds = array<i64: 2, 1, 32>}, {pipeline_mode = #tpu.pipeline_mode<synchronous>, transform_indices = @transform_10, window_bounds = array<i64: 2, 32, 64>}, {pipeline_mode = #tpu.pipeline_mode<synchronous>, transform_indices = @transform_11, window_bounds = array<i64: 2, 1, 64>}, {pipeline_mode = #tpu.pipeline_mode<synchronous>, transform_indices = @transform_12, window_bounds = array<i64: 2, 32, 32>}, {pipeline_mode = #tpu.pipeline_mode<synchronous>, transform_indices = @transform_13, window_bounds = array<i64: 2, 1, 32>}, {pipeline_mode = #tpu.pipeline_mode<synchronous>, transform_indices = @transform_14, window_bounds = array<i64: 2, 32, 64>}, {pipeline_mode = #tpu.pipeline_mode<synchronous>, transform_indices = @transform_15, window_bounds = array<i64: 2, 1, 64>}, {pipeline_mode = #tpu.pipeline_mode<synchronous>, transform_indices = @transform_16, window_bounds = array<i64: 2, 64, 32>}, {pipeline_mode = #tpu.pipeline_mode<synchronous>, transform_indices = @transform_17, window_bounds = array<i64: 2, 1, 32>}, {pipeline_mode = #tpu.pipeline_mode<synchronous>, transform_indices = @transform_18, window_bounds = array<i64: 2, 3, 32>}, {pipeline_mode = #tpu.pipeline_mode<synchronous>, transform_indices = @transform_19, window_bounds = array<i64: 2, 3, 32>}, {pipeline_mode = #tpu.pipeline_mode<synchronous>, transform_indices = @transform_20, window_bounds = array<i64: 32, 12>}, {pipeline_mode = #tpu.pipeline_mode<synchronous>, transform_indices = @transform_21, window_bounds = array<i64: 1, 12>}, {transform_indices = @transform_22, window_bounds = array<i64: 1, 8, 12>}, {transform_indices = @transform_23, window_bounds = array<i64: 1, 8, 40>}]} {
    %c0 = arith.constant 0 : index
    %c0_0 = arith.constant 0 : index
    %c0_1 = arith.constant 0 : index
    %0 = vector.load %arg1[%c0, %c0_0, %c0_1] : memref<1x8x32xf32, #tpu.memory_space<vmem>>, vector<1x8x32xf32>
    %1 = vector.shape_cast %0 : vector<1x8x32xf32> to vector<8x32xf32>
    %c0_2 = arith.constant 0 : index
    %c0_3 = arith.constant 0 : index
    %c0_4 = arith.constant 0 : index
    %2 = vector.load %arg2[%c0_2, %c0_3, %c0_4] : memref<1x10x32xf32, #tpu.memory_space<vmem>>, vector<1x10x32xf32>
    %3 = vector.shape_cast %2 : vector<1x10x32xf32> to vector<10x32xf32>
    %c0_5 = arith.constant 0 : index
    %c0_6 = arith.constant 0 : index
    %c0_7 = arith.constant 0 : index
    %c0_8 = arith.constant 0 : index
    %4 = vector.load %arg3[%c0_5, %c0_6, %c0_7, %c0_8] : memref<1x1x8x8xf32, #tpu.memory_space<vmem>>, vector<1x1x8x8xf32>
    %5 = vector.shape_cast %4 : vector<1x1x8x8xf32> to vector<8x8xf32>
    %c0_9 = arith.constant 0 : index
    %c0_10 = arith.constant 0 : index
    %c0_11 = arith.constant 0 : index
    %c0_12 = arith.constant 0 : index
    %6 = vector.load %arg4[%c0_9, %c0_10, %c0_11, %c0_12] : memref<1x1x1x10xf32, #tpu.memory_space<vmem>>, vector<1x1x1x10xf32>
    %7 = vector.shape_cast %6 : vector<1x1x1x10xf32> to vector<1x10xf32>
    %c0_13 = arith.constant 0 : index
    %c0_14 = arith.constant 0 : index
    %c0_15 = arith.constant 0 : index
    %8 = vector.load %arg19[%c0_13, %c0_14, %c0_15] : memref<2x3x32xf32, #tpu.memory_space<vmem>>, vector<1x3x32xf32>
    %9 = vector.shape_cast %8 : vector<1x3x32xf32> to vector<3x32xf32>
    %c0_16 = arith.constant 0 : index
    %c0_17 = arith.constant 0 : index
    %c0_18 = arith.constant 0 : index
    %10 = vector.load %arg20[%c0_16, %c0_17, %c0_18] : memref<2x3x32xf32, #tpu.memory_space<vmem>>, vector<1x3x32xf32>
    %11 = vector.shape_cast %10 : vector<1x3x32xf32> to vector<3x32xf32>
    %c0_19 = arith.constant 0 : index
    %c0_20 = arith.constant 0 : index
    %c0_21 = arith.constant 0 : index
    %12 = vector.load %arg5[%c0_19, %c0_20, %c0_21] : memref<2x32x96xf32, #tpu.memory_space<vmem>>, vector<1x32x96xf32>
    %13 = vector.shape_cast %12 : vector<1x32x96xf32> to vector<32x96xf32>
    %cst = arith.constant dense<0.000000e+00> : vector<8x96xf32>
    %14 = tpu.matmul %1, %13, %cst {dimension_numbers = #tpu.dot_dimension_numbers<[1], [0], [0], [1], [0, 0, 1, 1], [], []>} : vector<8x32xf32>, vector<32x96xf32>, vector<8x96xf32> -> vector<8x96xf32>
    %c0_22 = arith.constant 0 : index
    %c0_23 = arith.constant 0 : index
    %c0_24 = arith.constant 0 : index
    %15 = vector.load %arg6[%c0_22, %c0_23, %c0_24] : memref<2x1x96xf32, #tpu.memory_space<vmem>>, vector<1x1x96xf32>
    %16 = vector.shape_cast %15 : vector<1x1x96xf32> to vector<1x96xf32>
    %17 = vector.broadcast %16 : vector<1x96xf32> to vector<8x96xf32>
    %18 = arith.addf %14, %17 : vector<8x96xf32>
    %19 = vector.extract_strided_slice %18 {offsets = [0, 0], sizes = [8, 32], strides = [1, 1]} : vector<8x96xf32> to vector<8x32xf32>
    %20 = vector.extract_strided_slice %18 {offsets = [0, 32], sizes = [8, 32], strides = [1, 1]} : vector<8x96xf32> to vector<8x32xf32>
    %21 = vector.extract_strided_slice %18 {offsets = [0, 64], sizes = [8, 32], strides = [1, 1]} : vector<8x96xf32> to vector<8x32xf32>
    %c0_25 = arith.constant 0 : index
    %c0_26 = arith.constant 0 : index
    %c0_27 = arith.constant 0 : index
    %22 = vector.load %arg7[%c0_25, %c0_26, %c0_27] : memref<2x32x32xf32, #tpu.memory_space<vmem>>, vector<1x32x32xf32>
    %23 = vector.shape_cast %22 : vector<1x32x32xf32> to vector<32x32xf32>
    %c0_28 = arith.constant 0 : index
    %c0_29 = arith.constant 0 : index
    %c0_30 = arith.constant 0 : index
    %24 = vector.load %arg8[%c0_28, %c0_29, %c0_30] : memref<2x1x32xf32, #tpu.memory_space<vmem>>, vector<1x1x32xf32>
    %25 = vector.shape_cast %24 : vector<1x1x32xf32> to vector<1x32xf32>
    %26 = vector.extract_strided_slice %19 {offsets = [0, 0], sizes = [8, 8], strides = [1, 1]} : vector<8x32xf32> to vector<8x8xf32>
    %27 = vector.extract_strided_slice %20 {offsets = [0, 0], sizes = [8, 8], strides = [1, 1]} : vector<8x32xf32> to vector<8x8xf32>
    %28 = tpu.transpose %27, [1, 0] : vector<8x8xf32> -> vector<8x8xf32>
    %cst_31 = arith.constant dense<0.000000e+00> : vector<8x8xf32>
    %29 = tpu.matmul %26, %28, %cst_31 {dimension_numbers = #tpu.dot_dimension_numbers<[1], [0], [0], [1], [0, 0, 1, 1], [], []>} : vector<8x8xf32>, vector<8x8xf32>, vector<8x8xf32> -> vector<8x8xf32>
    %cst_32 = arith.constant 0.353553385 : f32
    %30 = vector.broadcast %cst_32 : f32 to vector<8x8xf32>
    %31 = arith.mulf %29, %30 : vector<8x8xf32>
    %32 = arith.addf %31, %5 : vector<8x8xf32>
    %cst_33 = arith.constant dense<0xFF800000> : vector<8xf32>
    %33 = vector.multi_reduction <maximumf>, %32, %cst_33 [1] : vector<8x8xf32> to vector<8xf32>
    %34 = vector.shape_cast %33 : vector<8xf32> to vector<8x1xf32>
    %35 = vector.broadcast %34 : vector<8x1xf32> to vector<8x8xf32>
    %36 = arith.subf %32, %35 : vector<8x8xf32>
    %37 = math.exp %36 : vector<8x8xf32>
    %cst_34 = arith.constant dense<0.000000e+00> : vector<8xf32>
    %38 = vector.multi_reduction <add>, %37, %cst_34 [1] : vector<8x8xf32> to vector<8xf32>
    %39 = vector.shape_cast %38 : vector<8xf32> to vector<8x1xf32>
    %cst_35 = arith.constant 1.000000e+00 : f32
    %40 = vector.broadcast %cst_35 : f32 to vector<8x1xf32>
    %41 = arith.divf %40, %39 : vector<8x1xf32>
    %42 = vector.broadcast %41 : vector<8x1xf32> to vector<8x8xf32>
    %43 = arith.mulf %37, %42 : vector<8x8xf32>
    %44 = vector.extract_strided_slice %21 {offsets = [0, 0], sizes = [8, 8], strides = [1, 1]} : vector<8x32xf32> to vector<8x8xf32>
    %cst_36 = arith.constant dense<0.000000e+00> : vector<8x8xf32>
    %45 = tpu.matmul %43, %44, %cst_36 {dimension_numbers = #tpu.dot_dimension_numbers<[1], [0], [0], [1], [0, 0, 1, 1], [], []>} : vector<8x8xf32>, vector<8x8xf32>, vector<8x8xf32> -> vector<8x8xf32>
    %46 = vector.extract_strided_slice %23 {offsets = [0, 0], sizes = [8, 32], strides = [1, 1]} : vector<32x32xf32> to vector<8x32xf32>
    %cst_37 = arith.constant dense<0.000000e+00> : vector<8x32xf32>
    %47 = tpu.matmul %45, %46, %cst_37 {dimension_numbers = #tpu.dot_dimension_numbers<[1], [0], [0], [1], [0, 0, 1, 1], [], []>} : vector<8x8xf32>, vector<8x32xf32>, vector<8x32xf32> -> vector<8x32xf32>
    %48 = vector.extract_strided_slice %19 {offsets = [0, 8], sizes = [8, 8], strides = [1, 1]} : vector<8x32xf32> to vector<8x8xf32>
    %49 = vector.extract_strided_slice %20 {offsets = [0, 8], sizes = [8, 8], strides = [1, 1]} : vector<8x32xf32> to vector<8x8xf32>
    %50 = tpu.transpose %49, [1, 0] : vector<8x8xf32> -> vector<8x8xf32>
    %cst_38 = arith.constant dense<0.000000e+00> : vector<8x8xf32>
    %51 = tpu.matmul %48, %50, %cst_38 {dimension_numbers = #tpu.dot_dimension_numbers<[1], [0], [0], [1], [0, 0, 1, 1], [], []>} : vector<8x8xf32>, vector<8x8xf32>, vector<8x8xf32> -> vector<8x8xf32>
    %cst_39 = arith.constant 0.353553385 : f32
    %52 = vector.broadcast %cst_39 : f32 to vector<8x8xf32>
    %53 = arith.mulf %51, %52 : vector<8x8xf32>
    %54 = arith.addf %53, %5 : vector<8x8xf32>
    %cst_40 = arith.constant dense<0xFF800000> : vector<8xf32>
    %55 = vector.multi_reduction <maximumf>, %54, %cst_40 [1] : vector<8x8xf32> to vector<8xf32>
    %56 = vector.shape_cast %55 : vector<8xf32> to vector<8x1xf32>
    %57 = vector.broadcast %56 : vector<8x1xf32> to vector<8x8xf32>
    %58 = arith.subf %54, %57 : vector<8x8xf32>
    %59 = math.exp %58 : vector<8x8xf32>
    %cst_41 = arith.constant dense<0.000000e+00> : vector<8xf32>
    %60 = vector.multi_reduction <add>, %59, %cst_41 [1] : vector<8x8xf32> to vector<8xf32>
    %61 = vector.shape_cast %60 : vector<8xf32> to vector<8x1xf32>
    %cst_42 = arith.constant 1.000000e+00 : f32
    %62 = vector.broadcast %cst_42 : f32 to vector<8x1xf32>
    %63 = arith.divf %62, %61 : vector<8x1xf32>
    %64 = vector.broadcast %63 : vector<8x1xf32> to vector<8x8xf32>
    %65 = arith.mulf %59, %64 : vector<8x8xf32>
    %66 = vector.extract_strided_slice %21 {offsets = [0, 8], sizes = [8, 8], strides = [1, 1]} : vector<8x32xf32> to vector<8x8xf32>
    %cst_43 = arith.constant dense<0.000000e+00> : vector<8x8xf32>
    %67 = tpu.matmul %65, %66, %cst_43 {dimension_numbers = #tpu.dot_dimension_numbers<[1], [0], [0], [1], [0, 0, 1, 1], [], []>} : vector<8x8xf32>, vector<8x8xf32>, vector<8x8xf32> -> vector<8x8xf32>
    %68 = vector.extract_strided_slice %23 {offsets = [8, 0], sizes = [8, 32], strides = [1, 1]} : vector<32x32xf32> to vector<8x32xf32>
    %cst_44 = arith.constant dense<0.000000e+00> : vector<8x32xf32>
    %69 = tpu.matmul %67, %68, %cst_44 {dimension_numbers = #tpu.dot_dimension_numbers<[1], [0], [0], [1], [0, 0, 1, 1], [], []>} : vector<8x8xf32>, vector<8x32xf32>, vector<8x32xf32> -> vector<8x32xf32>
    %70 = arith.addf %47, %69 : vector<8x32xf32>
    %71 = vector.extract_strided_slice %19 {offsets = [0, 16], sizes = [8, 8], strides = [1, 1]} : vector<8x32xf32> to vector<8x8xf32>
    %72 = vector.extract_strided_slice %20 {offsets = [0, 16], sizes = [8, 8], strides = [1, 1]} : vector<8x32xf32> to vector<8x8xf32>
    %73 = tpu.transpose %72, [1, 0] : vector<8x8xf32> -> vector<8x8xf32>
    %cst_45 = arith.constant dense<0.000000e+00> : vector<8x8xf32>
    %74 = tpu.matmul %71, %73, %cst_45 {dimension_numbers = #tpu.dot_dimension_numbers<[1], [0], [0], [1], [0, 0, 1, 1], [], []>} : vector<8x8xf32>, vector<8x8xf32>, vector<8x8xf32> -> vector<8x8xf32>
    %cst_46 = arith.constant 0.353553385 : f32
    %75 = vector.broadcast %cst_46 : f32 to vector<8x8xf32>
    %76 = arith.mulf %74, %75 : vector<8x8xf32>
    %77 = arith.addf %76, %5 : vector<8x8xf32>
    %cst_47 = arith.constant dense<0xFF800000> : vector<8xf32>
    %78 = vector.multi_reduction <maximumf>, %77, %cst_47 [1] : vector<8x8xf32> to vector<8xf32>
    %79 = vector.shape_cast %78 : vector<8xf32> to vector<8x1xf32>
    %80 = vector.broadcast %79 : vector<8x1xf32> to vector<8x8xf32>
    %81 = arith.subf %77, %80 : vector<8x8xf32>
    %82 = math.exp %81 : vector<8x8xf32>
    %cst_48 = arith.constant dense<0.000000e+00> : vector<8xf32>
    %83 = vector.multi_reduction <add>, %82, %cst_48 [1] : vector<8x8xf32> to vector<8xf32>
    %84 = vector.shape_cast %83 : vector<8xf32> to vector<8x1xf32>
    %cst_49 = arith.constant 1.000000e+00 : f32
    %85 = vector.broadcast %cst_49 : f32 to vector<8x1xf32>
    %86 = arith.divf %85, %84 : vector<8x1xf32>
    %87 = vector.broadcast %86 : vector<8x1xf32> to vector<8x8xf32>
    %88 = arith.mulf %82, %87 : vector<8x8xf32>
    %89 = vector.extract_strided_slice %21 {offsets = [0, 16], sizes = [8, 8], strides = [1, 1]} : vector<8x32xf32> to vector<8x8xf32>
    %cst_50 = arith.constant dense<0.000000e+00> : vector<8x8xf32>
    %90 = tpu.matmul %88, %89, %cst_50 {dimension_numbers = #tpu.dot_dimension_numbers<[1], [0], [0], [1], [0, 0, 1, 1], [], []>} : vector<8x8xf32>, vector<8x8xf32>, vector<8x8xf32> -> vector<8x8xf32>
    %91 = vector.extract_strided_slice %23 {offsets = [16, 0], sizes = [8, 32], strides = [1, 1]} : vector<32x32xf32> to vector<8x32xf32>
    %cst_51 = arith.constant dense<0.000000e+00> : vector<8x32xf32>
    %92 = tpu.matmul %90, %91, %cst_51 {dimension_numbers = #tpu.dot_dimension_numbers<[1], [0], [0], [1], [0, 0, 1, 1], [], []>} : vector<8x8xf32>, vector<8x32xf32>, vector<8x32xf32> -> vector<8x32xf32>
    %93 = arith.addf %70, %92 : vector<8x32xf32>
    %94 = vector.extract_strided_slice %19 {offsets = [0, 24], sizes = [8, 8], strides = [1, 1]} : vector<8x32xf32> to vector<8x8xf32>
    %95 = vector.extract_strided_slice %20 {offsets = [0, 24], sizes = [8, 8], strides = [1, 1]} : vector<8x32xf32> to vector<8x8xf32>
    %96 = tpu.transpose %95, [1, 0] : vector<8x8xf32> -> vector<8x8xf32>
    %cst_52 = arith.constant dense<0.000000e+00> : vector<8x8xf32>
    %97 = tpu.matmul %94, %96, %cst_52 {dimension_numbers = #tpu.dot_dimension_numbers<[1], [0], [0], [1], [0, 0, 1, 1], [], []>} : vector<8x8xf32>, vector<8x8xf32>, vector<8x8xf32> -> vector<8x8xf32>
    %cst_53 = arith.constant 0.353553385 : f32
    %98 = vector.broadcast %cst_53 : f32 to vector<8x8xf32>
    %99 = arith.mulf %97, %98 : vector<8x8xf32>
    %100 = arith.addf %99, %5 : vector<8x8xf32>
    %cst_54 = arith.constant dense<0xFF800000> : vector<8xf32>
    %101 = vector.multi_reduction <maximumf>, %100, %cst_54 [1] : vector<8x8xf32> to vector<8xf32>
    %102 = vector.shape_cast %101 : vector<8xf32> to vector<8x1xf32>
    %103 = vector.broadcast %102 : vector<8x1xf32> to vector<8x8xf32>
    %104 = arith.subf %100, %103 : vector<8x8xf32>
    %105 = math.exp %104 : vector<8x8xf32>
    %cst_55 = arith.constant dense<0.000000e+00> : vector<8xf32>
    %106 = vector.multi_reduction <add>, %105, %cst_55 [1] : vector<8x8xf32> to vector<8xf32>
    %107 = vector.shape_cast %106 : vector<8xf32> to vector<8x1xf32>
    %cst_56 = arith.constant 1.000000e+00 : f32
    %108 = vector.broadcast %cst_56 : f32 to vector<8x1xf32>
    %109 = arith.divf %108, %107 : vector<8x1xf32>
    %110 = vector.broadcast %109 : vector<8x1xf32> to vector<8x8xf32>
    %111 = arith.mulf %105, %110 : vector<8x8xf32>
    %112 = vector.extract_strided_slice %21 {offsets = [0, 24], sizes = [8, 8], strides = [1, 1]} : vector<8x32xf32> to vector<8x8xf32>
    %cst_57 = arith.constant dense<0.000000e+00> : vector<8x8xf32>
    %113 = tpu.matmul %111, %112, %cst_57 {dimension_numbers = #tpu.dot_dimension_numbers<[1], [0], [0], [1], [0, 0, 1, 1], [], []>} : vector<8x8xf32>, vector<8x8xf32>, vector<8x8xf32> -> vector<8x8xf32>
    %114 = vector.extract_strided_slice %23 {offsets = [24, 0], sizes = [8, 32], strides = [1, 1]} : vector<32x32xf32> to vector<8x32xf32>
    %cst_58 = arith.constant dense<0.000000e+00> : vector<8x32xf32>
    %115 = tpu.matmul %113, %114, %cst_58 {dimension_numbers = #tpu.dot_dimension_numbers<[1], [0], [0], [1], [0, 0, 1, 1], [], []>} : vector<8x8xf32>, vector<8x32xf32>, vector<8x32xf32> -> vector<8x32xf32>
    %116 = arith.addf %93, %115 : vector<8x32xf32>
    %117 = vector.broadcast %25 : vector<1x32xf32> to vector<8x32xf32>
    %118 = arith.addf %116, %117 : vector<8x32xf32>
    %119 = arith.addf %1, %118 : vector<8x32xf32>
    %120 = vector.extract_strided_slice %9 {offsets = [0, 0], sizes = [1, 32], strides = [1, 1]} : vector<3x32xf32> to vector<1x32xf32>
    %121 = vector.shape_cast %120 : vector<1x32xf32> to vector<32xf32>
    %122 = vector.shape_cast %121 : vector<32xf32> to vector<1x32xf32>
    %123 = vector.extract_strided_slice %11 {offsets = [0, 0], sizes = [1, 32], strides = [1, 1]} : vector<3x32xf32> to vector<1x32xf32>
    %124 = vector.shape_cast %123 : vector<1x32xf32> to vector<32xf32>
    %125 = vector.shape_cast %124 : vector<32xf32> to vector<1x32xf32>
    %cst_59 = arith.constant dense<0.000000e+00> : vector<8xf32>
    %126 = vector.multi_reduction <add>, %119, %cst_59 [1] : vector<8x32xf32> to vector<8xf32>
    %127 = vector.shape_cast %126 : vector<8xf32> to vector<8x1xf32>
    %cst_60 = arith.constant 3.200000e+01 : f32
    %128 = vector.broadcast %cst_60 : f32 to vector<8x1xf32>
    %129 = arith.divf %127, %128 : vector<8x1xf32>
    %130 = vector.broadcast %129 : vector<8x1xf32> to vector<8x32xf32>
    %131 = arith.subf %119, %130 : vector<8x32xf32>
    %132 = arith.mulf %131, %131 : vector<8x32xf32>
    %cst_61 = arith.constant dense<0.000000e+00> : vector<8xf32>
    %133 = vector.multi_reduction <add>, %132, %cst_61 [1] : vector<8x32xf32> to vector<8xf32>
    %134 = vector.shape_cast %133 : vector<8xf32> to vector<8x1xf32>
    %cst_62 = arith.constant 3.200000e+01 : f32
    %135 = vector.broadcast %cst_62 : f32 to vector<8x1xf32>
    %136 = arith.divf %134, %135 : vector<8x1xf32>
    %137 = vector.broadcast %129 : vector<8x1xf32> to vector<8x32xf32>
    %138 = arith.subf %119, %137 : vector<8x32xf32>
    %cst_63 = arith.constant 9.99999974E-6 : f32
    %139 = vector.broadcast %cst_63 : f32 to vector<8x1xf32>
    %140 = arith.addf %136, %139 : vector<8x1xf32>
    %141 = math.rsqrt %140 : vector<8x1xf32>
    %142 = vector.broadcast %141 : vector<8x1xf32> to vector<8x32xf32>
    %143 = arith.mulf %138, %142 : vector<8x32xf32>
    %144 = vector.broadcast %122 : vector<1x32xf32> to vector<8x32xf32>
    %145 = arith.mulf %143, %144 : vector<8x32xf32>
    %146 = vector.broadcast %125 : vector<1x32xf32> to vector<8x32xf32>
    %147 = arith.addf %145, %146 : vector<8x32xf32>
    %c0_64 = arith.constant 0 : index
    %c0_65 = arith.constant 0 : index
    %c0_66 = arith.constant 0 : index
    %148 = vector.load %arg9[%c0_64, %c0_65, %c0_66] : memref<2x32x32xf32, #tpu.memory_space<vmem>>, vector<1x32x32xf32>
    %149 = vector.shape_cast %148 : vector<1x32x32xf32> to vector<32x32xf32>
    %cst_67 = arith.constant dense<0.000000e+00> : vector<8x32xf32>
    %150 = tpu.matmul %147, %149, %cst_67 {dimension_numbers = #tpu.dot_dimension_numbers<[1], [0], [0], [1], [0, 0, 1, 1], [], []>} : vector<8x32xf32>, vector<32x32xf32>, vector<8x32xf32> -> vector<8x32xf32>
    %c0_68 = arith.constant 0 : index
    %c0_69 = arith.constant 0 : index
    %c0_70 = arith.constant 0 : index
    %151 = vector.load %arg10[%c0_68, %c0_69, %c0_70] : memref<2x1x32xf32, #tpu.memory_space<vmem>>, vector<1x1x32xf32>
    %152 = vector.shape_cast %151 : vector<1x1x32xf32> to vector<1x32xf32>
    %153 = vector.broadcast %152 : vector<1x32xf32> to vector<8x32xf32>
    %154 = arith.addf %150, %153 : vector<8x32xf32>
    %c0_71 = arith.constant 0 : index
    %c0_72 = arith.constant 0 : index
    %c0_73 = arith.constant 0 : index
    %155 = vector.load %arg11[%c0_71, %c0_72, %c0_73] : memref<2x32x64xf32, #tpu.memory_space<vmem>>, vector<1x32x64xf32>
    %156 = vector.shape_cast %155 : vector<1x32x64xf32> to vector<32x64xf32>
    %cst_74 = arith.constant dense<0.000000e+00> : vector<10x64xf32>
    %157 = tpu.matmul %3, %156, %cst_74 {dimension_numbers = #tpu.dot_dimension_numbers<[1], [0], [0], [1], [0, 0, 1, 1], [], []>} : vector<10x32xf32>, vector<32x64xf32>, vector<10x64xf32> -> vector<10x64xf32>
    %c0_75 = arith.constant 0 : index
    %c0_76 = arith.constant 0 : index
    %c0_77 = arith.constant 0 : index
    %158 = vector.load %arg12[%c0_75, %c0_76, %c0_77] : memref<2x1x64xf32, #tpu.memory_space<vmem>>, vector<1x1x64xf32>
    %159 = vector.shape_cast %158 : vector<1x1x64xf32> to vector<1x64xf32>
    %160 = vector.broadcast %159 : vector<1x64xf32> to vector<10x64xf32>
    %161 = arith.addf %157, %160 : vector<10x64xf32>
    %162 = vector.extract_strided_slice %161 {offsets = [0, 0], sizes = [10, 32], strides = [1, 1]} : vector<10x64xf32> to vector<10x32xf32>
    %163 = vector.extract_strided_slice %161 {offsets = [0, 32], sizes = [10, 32], strides = [1, 1]} : vector<10x64xf32> to vector<10x32xf32>
    %c0_78 = arith.constant 0 : index
    %c0_79 = arith.constant 0 : index
    %c0_80 = arith.constant 0 : index
    %164 = vector.load %arg13[%c0_78, %c0_79, %c0_80] : memref<2x32x32xf32, #tpu.memory_space<vmem>>, vector<1x32x32xf32>
    %165 = vector.shape_cast %164 : vector<1x32x32xf32> to vector<32x32xf32>
    %c0_81 = arith.constant 0 : index
    %c0_82 = arith.constant 0 : index
    %c0_83 = arith.constant 0 : index
    %166 = vector.load %arg14[%c0_81, %c0_82, %c0_83] : memref<2x1x32xf32, #tpu.memory_space<vmem>>, vector<1x1x32xf32>
    %167 = vector.shape_cast %166 : vector<1x1x32xf32> to vector<1x32xf32>
    %168 = vector.extract_strided_slice %154 {offsets = [0, 0], sizes = [8, 8], strides = [1, 1]} : vector<8x32xf32> to vector<8x8xf32>
    %169 = vector.extract_strided_slice %162 {offsets = [0, 0], sizes = [10, 8], strides = [1, 1]} : vector<10x32xf32> to vector<10x8xf32>
    %170 = tpu.transpose %169, [1, 0] : vector<10x8xf32> -> vector<8x10xf32>
    %cst_84 = arith.constant dense<0.000000e+00> : vector<8x10xf32>
    %171 = tpu.matmul %168, %170, %cst_84 {dimension_numbers = #tpu.dot_dimension_numbers<[1], [0], [0], [1], [0, 0, 1, 1], [], []>} : vector<8x8xf32>, vector<8x10xf32>, vector<8x10xf32> -> vector<8x10xf32>
    %cst_85 = arith.constant 0.353553385 : f32
    %172 = vector.broadcast %cst_85 : f32 to vector<8x10xf32>
    %173 = arith.mulf %171, %172 : vector<8x10xf32>
    %174 = vector.broadcast %7 : vector<1x10xf32> to vector<8x10xf32>
    %175 = arith.addf %173, %174 : vector<8x10xf32>
    %cst_86 = arith.constant dense<0xFF800000> : vector<8xf32>
    %176 = vector.multi_reduction <maximumf>, %175, %cst_86 [1] : vector<8x10xf32> to vector<8xf32>
    %177 = vector.shape_cast %176 : vector<8xf32> to vector<8x1xf32>
    %178 = vector.broadcast %177 : vector<8x1xf32> to vector<8x10xf32>
    %179 = arith.subf %175, %178 : vector<8x10xf32>
    %180 = math.exp %179 : vector<8x10xf32>
    %cst_87 = arith.constant dense<0.000000e+00> : vector<8xf32>
    %181 = vector.multi_reduction <add>, %180, %cst_87 [1] : vector<8x10xf32> to vector<8xf32>
    %182 = vector.shape_cast %181 : vector<8xf32> to vector<8x1xf32>
    %cst_88 = arith.constant 1.000000e+00 : f32
    %183 = vector.broadcast %cst_88 : f32 to vector<8x1xf32>
    %184 = arith.divf %183, %182 : vector<8x1xf32>
    %185 = vector.broadcast %184 : vector<8x1xf32> to vector<8x10xf32>
    %186 = arith.mulf %180, %185 : vector<8x10xf32>
    %187 = vector.extract_strided_slice %163 {offsets = [0, 0], sizes = [10, 8], strides = [1, 1]} : vector<10x32xf32> to vector<10x8xf32>
    %cst_89 = arith.constant dense<0.000000e+00> : vector<8x8xf32>
    %188 = tpu.matmul %186, %187, %cst_89 {dimension_numbers = #tpu.dot_dimension_numbers<[1], [0], [0], [1], [0, 0, 1, 1], [], []>} : vector<8x10xf32>, vector<10x8xf32>, vector<8x8xf32> -> vector<8x8xf32>
    %189 = vector.extract_strided_slice %165 {offsets = [0, 0], sizes = [8, 32], strides = [1, 1]} : vector<32x32xf32> to vector<8x32xf32>
    %cst_90 = arith.constant dense<0.000000e+00> : vector<8x32xf32>
    %190 = tpu.matmul %188, %189, %cst_90 {dimension_numbers = #tpu.dot_dimension_numbers<[1], [0], [0], [1], [0, 0, 1, 1], [], []>} : vector<8x8xf32>, vector<8x32xf32>, vector<8x32xf32> -> vector<8x32xf32>
    %191 = vector.extract_strided_slice %154 {offsets = [0, 8], sizes = [8, 8], strides = [1, 1]} : vector<8x32xf32> to vector<8x8xf32>
    %192 = vector.extract_strided_slice %162 {offsets = [0, 8], sizes = [10, 8], strides = [1, 1]} : vector<10x32xf32> to vector<10x8xf32>
    %193 = tpu.transpose %192, [1, 0] : vector<10x8xf32> -> vector<8x10xf32>
    %cst_91 = arith.constant dense<0.000000e+00> : vector<8x10xf32>
    %194 = tpu.matmul %191, %193, %cst_91 {dimension_numbers = #tpu.dot_dimension_numbers<[1], [0], [0], [1], [0, 0, 1, 1], [], []>} : vector<8x8xf32>, vector<8x10xf32>, vector<8x10xf32> -> vector<8x10xf32>
    %cst_92 = arith.constant 0.353553385 : f32
    %195 = vector.broadcast %cst_92 : f32 to vector<8x10xf32>
    %196 = arith.mulf %194, %195 : vector<8x10xf32>
    %197 = vector.broadcast %7 : vector<1x10xf32> to vector<8x10xf32>
    %198 = arith.addf %196, %197 : vector<8x10xf32>
    %cst_93 = arith.constant dense<0xFF800000> : vector<8xf32>
    %199 = vector.multi_reduction <maximumf>, %198, %cst_93 [1] : vector<8x10xf32> to vector<8xf32>
    %200 = vector.shape_cast %199 : vector<8xf32> to vector<8x1xf32>
    %201 = vector.broadcast %200 : vector<8x1xf32> to vector<8x10xf32>
    %202 = arith.subf %198, %201 : vector<8x10xf32>
    %203 = math.exp %202 : vector<8x10xf32>
    %cst_94 = arith.constant dense<0.000000e+00> : vector<8xf32>
    %204 = vector.multi_reduction <add>, %203, %cst_94 [1] : vector<8x10xf32> to vector<8xf32>
    %205 = vector.shape_cast %204 : vector<8xf32> to vector<8x1xf32>
    %cst_95 = arith.constant 1.000000e+00 : f32
    %206 = vector.broadcast %cst_95 : f32 to vector<8x1xf32>
    %207 = arith.divf %206, %205 : vector<8x1xf32>
    %208 = vector.broadcast %207 : vector<8x1xf32> to vector<8x10xf32>
    %209 = arith.mulf %203, %208 : vector<8x10xf32>
    %210 = vector.extract_strided_slice %163 {offsets = [0, 8], sizes = [10, 8], strides = [1, 1]} : vector<10x32xf32> to vector<10x8xf32>
    %cst_96 = arith.constant dense<0.000000e+00> : vector<8x8xf32>
    %211 = tpu.matmul %209, %210, %cst_96 {dimension_numbers = #tpu.dot_dimension_numbers<[1], [0], [0], [1], [0, 0, 1, 1], [], []>} : vector<8x10xf32>, vector<10x8xf32>, vector<8x8xf32> -> vector<8x8xf32>
    %212 = vector.extract_strided_slice %165 {offsets = [8, 0], sizes = [8, 32], strides = [1, 1]} : vector<32x32xf32> to vector<8x32xf32>
    %cst_97 = arith.constant dense<0.000000e+00> : vector<8x32xf32>
    %213 = tpu.matmul %211, %212, %cst_97 {dimension_numbers = #tpu.dot_dimension_numbers<[1], [0], [0], [1], [0, 0, 1, 1], [], []>} : vector<8x8xf32>, vector<8x32xf32>, vector<8x32xf32> -> vector<8x32xf32>
    %214 = arith.addf %190, %213 : vector<8x32xf32>
    %215 = vector.extract_strided_slice %154 {offsets = [0, 16], sizes = [8, 8], strides = [1, 1]} : vector<8x32xf32> to vector<8x8xf32>
    %216 = vector.extract_strided_slice %162 {offsets = [0, 16], sizes = [10, 8], strides = [1, 1]} : vector<10x32xf32> to vector<10x8xf32>
    %217 = tpu.transpose %216, [1, 0] : vector<10x8xf32> -> vector<8x10xf32>
    %cst_98 = arith.constant dense<0.000000e+00> : vector<8x10xf32>
    %218 = tpu.matmul %215, %217, %cst_98 {dimension_numbers = #tpu.dot_dimension_numbers<[1], [0], [0], [1], [0, 0, 1, 1], [], []>} : vector<8x8xf32>, vector<8x10xf32>, vector<8x10xf32> -> vector<8x10xf32>
    %cst_99 = arith.constant 0.353553385 : f32
    %219 = vector.broadcast %cst_99 : f32 to vector<8x10xf32>
    %220 = arith.mulf %218, %219 : vector<8x10xf32>
    %221 = vector.broadcast %7 : vector<1x10xf32> to vector<8x10xf32>
    %222 = arith.addf %220, %221 : vector<8x10xf32>
    %cst_100 = arith.constant dense<0xFF800000> : vector<8xf32>
    %223 = vector.multi_reduction <maximumf>, %222, %cst_100 [1] : vector<8x10xf32> to vector<8xf32>
    %224 = vector.shape_cast %223 : vector<8xf32> to vector<8x1xf32>
    %225 = vector.broadcast %224 : vector<8x1xf32> to vector<8x10xf32>
    %226 = arith.subf %222, %225 : vector<8x10xf32>
    %227 = math.exp %226 : vector<8x10xf32>
    %cst_101 = arith.constant dense<0.000000e+00> : vector<8xf32>
    %228 = vector.multi_reduction <add>, %227, %cst_101 [1] : vector<8x10xf32> to vector<8xf32>
    %229 = vector.shape_cast %228 : vector<8xf32> to vector<8x1xf32>
    %cst_102 = arith.constant 1.000000e+00 : f32
    %230 = vector.broadcast %cst_102 : f32 to vector<8x1xf32>
    %231 = arith.divf %230, %229 : vector<8x1xf32>
    %232 = vector.broadcast %231 : vector<8x1xf32> to vector<8x10xf32>
    %233 = arith.mulf %227, %232 : vector<8x10xf32>
    %234 = vector.extract_strided_slice %163 {offsets = [0, 16], sizes = [10, 8], strides = [1, 1]} : vector<10x32xf32> to vector<10x8xf32>
    %cst_103 = arith.constant dense<0.000000e+00> : vector<8x8xf32>
    %235 = tpu.matmul %233, %234, %cst_103 {dimension_numbers = #tpu.dot_dimension_numbers<[1], [0], [0], [1], [0, 0, 1, 1], [], []>} : vector<8x10xf32>, vector<10x8xf32>, vector<8x8xf32> -> vector<8x8xf32>
    %236 = vector.extract_strided_slice %165 {offsets = [16, 0], sizes = [8, 32], strides = [1, 1]} : vector<32x32xf32> to vector<8x32xf32>
    %cst_104 = arith.constant dense<0.000000e+00> : vector<8x32xf32>
    %237 = tpu.matmul %235, %236, %cst_104 {dimension_numbers = #tpu.dot_dimension_numbers<[1], [0], [0], [1], [0, 0, 1, 1], [], []>} : vector<8x8xf32>, vector<8x32xf32>, vector<8x32xf32> -> vector<8x32xf32>
    %238 = arith.addf %214, %237 : vector<8x32xf32>
    %239 = vector.extract_strided_slice %154 {offsets = [0, 24], sizes = [8, 8], strides = [1, 1]} : vector<8x32xf32> to vector<8x8xf32>
    %240 = vector.extract_strided_slice %162 {offsets = [0, 24], sizes = [10, 8], strides = [1, 1]} : vector<10x32xf32> to vector<10x8xf32>
    %241 = tpu.transpose %240, [1, 0] : vector<10x8xf32> -> vector<8x10xf32>
    %cst_105 = arith.constant dense<0.000000e+00> : vector<8x10xf32>
    %242 = tpu.matmul %239, %241, %cst_105 {dimension_numbers = #tpu.dot_dimension_numbers<[1], [0], [0], [1], [0, 0, 1, 1], [], []>} : vector<8x8xf32>, vector<8x10xf32>, vector<8x10xf32> -> vector<8x10xf32>
    %cst_106 = arith.constant 0.353553385 : f32
    %243 = vector.broadcast %cst_106 : f32 to vector<8x10xf32>
    %244 = arith.mulf %242, %243 : vector<8x10xf32>
    %245 = vector.broadcast %7 : vector<1x10xf32> to vector<8x10xf32>
    %246 = arith.addf %244, %245 : vector<8x10xf32>
    %cst_107 = arith.constant dense<0xFF800000> : vector<8xf32>
    %247 = vector.multi_reduction <maximumf>, %246, %cst_107 [1] : vector<8x10xf32> to vector<8xf32>
    %248 = vector.shape_cast %247 : vector<8xf32> to vector<8x1xf32>
    %249 = vector.broadcast %248 : vector<8x1xf32> to vector<8x10xf32>
    %250 = arith.subf %246, %249 : vector<8x10xf32>
    %251 = math.exp %250 : vector<8x10xf32>
    %cst_108 = arith.constant dense<0.000000e+00> : vector<8xf32>
    %252 = vector.multi_reduction <add>, %251, %cst_108 [1] : vector<8x10xf32> to vector<8xf32>
    %253 = vector.shape_cast %252 : vector<8xf32> to vector<8x1xf32>
    %cst_109 = arith.constant 1.000000e+00 : f32
    %254 = vector.broadcast %cst_109 : f32 to vector<8x1xf32>
    %255 = arith.divf %254, %253 : vector<8x1xf32>
    %256 = vector.broadcast %255 : vector<8x1xf32> to vector<8x10xf32>
    %257 = arith.mulf %251, %256 : vector<8x10xf32>
    %258 = vector.extract_strided_slice %163 {offsets = [0, 24], sizes = [10, 8], strides = [1, 1]} : vector<10x32xf32> to vector<10x8xf32>
    %cst_110 = arith.constant dense<0.000000e+00> : vector<8x8xf32>
    %259 = tpu.matmul %257, %258, %cst_110 {dimension_numbers = #tpu.dot_dimension_numbers<[1], [0], [0], [1], [0, 0, 1, 1], [], []>} : vector<8x10xf32>, vector<10x8xf32>, vector<8x8xf32> -> vector<8x8xf32>
    %260 = vector.extract_strided_slice %165 {offsets = [24, 0], sizes = [8, 32], strides = [1, 1]} : vector<32x32xf32> to vector<8x32xf32>
    %cst_111 = arith.constant dense<0.000000e+00> : vector<8x32xf32>
    %261 = tpu.matmul %259, %260, %cst_111 {dimension_numbers = #tpu.dot_dimension_numbers<[1], [0], [0], [1], [0, 0, 1, 1], [], []>} : vector<8x8xf32>, vector<8x32xf32>, vector<8x32xf32> -> vector<8x32xf32>
    %262 = arith.addf %238, %261 : vector<8x32xf32>
    %263 = vector.broadcast %167 : vector<1x32xf32> to vector<8x32xf32>
    %264 = arith.addf %262, %263 : vector<8x32xf32>
    %265 = arith.addf %147, %264 : vector<8x32xf32>
    %266 = vector.extract_strided_slice %9 {offsets = [1, 0], sizes = [1, 32], strides = [1, 1]} : vector<3x32xf32> to vector<1x32xf32>
    %267 = vector.shape_cast %266 : vector<1x32xf32> to vector<32xf32>
    %268 = vector.shape_cast %267 : vector<32xf32> to vector<1x32xf32>
    %269 = vector.extract_strided_slice %11 {offsets = [1, 0], sizes = [1, 32], strides = [1, 1]} : vector<3x32xf32> to vector<1x32xf32>
    %270 = vector.shape_cast %269 : vector<1x32xf32> to vector<32xf32>
    %271 = vector.shape_cast %270 : vector<32xf32> to vector<1x32xf32>
    %cst_112 = arith.constant dense<0.000000e+00> : vector<8xf32>
    %272 = vector.multi_reduction <add>, %265, %cst_112 [1] : vector<8x32xf32> to vector<8xf32>
    %273 = vector.shape_cast %272 : vector<8xf32> to vector<8x1xf32>
    %cst_113 = arith.constant 3.200000e+01 : f32
    %274 = vector.broadcast %cst_113 : f32 to vector<8x1xf32>
    %275 = arith.divf %273, %274 : vector<8x1xf32>
    %276 = vector.broadcast %275 : vector<8x1xf32> to vector<8x32xf32>
    %277 = arith.subf %265, %276 : vector<8x32xf32>
    %278 = arith.mulf %277, %277 : vector<8x32xf32>
    %cst_114 = arith.constant dense<0.000000e+00> : vector<8xf32>
    %279 = vector.multi_reduction <add>, %278, %cst_114 [1] : vector<8x32xf32> to vector<8xf32>
    %280 = vector.shape_cast %279 : vector<8xf32> to vector<8x1xf32>
    %cst_115 = arith.constant 3.200000e+01 : f32
    %281 = vector.broadcast %cst_115 : f32 to vector<8x1xf32>
    %282 = arith.divf %280, %281 : vector<8x1xf32>
    %283 = vector.broadcast %275 : vector<8x1xf32> to vector<8x32xf32>
    %284 = arith.subf %265, %283 : vector<8x32xf32>
    %cst_116 = arith.constant 9.99999974E-6 : f32
    %285 = vector.broadcast %cst_116 : f32 to vector<8x1xf32>
    %286 = arith.addf %282, %285 : vector<8x1xf32>
    %287 = math.rsqrt %286 : vector<8x1xf32>
    %288 = vector.broadcast %287 : vector<8x1xf32> to vector<8x32xf32>
    %289 = arith.mulf %284, %288 : vector<8x32xf32>
    %290 = vector.broadcast %268 : vector<1x32xf32> to vector<8x32xf32>
    %291 = arith.mulf %289, %290 : vector<8x32xf32>
    %292 = vector.broadcast %271 : vector<1x32xf32> to vector<8x32xf32>
    %293 = arith.addf %291, %292 : vector<8x32xf32>
    %c0_117 = arith.constant 0 : index
    %c0_118 = arith.constant 0 : index
    %c0_119 = arith.constant 0 : index
    %294 = vector.load %arg15[%c0_117, %c0_118, %c0_119] : memref<2x32x64xf32, #tpu.memory_space<vmem>>, vector<1x32x64xf32>
    %295 = vector.shape_cast %294 : vector<1x32x64xf32> to vector<32x64xf32>
    %cst_120 = arith.constant dense<0.000000e+00> : vector<8x64xf32>
    %296 = tpu.matmul %293, %295, %cst_120 {dimension_numbers = #tpu.dot_dimension_numbers<[1], [0], [0], [1], [0, 0, 1, 1], [], []>} : vector<8x32xf32>, vector<32x64xf32>, vector<8x64xf32> -> vector<8x64xf32>
    %c0_121 = arith.constant 0 : index
    %c0_122 = arith.constant 0 : index
    %c0_123 = arith.constant 0 : index
    %297 = vector.load %arg16[%c0_121, %c0_122, %c0_123] : memref<2x1x64xf32, #tpu.memory_space<vmem>>, vector<1x1x64xf32>
    %298 = vector.shape_cast %297 : vector<1x1x64xf32> to vector<1x64xf32>
    %299 = vector.broadcast %298 : vector<1x64xf32> to vector<8x64xf32>
    %300 = arith.addf %296, %299 : vector<8x64xf32>
    %cst_124 = arith.constant 0.000000e+00 : f32
    %301 = vector.broadcast %cst_124 : f32 to vector<8x64xf32>
    %302 = arith.maximumf %300, %301 : vector<8x64xf32>
    %c0_125 = arith.constant 0 : index
    %c0_126 = arith.constant 0 : index
    %c0_127 = arith.constant 0 : index
    %303 = vector.load %arg17[%c0_125, %c0_126, %c0_127] : memref<2x64x32xf32, #tpu.memory_space<vmem>>, vector<1x64x32xf32>
    %304 = vector.shape_cast %303 : vector<1x64x32xf32> to vector<64x32xf32>
    %cst_128 = arith.constant dense<0.000000e+00> : vector<8x32xf32>
    %305 = tpu.matmul %302, %304, %cst_128 {dimension_numbers = #tpu.dot_dimension_numbers<[1], [0], [0], [1], [0, 0, 1, 1], [], []>} : vector<8x64xf32>, vector<64x32xf32>, vector<8x32xf32> -> vector<8x32xf32>
    %c0_129 = arith.constant 0 : index
    %c0_130 = arith.constant 0 : index
    %c0_131 = arith.constant 0 : index
    %306 = vector.load %arg18[%c0_129, %c0_130, %c0_131] : memref<2x1x32xf32, #tpu.memory_space<vmem>>, vector<1x1x32xf32>
    %307 = vector.shape_cast %306 : vector<1x1x32xf32> to vector<1x32xf32>
    %308 = vector.broadcast %307 : vector<1x32xf32> to vector<8x32xf32>
    %309 = arith.addf %305, %308 : vector<8x32xf32>
    %310 = arith.addf %293, %309 : vector<8x32xf32>
    %311 = vector.extract_strided_slice %9 {offsets = [2, 0], sizes = [1, 32], strides = [1, 1]} : vector<3x32xf32> to vector<1x32xf32>
    %312 = vector.shape_cast %311 : vector<1x32xf32> to vector<32xf32>
    %313 = vector.shape_cast %312 : vector<32xf32> to vector<1x32xf32>
    %314 = vector.extract_strided_slice %11 {offsets = [2, 0], sizes = [1, 32], strides = [1, 1]} : vector<3x32xf32> to vector<1x32xf32>
    %315 = vector.shape_cast %314 : vector<1x32xf32> to vector<32xf32>
    %316 = vector.shape_cast %315 : vector<32xf32> to vector<1x32xf32>
    %cst_132 = arith.constant dense<0.000000e+00> : vector<8xf32>
    %317 = vector.multi_reduction <add>, %310, %cst_132 [1] : vector<8x32xf32> to vector<8xf32>
    %318 = vector.shape_cast %317 : vector<8xf32> to vector<8x1xf32>
    %cst_133 = arith.constant 3.200000e+01 : f32
    %319 = vector.broadcast %cst_133 : f32 to vector<8x1xf32>
    %320 = arith.divf %318, %319 : vector<8x1xf32>
    %321 = vector.broadcast %320 : vector<8x1xf32> to vector<8x32xf32>
    %322 = arith.subf %310, %321 : vector<8x32xf32>
    %323 = arith.mulf %322, %322 : vector<8x32xf32>
    %cst_134 = arith.constant dense<0.000000e+00> : vector<8xf32>
    %324 = vector.multi_reduction <add>, %323, %cst_134 [1] : vector<8x32xf32> to vector<8xf32>
    %325 = vector.shape_cast %324 : vector<8xf32> to vector<8x1xf32>
    %cst_135 = arith.constant 3.200000e+01 : f32
    %326 = vector.broadcast %cst_135 : f32 to vector<8x1xf32>
    %327 = arith.divf %325, %326 : vector<8x1xf32>
    %328 = vector.broadcast %320 : vector<8x1xf32> to vector<8x32xf32>
    %329 = arith.subf %310, %328 : vector<8x32xf32>
    %cst_136 = arith.constant 9.99999974E-6 : f32
    %330 = vector.broadcast %cst_136 : f32 to vector<8x1xf32>
    %331 = arith.addf %327, %330 : vector<8x1xf32>
    %332 = math.rsqrt %331 : vector<8x1xf32>
    %333 = vector.broadcast %332 : vector<8x1xf32> to vector<8x32xf32>
    %334 = arith.mulf %329, %333 : vector<8x32xf32>
    %335 = vector.broadcast %313 : vector<1x32xf32> to vector<8x32xf32>
    %336 = arith.mulf %334, %335 : vector<8x32xf32>
    %337 = vector.broadcast %316 : vector<1x32xf32> to vector<8x32xf32>
    %338 = arith.addf %336, %337 : vector<8x32xf32>
    %c1 = arith.constant 1 : index
    %c0_137 = arith.constant 0 : index
    %c0_138 = arith.constant 0 : index
    %339 = vector.load %arg19[%c1, %c0_137, %c0_138] : memref<2x3x32xf32, #tpu.memory_space<vmem>>, vector<1x3x32xf32>
    %340 = vector.shape_cast %339 : vector<1x3x32xf32> to vector<3x32xf32>
    %c1_139 = arith.constant 1 : index
    %c0_140 = arith.constant 0 : index
    %c0_141 = arith.constant 0 : index
    %341 = vector.load %arg20[%c1_139, %c0_140, %c0_141] : memref<2x3x32xf32, #tpu.memory_space<vmem>>, vector<1x3x32xf32>
    %342 = vector.shape_cast %341 : vector<1x3x32xf32> to vector<3x32xf32>
    %c1_142 = arith.constant 1 : index
    %c0_143 = arith.constant 0 : index
    %c0_144 = arith.constant 0 : index
    %343 = vector.load %arg5[%c1_142, %c0_143, %c0_144] : memref<2x32x96xf32, #tpu.memory_space<vmem>>, vector<1x32x96xf32>
    %344 = vector.shape_cast %343 : vector<1x32x96xf32> to vector<32x96xf32>
    %cst_145 = arith.constant dense<0.000000e+00> : vector<8x96xf32>
    %345 = tpu.matmul %338, %344, %cst_145 {dimension_numbers = #tpu.dot_dimension_numbers<[1], [0], [0], [1], [0, 0, 1, 1], [], []>} : vector<8x32xf32>, vector<32x96xf32>, vector<8x96xf32> -> vector<8x96xf32>
    %c1_146 = arith.constant 1 : index
    %c0_147 = arith.constant 0 : index
    %c0_148 = arith.constant 0 : index
    %346 = vector.load %arg6[%c1_146, %c0_147, %c0_148] : memref<2x1x96xf32, #tpu.memory_space<vmem>>, vector<1x1x96xf32>
    %347 = vector.shape_cast %346 : vector<1x1x96xf32> to vector<1x96xf32>
    %348 = vector.broadcast %347 : vector<1x96xf32> to vector<8x96xf32>
    %349 = arith.addf %345, %348 : vector<8x96xf32>
    %350 = vector.extract_strided_slice %349 {offsets = [0, 0], sizes = [8, 32], strides = [1, 1]} : vector<8x96xf32> to vector<8x32xf32>
    %351 = vector.extract_strided_slice %349 {offsets = [0, 32], sizes = [8, 32], strides = [1, 1]} : vector<8x96xf32> to vector<8x32xf32>
    %352 = vector.extract_strided_slice %349 {offsets = [0, 64], sizes = [8, 32], strides = [1, 1]} : vector<8x96xf32> to vector<8x32xf32>
    %c1_149 = arith.constant 1 : index
    %c0_150 = arith.constant 0 : index
    %c0_151 = arith.constant 0 : index
    %353 = vector.load %arg7[%c1_149, %c0_150, %c0_151] : memref<2x32x32xf32, #tpu.memory_space<vmem>>, vector<1x32x32xf32>
    %354 = vector.shape_cast %353 : vector<1x32x32xf32> to vector<32x32xf32>
    %c1_152 = arith.constant 1 : index
    %c0_153 = arith.constant 0 : index
    %c0_154 = arith.constant 0 : index
    %355 = vector.load %arg8[%c1_152, %c0_153, %c0_154] : memref<2x1x32xf32, #tpu.memory_space<vmem>>, vector<1x1x32xf32>
    %356 = vector.shape_cast %355 : vector<1x1x32xf32> to vector<1x32xf32>
    %357 = vector.extract_strided_slice %350 {offsets = [0, 0], sizes = [8, 8], strides = [1, 1]} : vector<8x32xf32> to vector<8x8xf32>
    %358 = vector.extract_strided_slice %351 {offsets = [0, 0], sizes = [8, 8], strides = [1, 1]} : vector<8x32xf32> to vector<8x8xf32>
    %359 = tpu.transpose %358, [1, 0] : vector<8x8xf32> -> vector<8x8xf32>
    %cst_155 = arith.constant dense<0.000000e+00> : vector<8x8xf32>
    %360 = tpu.matmul %357, %359, %cst_155 {dimension_numbers = #tpu.dot_dimension_numbers<[1], [0], [0], [1], [0, 0, 1, 1], [], []>} : vector<8x8xf32>, vector<8x8xf32>, vector<8x8xf32> -> vector<8x8xf32>
    %cst_156 = arith.constant 0.353553385 : f32
    %361 = vector.broadcast %cst_156 : f32 to vector<8x8xf32>
    %362 = arith.mulf %360, %361 : vector<8x8xf32>
    %363 = arith.addf %362, %5 : vector<8x8xf32>
    %cst_157 = arith.constant dense<0xFF800000> : vector<8xf32>
    %364 = vector.multi_reduction <maximumf>, %363, %cst_157 [1] : vector<8x8xf32> to vector<8xf32>
    %365 = vector.shape_cast %364 : vector<8xf32> to vector<8x1xf32>
    %366 = vector.broadcast %365 : vector<8x1xf32> to vector<8x8xf32>
    %367 = arith.subf %363, %366 : vector<8x8xf32>
    %368 = math.exp %367 : vector<8x8xf32>
    %cst_158 = arith.constant dense<0.000000e+00> : vector<8xf32>
    %369 = vector.multi_reduction <add>, %368, %cst_158 [1] : vector<8x8xf32> to vector<8xf32>
    %370 = vector.shape_cast %369 : vector<8xf32> to vector<8x1xf32>
    %cst_159 = arith.constant 1.000000e+00 : f32
    %371 = vector.broadcast %cst_159 : f32 to vector<8x1xf32>
    %372 = arith.divf %371, %370 : vector<8x1xf32>
    %373 = vector.broadcast %372 : vector<8x1xf32> to vector<8x8xf32>
    %374 = arith.mulf %368, %373 : vector<8x8xf32>
    %375 = vector.extract_strided_slice %352 {offsets = [0, 0], sizes = [8, 8], strides = [1, 1]} : vector<8x32xf32> to vector<8x8xf32>
    %cst_160 = arith.constant dense<0.000000e+00> : vector<8x8xf32>
    %376 = tpu.matmul %374, %375, %cst_160 {dimension_numbers = #tpu.dot_dimension_numbers<[1], [0], [0], [1], [0, 0, 1, 1], [], []>} : vector<8x8xf32>, vector<8x8xf32>, vector<8x8xf32> -> vector<8x8xf32>
    %377 = vector.extract_strided_slice %354 {offsets = [0, 0], sizes = [8, 32], strides = [1, 1]} : vector<32x32xf32> to vector<8x32xf32>
    %cst_161 = arith.constant dense<0.000000e+00> : vector<8x32xf32>
    %378 = tpu.matmul %376, %377, %cst_161 {dimension_numbers = #tpu.dot_dimension_numbers<[1], [0], [0], [1], [0, 0, 1, 1], [], []>} : vector<8x8xf32>, vector<8x32xf32>, vector<8x32xf32> -> vector<8x32xf32>
    %379 = vector.extract_strided_slice %350 {offsets = [0, 8], sizes = [8, 8], strides = [1, 1]} : vector<8x32xf32> to vector<8x8xf32>
    %380 = vector.extract_strided_slice %351 {offsets = [0, 8], sizes = [8, 8], strides = [1, 1]} : vector<8x32xf32> to vector<8x8xf32>
    %381 = tpu.transpose %380, [1, 0] : vector<8x8xf32> -> vector<8x8xf32>
    %cst_162 = arith.constant dense<0.000000e+00> : vector<8x8xf32>
    %382 = tpu.matmul %379, %381, %cst_162 {dimension_numbers = #tpu.dot_dimension_numbers<[1], [0], [0], [1], [0, 0, 1, 1], [], []>} : vector<8x8xf32>, vector<8x8xf32>, vector<8x8xf32> -> vector<8x8xf32>
    %cst_163 = arith.constant 0.353553385 : f32
    %383 = vector.broadcast %cst_163 : f32 to vector<8x8xf32>
    %384 = arith.mulf %382, %383 : vector<8x8xf32>
    %385 = arith.addf %384, %5 : vector<8x8xf32>
    %cst_164 = arith.constant dense<0xFF800000> : vector<8xf32>
    %386 = vector.multi_reduction <maximumf>, %385, %cst_164 [1] : vector<8x8xf32> to vector<8xf32>
    %387 = vector.shape_cast %386 : vector<8xf32> to vector<8x1xf32>
    %388 = vector.broadcast %387 : vector<8x1xf32> to vector<8x8xf32>
    %389 = arith.subf %385, %388 : vector<8x8xf32>
    %390 = math.exp %389 : vector<8x8xf32>
    %cst_165 = arith.constant dense<0.000000e+00> : vector<8xf32>
    %391 = vector.multi_reduction <add>, %390, %cst_165 [1] : vector<8x8xf32> to vector<8xf32>
    %392 = vector.shape_cast %391 : vector<8xf32> to vector<8x1xf32>
    %cst_166 = arith.constant 1.000000e+00 : f32
    %393 = vector.broadcast %cst_166 : f32 to vector<8x1xf32>
    %394 = arith.divf %393, %392 : vector<8x1xf32>
    %395 = vector.broadcast %394 : vector<8x1xf32> to vector<8x8xf32>
    %396 = arith.mulf %390, %395 : vector<8x8xf32>
    %397 = vector.extract_strided_slice %352 {offsets = [0, 8], sizes = [8, 8], strides = [1, 1]} : vector<8x32xf32> to vector<8x8xf32>
    %cst_167 = arith.constant dense<0.000000e+00> : vector<8x8xf32>
    %398 = tpu.matmul %396, %397, %cst_167 {dimension_numbers = #tpu.dot_dimension_numbers<[1], [0], [0], [1], [0, 0, 1, 1], [], []>} : vector<8x8xf32>, vector<8x8xf32>, vector<8x8xf32> -> vector<8x8xf32>
    %399 = vector.extract_strided_slice %354 {offsets = [8, 0], sizes = [8, 32], strides = [1, 1]} : vector<32x32xf32> to vector<8x32xf32>
    %cst_168 = arith.constant dense<0.000000e+00> : vector<8x32xf32>
    %400 = tpu.matmul %398, %399, %cst_168 {dimension_numbers = #tpu.dot_dimension_numbers<[1], [0], [0], [1], [0, 0, 1, 1], [], []>} : vector<8x8xf32>, vector<8x32xf32>, vector<8x32xf32> -> vector<8x32xf32>
    %401 = arith.addf %378, %400 : vector<8x32xf32>
    %402 = vector.extract_strided_slice %350 {offsets = [0, 16], sizes = [8, 8], strides = [1, 1]} : vector<8x32xf32> to vector<8x8xf32>
    %403 = vector.extract_strided_slice %351 {offsets = [0, 16], sizes = [8, 8], strides = [1, 1]} : vector<8x32xf32> to vector<8x8xf32>
    %404 = tpu.transpose %403, [1, 0] : vector<8x8xf32> -> vector<8x8xf32>
    %cst_169 = arith.constant dense<0.000000e+00> : vector<8x8xf32>
    %405 = tpu.matmul %402, %404, %cst_169 {dimension_numbers = #tpu.dot_dimension_numbers<[1], [0], [0], [1], [0, 0, 1, 1], [], []>} : vector<8x8xf32>, vector<8x8xf32>, vector<8x8xf32> -> vector<8x8xf32>
    %cst_170 = arith.constant 0.353553385 : f32
    %406 = vector.broadcast %cst_170 : f32 to vector<8x8xf32>
    %407 = arith.mulf %405, %406 : vector<8x8xf32>
    %408 = arith.addf %407, %5 : vector<8x8xf32>
    %cst_171 = arith.constant dense<0xFF800000> : vector<8xf32>
    %409 = vector.multi_reduction <maximumf>, %408, %cst_171 [1] : vector<8x8xf32> to vector<8xf32>
    %410 = vector.shape_cast %409 : vector<8xf32> to vector<8x1xf32>
    %411 = vector.broadcast %410 : vector<8x1xf32> to vector<8x8xf32>
    %412 = arith.subf %408, %411 : vector<8x8xf32>
    %413 = math.exp %412 : vector<8x8xf32>
    %cst_172 = arith.constant dense<0.000000e+00> : vector<8xf32>
    %414 = vector.multi_reduction <add>, %413, %cst_172 [1] : vector<8x8xf32> to vector<8xf32>
    %415 = vector.shape_cast %414 : vector<8xf32> to vector<8x1xf32>
    %cst_173 = arith.constant 1.000000e+00 : f32
    %416 = vector.broadcast %cst_173 : f32 to vector<8x1xf32>
    %417 = arith.divf %416, %415 : vector<8x1xf32>
    %418 = vector.broadcast %417 : vector<8x1xf32> to vector<8x8xf32>
    %419 = arith.mulf %413, %418 : vector<8x8xf32>
    %420 = vector.extract_strided_slice %352 {offsets = [0, 16], sizes = [8, 8], strides = [1, 1]} : vector<8x32xf32> to vector<8x8xf32>
    %cst_174 = arith.constant dense<0.000000e+00> : vector<8x8xf32>
    %421 = tpu.matmul %419, %420, %cst_174 {dimension_numbers = #tpu.dot_dimension_numbers<[1], [0], [0], [1], [0, 0, 1, 1], [], []>} : vector<8x8xf32>, vector<8x8xf32>, vector<8x8xf32> -> vector<8x8xf32>
    %422 = vector.extract_strided_slice %354 {offsets = [16, 0], sizes = [8, 32], strides = [1, 1]} : vector<32x32xf32> to vector<8x32xf32>
    %cst_175 = arith.constant dense<0.000000e+00> : vector<8x32xf32>
    %423 = tpu.matmul %421, %422, %cst_175 {dimension_numbers = #tpu.dot_dimension_numbers<[1], [0], [0], [1], [0, 0, 1, 1], [], []>} : vector<8x8xf32>, vector<8x32xf32>, vector<8x32xf32> -> vector<8x32xf32>
    %424 = arith.addf %401, %423 : vector<8x32xf32>
    %425 = vector.extract_strided_slice %350 {offsets = [0, 24], sizes = [8, 8], strides = [1, 1]} : vector<8x32xf32> to vector<8x8xf32>
    %426 = vector.extract_strided_slice %351 {offsets = [0, 24], sizes = [8, 8], strides = [1, 1]} : vector<8x32xf32> to vector<8x8xf32>
    %427 = tpu.transpose %426, [1, 0] : vector<8x8xf32> -> vector<8x8xf32>
    %cst_176 = arith.constant dense<0.000000e+00> : vector<8x8xf32>
    %428 = tpu.matmul %425, %427, %cst_176 {dimension_numbers = #tpu.dot_dimension_numbers<[1], [0], [0], [1], [0, 0, 1, 1], [], []>} : vector<8x8xf32>, vector<8x8xf32>, vector<8x8xf32> -> vector<8x8xf32>
    %cst_177 = arith.constant 0.353553385 : f32
    %429 = vector.broadcast %cst_177 : f32 to vector<8x8xf32>
    %430 = arith.mulf %428, %429 : vector<8x8xf32>
    %431 = arith.addf %430, %5 : vector<8x8xf32>
    %cst_178 = arith.constant dense<0xFF800000> : vector<8xf32>
    %432 = vector.multi_reduction <maximumf>, %431, %cst_178 [1] : vector<8x8xf32> to vector<8xf32>
    %433 = vector.shape_cast %432 : vector<8xf32> to vector<8x1xf32>
    %434 = vector.broadcast %433 : vector<8x1xf32> to vector<8x8xf32>
    %435 = arith.subf %431, %434 : vector<8x8xf32>
    %436 = math.exp %435 : vector<8x8xf32>
    %cst_179 = arith.constant dense<0.000000e+00> : vector<8xf32>
    %437 = vector.multi_reduction <add>, %436, %cst_179 [1] : vector<8x8xf32> to vector<8xf32>
    %438 = vector.shape_cast %437 : vector<8xf32> to vector<8x1xf32>
    %cst_180 = arith.constant 1.000000e+00 : f32
    %439 = vector.broadcast %cst_180 : f32 to vector<8x1xf32>
    %440 = arith.divf %439, %438 : vector<8x1xf32>
    %441 = vector.broadcast %440 : vector<8x1xf32> to vector<8x8xf32>
    %442 = arith.mulf %436, %441 : vector<8x8xf32>
    %443 = vector.extract_strided_slice %352 {offsets = [0, 24], sizes = [8, 8], strides = [1, 1]} : vector<8x32xf32> to vector<8x8xf32>
    %cst_181 = arith.constant dense<0.000000e+00> : vector<8x8xf32>
    %444 = tpu.matmul %442, %443, %cst_181 {dimension_numbers = #tpu.dot_dimension_numbers<[1], [0], [0], [1], [0, 0, 1, 1], [], []>} : vector<8x8xf32>, vector<8x8xf32>, vector<8x8xf32> -> vector<8x8xf32>
    %445 = vector.extract_strided_slice %354 {offsets = [24, 0], sizes = [8, 32], strides = [1, 1]} : vector<32x32xf32> to vector<8x32xf32>
    %cst_182 = arith.constant dense<0.000000e+00> : vector<8x32xf32>
    %446 = tpu.matmul %444, %445, %cst_182 {dimension_numbers = #tpu.dot_dimension_numbers<[1], [0], [0], [1], [0, 0, 1, 1], [], []>} : vector<8x8xf32>, vector<8x32xf32>, vector<8x32xf32> -> vector<8x32xf32>
    %447 = arith.addf %424, %446 : vector<8x32xf32>
    %448 = vector.broadcast %356 : vector<1x32xf32> to vector<8x32xf32>
    %449 = arith.addf %447, %448 : vector<8x32xf32>
    %450 = arith.addf %338, %449 : vector<8x32xf32>
    %451 = vector.extract_strided_slice %340 {offsets = [0, 0], sizes = [1, 32], strides = [1, 1]} : vector<3x32xf32> to vector<1x32xf32>
    %452 = vector.shape_cast %451 : vector<1x32xf32> to vector<32xf32>
    %453 = vector.shape_cast %452 : vector<32xf32> to vector<1x32xf32>
    %454 = vector.extract_strided_slice %342 {offsets = [0, 0], sizes = [1, 32], strides = [1, 1]} : vector<3x32xf32> to vector<1x32xf32>
    %455 = vector.shape_cast %454 : vector<1x32xf32> to vector<32xf32>
    %456 = vector.shape_cast %455 : vector<32xf32> to vector<1x32xf32>
    %cst_183 = arith.constant dense<0.000000e+00> : vector<8xf32>
    %457 = vector.multi_reduction <add>, %450, %cst_183 [1] : vector<8x32xf32> to vector<8xf32>
    %458 = vector.shape_cast %457 : vector<8xf32> to vector<8x1xf32>
    %cst_184 = arith.constant 3.200000e+01 : f32
    %459 = vector.broadcast %cst_184 : f32 to vector<8x1xf32>
    %460 = arith.divf %458, %459 : vector<8x1xf32>
    %461 = vector.broadcast %460 : vector<8x1xf32> to vector<8x32xf32>
    %462 = arith.subf %450, %461 : vector<8x32xf32>
    %463 = arith.mulf %462, %462 : vector<8x32xf32>
    %cst_185 = arith.constant dense<0.000000e+00> : vector<8xf32>
    %464 = vector.multi_reduction <add>, %463, %cst_185 [1] : vector<8x32xf32> to vector<8xf32>
    %465 = vector.shape_cast %464 : vector<8xf32> to vector<8x1xf32>
    %cst_186 = arith.constant 3.200000e+01 : f32
    %466 = vector.broadcast %cst_186 : f32 to vector<8x1xf32>
    %467 = arith.divf %465, %466 : vector<8x1xf32>
    %468 = vector.broadcast %460 : vector<8x1xf32> to vector<8x32xf32>
    %469 = arith.subf %450, %468 : vector<8x32xf32>
    %cst_187 = arith.constant 9.99999974E-6 : f32
    %470 = vector.broadcast %cst_187 : f32 to vector<8x1xf32>
    %471 = arith.addf %467, %470 : vector<8x1xf32>
    %472 = math.rsqrt %471 : vector<8x1xf32>
    %473 = vector.broadcast %472 : vector<8x1xf32> to vector<8x32xf32>
    %474 = arith.mulf %469, %473 : vector<8x32xf32>
    %475 = vector.broadcast %453 : vector<1x32xf32> to vector<8x32xf32>
    %476 = arith.mulf %474, %475 : vector<8x32xf32>
    %477 = vector.broadcast %456 : vector<1x32xf32> to vector<8x32xf32>
    %478 = arith.addf %476, %477 : vector<8x32xf32>
    %c1_188 = arith.constant 1 : index
    %c0_189 = arith.constant 0 : index
    %c0_190 = arith.constant 0 : index
    %479 = vector.load %arg9[%c1_188, %c0_189, %c0_190] : memref<2x32x32xf32, #tpu.memory_space<vmem>>, vector<1x32x32xf32>
    %480 = vector.shape_cast %479 : vector<1x32x32xf32> to vector<32x32xf32>
    %cst_191 = arith.constant dense<0.000000e+00> : vector<8x32xf32>
    %481 = tpu.matmul %478, %480, %cst_191 {dimension_numbers = #tpu.dot_dimension_numbers<[1], [0], [0], [1], [0, 0, 1, 1], [], []>} : vector<8x32xf32>, vector<32x32xf32>, vector<8x32xf32> -> vector<8x32xf32>
    %c1_192 = arith.constant 1 : index
    %c0_193 = arith.constant 0 : index
    %c0_194 = arith.constant 0 : index
    %482 = vector.load %arg10[%c1_192, %c0_193, %c0_194] : memref<2x1x32xf32, #tpu.memory_space<vmem>>, vector<1x1x32xf32>
    %483 = vector.shape_cast %482 : vector<1x1x32xf32> to vector<1x32xf32>
    %484 = vector.broadcast %483 : vector<1x32xf32> to vector<8x32xf32>
    %485 = arith.addf %481, %484 : vector<8x32xf32>
    %c1_195 = arith.constant 1 : index
    %c0_196 = arith.constant 0 : index
    %c0_197 = arith.constant 0 : index
    %486 = vector.load %arg11[%c1_195, %c0_196, %c0_197] : memref<2x32x64xf32, #tpu.memory_space<vmem>>, vector<1x32x64xf32>
    %487 = vector.shape_cast %486 : vector<1x32x64xf32> to vector<32x64xf32>
    %cst_198 = arith.constant dense<0.000000e+00> : vector<10x64xf32>
    %488 = tpu.matmul %3, %487, %cst_198 {dimension_numbers = #tpu.dot_dimension_numbers<[1], [0], [0], [1], [0, 0, 1, 1], [], []>} : vector<10x32xf32>, vector<32x64xf32>, vector<10x64xf32> -> vector<10x64xf32>
    %c1_199 = arith.constant 1 : index
    %c0_200 = arith.constant 0 : index
    %c0_201 = arith.constant 0 : index
    %489 = vector.load %arg12[%c1_199, %c0_200, %c0_201] : memref<2x1x64xf32, #tpu.memory_space<vmem>>, vector<1x1x64xf32>
    %490 = vector.shape_cast %489 : vector<1x1x64xf32> to vector<1x64xf32>
    %491 = vector.broadcast %490 : vector<1x64xf32> to vector<10x64xf32>
    %492 = arith.addf %488, %491 : vector<10x64xf32>
    %493 = vector.extract_strided_slice %492 {offsets = [0, 0], sizes = [10, 32], strides = [1, 1]} : vector<10x64xf32> to vector<10x32xf32>
    %494 = vector.extract_strided_slice %492 {offsets = [0, 32], sizes = [10, 32], strides = [1, 1]} : vector<10x64xf32> to vector<10x32xf32>
    %c1_202 = arith.constant 1 : index
    %c0_203 = arith.constant 0 : index
    %c0_204 = arith.constant 0 : index
    %495 = vector.load %arg13[%c1_202, %c0_203, %c0_204] : memref<2x32x32xf32, #tpu.memory_space<vmem>>, vector<1x32x32xf32>
    %496 = vector.shape_cast %495 : vector<1x32x32xf32> to vector<32x32xf32>
    %c1_205 = arith.constant 1 : index
    %c0_206 = arith.constant 0 : index
    %c0_207 = arith.constant 0 : index
    %497 = vector.load %arg14[%c1_205, %c0_206, %c0_207] : memref<2x1x32xf32, #tpu.memory_space<vmem>>, vector<1x1x32xf32>
    %498 = vector.shape_cast %497 : vector<1x1x32xf32> to vector<1x32xf32>
    %499 = vector.extract_strided_slice %485 {offsets = [0, 0], sizes = [8, 8], strides = [1, 1]} : vector<8x32xf32> to vector<8x8xf32>
    %500 = vector.extract_strided_slice %493 {offsets = [0, 0], sizes = [10, 8], strides = [1, 1]} : vector<10x32xf32> to vector<10x8xf32>
    %501 = tpu.transpose %500, [1, 0] : vector<10x8xf32> -> vector<8x10xf32>
    %cst_208 = arith.constant dense<0.000000e+00> : vector<8x10xf32>
    %502 = tpu.matmul %499, %501, %cst_208 {dimension_numbers = #tpu.dot_dimension_numbers<[1], [0], [0], [1], [0, 0, 1, 1], [], []>} : vector<8x8xf32>, vector<8x10xf32>, vector<8x10xf32> -> vector<8x10xf32>
    %cst_209 = arith.constant 0.353553385 : f32
    %503 = vector.broadcast %cst_209 : f32 to vector<8x10xf32>
    %504 = arith.mulf %502, %503 : vector<8x10xf32>
    %505 = vector.broadcast %7 : vector<1x10xf32> to vector<8x10xf32>
    %506 = arith.addf %504, %505 : vector<8x10xf32>
    %cst_210 = arith.constant dense<0xFF800000> : vector<8xf32>
    %507 = vector.multi_reduction <maximumf>, %506, %cst_210 [1] : vector<8x10xf32> to vector<8xf32>
    %508 = vector.shape_cast %507 : vector<8xf32> to vector<8x1xf32>
    %509 = vector.broadcast %508 : vector<8x1xf32> to vector<8x10xf32>
    %510 = arith.subf %506, %509 : vector<8x10xf32>
    %511 = math.exp %510 : vector<8x10xf32>
    %cst_211 = arith.constant dense<0.000000e+00> : vector<8xf32>
    %512 = vector.multi_reduction <add>, %511, %cst_211 [1] : vector<8x10xf32> to vector<8xf32>
    %513 = vector.shape_cast %512 : vector<8xf32> to vector<8x1xf32>
    %cst_212 = arith.constant 1.000000e+00 : f32
    %514 = vector.broadcast %cst_212 : f32 to vector<8x1xf32>
    %515 = arith.divf %514, %513 : vector<8x1xf32>
    %516 = vector.broadcast %515 : vector<8x1xf32> to vector<8x10xf32>
    %517 = arith.mulf %511, %516 : vector<8x10xf32>
    %518 = vector.extract_strided_slice %494 {offsets = [0, 0], sizes = [10, 8], strides = [1, 1]} : vector<10x32xf32> to vector<10x8xf32>
    %cst_213 = arith.constant dense<0.000000e+00> : vector<8x8xf32>
    %519 = tpu.matmul %517, %518, %cst_213 {dimension_numbers = #tpu.dot_dimension_numbers<[1], [0], [0], [1], [0, 0, 1, 1], [], []>} : vector<8x10xf32>, vector<10x8xf32>, vector<8x8xf32> -> vector<8x8xf32>
    %520 = vector.extract_strided_slice %496 {offsets = [0, 0], sizes = [8, 32], strides = [1, 1]} : vector<32x32xf32> to vector<8x32xf32>
    %cst_214 = arith.constant dense<0.000000e+00> : vector<8x32xf32>
    %521 = tpu.matmul %519, %520, %cst_214 {dimension_numbers = #tpu.dot_dimension_numbers<[1], [0], [0], [1], [0, 0, 1, 1], [], []>} : vector<8x8xf32>, vector<8x32xf32>, vector<8x32xf32> -> vector<8x32xf32>
    %522 = vector.extract_strided_slice %485 {offsets = [0, 8], sizes = [8, 8], strides = [1, 1]} : vector<8x32xf32> to vector<8x8xf32>
    %523 = vector.extract_strided_slice %493 {offsets = [0, 8], sizes = [10, 8], strides = [1, 1]} : vector<10x32xf32> to vector<10x8xf32>
    %524 = tpu.transpose %523, [1, 0] : vector<10x8xf32> -> vector<8x10xf32>
    %cst_215 = arith.constant dense<0.000000e+00> : vector<8x10xf32>
    %525 = tpu.matmul %522, %524, %cst_215 {dimension_numbers = #tpu.dot_dimension_numbers<[1], [0], [0], [1], [0, 0, 1, 1], [], []>} : vector<8x8xf32>, vector<8x10xf32>, vector<8x10xf32> -> vector<8x10xf32>
    %cst_216 = arith.constant 0.353553385 : f32
    %526 = vector.broadcast %cst_216 : f32 to vector<8x10xf32>
    %527 = arith.mulf %525, %526 : vector<8x10xf32>
    %528 = vector.broadcast %7 : vector<1x10xf32> to vector<8x10xf32>
    %529 = arith.addf %527, %528 : vector<8x10xf32>
    %cst_217 = arith.constant dense<0xFF800000> : vector<8xf32>
    %530 = vector.multi_reduction <maximumf>, %529, %cst_217 [1] : vector<8x10xf32> to vector<8xf32>
    %531 = vector.shape_cast %530 : vector<8xf32> to vector<8x1xf32>
    %532 = vector.broadcast %531 : vector<8x1xf32> to vector<8x10xf32>
    %533 = arith.subf %529, %532 : vector<8x10xf32>
    %534 = math.exp %533 : vector<8x10xf32>
    %cst_218 = arith.constant dense<0.000000e+00> : vector<8xf32>
    %535 = vector.multi_reduction <add>, %534, %cst_218 [1] : vector<8x10xf32> to vector<8xf32>
    %536 = vector.shape_cast %535 : vector<8xf32> to vector<8x1xf32>
    %cst_219 = arith.constant 1.000000e+00 : f32
    %537 = vector.broadcast %cst_219 : f32 to vector<8x1xf32>
    %538 = arith.divf %537, %536 : vector<8x1xf32>
    %539 = vector.broadcast %538 : vector<8x1xf32> to vector<8x10xf32>
    %540 = arith.mulf %534, %539 : vector<8x10xf32>
    %541 = vector.extract_strided_slice %494 {offsets = [0, 8], sizes = [10, 8], strides = [1, 1]} : vector<10x32xf32> to vector<10x8xf32>
    %cst_220 = arith.constant dense<0.000000e+00> : vector<8x8xf32>
    %542 = tpu.matmul %540, %541, %cst_220 {dimension_numbers = #tpu.dot_dimension_numbers<[1], [0], [0], [1], [0, 0, 1, 1], [], []>} : vector<8x10xf32>, vector<10x8xf32>, vector<8x8xf32> -> vector<8x8xf32>
    %543 = vector.extract_strided_slice %496 {offsets = [8, 0], sizes = [8, 32], strides = [1, 1]} : vector<32x32xf32> to vector<8x32xf32>
    %cst_221 = arith.constant dense<0.000000e+00> : vector<8x32xf32>
    %544 = tpu.matmul %542, %543, %cst_221 {dimension_numbers = #tpu.dot_dimension_numbers<[1], [0], [0], [1], [0, 0, 1, 1], [], []>} : vector<8x8xf32>, vector<8x32xf32>, vector<8x32xf32> -> vector<8x32xf32>
    %545 = arith.addf %521, %544 : vector<8x32xf32>
    %546 = vector.extract_strided_slice %485 {offsets = [0, 16], sizes = [8, 8], strides = [1, 1]} : vector<8x32xf32> to vector<8x8xf32>
    %547 = vector.extract_strided_slice %493 {offsets = [0, 16], sizes = [10, 8], strides = [1, 1]} : vector<10x32xf32> to vector<10x8xf32>
    %548 = tpu.transpose %547, [1, 0] : vector<10x8xf32> -> vector<8x10xf32>
    %cst_222 = arith.constant dense<0.000000e+00> : vector<8x10xf32>
    %549 = tpu.matmul %546, %548, %cst_222 {dimension_numbers = #tpu.dot_dimension_numbers<[1], [0], [0], [1], [0, 0, 1, 1], [], []>} : vector<8x8xf32>, vector<8x10xf32>, vector<8x10xf32> -> vector<8x10xf32>
    %cst_223 = arith.constant 0.353553385 : f32
    %550 = vector.broadcast %cst_223 : f32 to vector<8x10xf32>
    %551 = arith.mulf %549, %550 : vector<8x10xf32>
    %552 = vector.broadcast %7 : vector<1x10xf32> to vector<8x10xf32>
    %553 = arith.addf %551, %552 : vector<8x10xf32>
    %cst_224 = arith.constant dense<0xFF800000> : vector<8xf32>
    %554 = vector.multi_reduction <maximumf>, %553, %cst_224 [1] : vector<8x10xf32> to vector<8xf32>
    %555 = vector.shape_cast %554 : vector<8xf32> to vector<8x1xf32>
    %556 = vector.broadcast %555 : vector<8x1xf32> to vector<8x10xf32>
    %557 = arith.subf %553, %556 : vector<8x10xf32>
    %558 = math.exp %557 : vector<8x10xf32>
    %cst_225 = arith.constant dense<0.000000e+00> : vector<8xf32>
    %559 = vector.multi_reduction <add>, %558, %cst_225 [1] : vector<8x10xf32> to vector<8xf32>
    %560 = vector.shape_cast %559 : vector<8xf32> to vector<8x1xf32>
    %cst_226 = arith.constant 1.000000e+00 : f32
    %561 = vector.broadcast %cst_226 : f32 to vector<8x1xf32>
    %562 = arith.divf %561, %560 : vector<8x1xf32>
    %563 = vector.broadcast %562 : vector<8x1xf32> to vector<8x10xf32>
    %564 = arith.mulf %558, %563 : vector<8x10xf32>
    %565 = vector.extract_strided_slice %494 {offsets = [0, 16], sizes = [10, 8], strides = [1, 1]} : vector<10x32xf32> to vector<10x8xf32>
    %cst_227 = arith.constant dense<0.000000e+00> : vector<8x8xf32>
    %566 = tpu.matmul %564, %565, %cst_227 {dimension_numbers = #tpu.dot_dimension_numbers<[1], [0], [0], [1], [0, 0, 1, 1], [], []>} : vector<8x10xf32>, vector<10x8xf32>, vector<8x8xf32> -> vector<8x8xf32>
    %567 = vector.extract_strided_slice %496 {offsets = [16, 0], sizes = [8, 32], strides = [1, 1]} : vector<32x32xf32> to vector<8x32xf32>
    %cst_228 = arith.constant dense<0.000000e+00> : vector<8x32xf32>
    %568 = tpu.matmul %566, %567, %cst_228 {dimension_numbers = #tpu.dot_dimension_numbers<[1], [0], [0], [1], [0, 0, 1, 1], [], []>} : vector<8x8xf32>, vector<8x32xf32>, vector<8x32xf32> -> vector<8x32xf32>
    %569 = arith.addf %545, %568 : vector<8x32xf32>
    %570 = vector.extract_strided_slice %485 {offsets = [0, 24], sizes = [8, 8], strides = [1, 1]} : vector<8x32xf32> to vector<8x8xf32>
    %571 = vector.extract_strided_slice %493 {offsets = [0, 24], sizes = [10, 8], strides = [1, 1]} : vector<10x32xf32> to vector<10x8xf32>
    %572 = tpu.transpose %571, [1, 0] : vector<10x8xf32> -> vector<8x10xf32>
    %cst_229 = arith.constant dense<0.000000e+00> : vector<8x10xf32>
    %573 = tpu.matmul %570, %572, %cst_229 {dimension_numbers = #tpu.dot_dimension_numbers<[1], [0], [0], [1], [0, 0, 1, 1], [], []>} : vector<8x8xf32>, vector<8x10xf32>, vector<8x10xf32> -> vector<8x10xf32>
    %cst_230 = arith.constant 0.353553385 : f32
    %574 = vector.broadcast %cst_230 : f32 to vector<8x10xf32>
    %575 = arith.mulf %573, %574 : vector<8x10xf32>
    %576 = vector.broadcast %7 : vector<1x10xf32> to vector<8x10xf32>
    %577 = arith.addf %575, %576 : vector<8x10xf32>
    %cst_231 = arith.constant dense<0xFF800000> : vector<8xf32>
    %578 = vector.multi_reduction <maximumf>, %577, %cst_231 [1] : vector<8x10xf32> to vector<8xf32>
    %579 = vector.shape_cast %578 : vector<8xf32> to vector<8x1xf32>
    %580 = vector.broadcast %579 : vector<8x1xf32> to vector<8x10xf32>
    %581 = arith.subf %577, %580 : vector<8x10xf32>
    %582 = math.exp %581 : vector<8x10xf32>
    %cst_232 = arith.constant dense<0.000000e+00> : vector<8xf32>
    %583 = vector.multi_reduction <add>, %582, %cst_232 [1] : vector<8x10xf32> to vector<8xf32>
    %584 = vector.shape_cast %583 : vector<8xf32> to vector<8x1xf32>
    %cst_233 = arith.constant 1.000000e+00 : f32
    %585 = vector.broadcast %cst_233 : f32 to vector<8x1xf32>
    %586 = arith.divf %585, %584 : vector<8x1xf32>
    %587 = vector.broadcast %586 : vector<8x1xf32> to vector<8x10xf32>
    %588 = arith.mulf %582, %587 : vector<8x10xf32>
    %589 = vector.extract_strided_slice %494 {offsets = [0, 24], sizes = [10, 8], strides = [1, 1]} : vector<10x32xf32> to vector<10x8xf32>
    %cst_234 = arith.constant dense<0.000000e+00> : vector<8x8xf32>
    %590 = tpu.matmul %588, %589, %cst_234 {dimension_numbers = #tpu.dot_dimension_numbers<[1], [0], [0], [1], [0, 0, 1, 1], [], []>} : vector<8x10xf32>, vector<10x8xf32>, vector<8x8xf32> -> vector<8x8xf32>
    %591 = vector.extract_strided_slice %496 {offsets = [24, 0], sizes = [8, 32], strides = [1, 1]} : vector<32x32xf32> to vector<8x32xf32>
    %cst_235 = arith.constant dense<0.000000e+00> : vector<8x32xf32>
    %592 = tpu.matmul %590, %591, %cst_235 {dimension_numbers = #tpu.dot_dimension_numbers<[1], [0], [0], [1], [0, 0, 1, 1], [], []>} : vector<8x8xf32>, vector<8x32xf32>, vector<8x32xf32> -> vector<8x32xf32>
    %593 = arith.addf %569, %592 : vector<8x32xf32>
    %594 = vector.broadcast %498 : vector<1x32xf32> to vector<8x32xf32>
    %595 = arith.addf %593, %594 : vector<8x32xf32>
    %596 = tpu.concatenate %517, %540, %564, %588 in 1 : vector<8x10xf32>, vector<8x10xf32>, vector<8x10xf32>, vector<8x10xf32> -> vector<8x40xf32>
    %597 = arith.addf %478, %595 : vector<8x32xf32>
    %598 = vector.extract_strided_slice %340 {offsets = [1, 0], sizes = [1, 32], strides = [1, 1]} : vector<3x32xf32> to vector<1x32xf32>
    %599 = vector.shape_cast %598 : vector<1x32xf32> to vector<32xf32>
    %600 = vector.shape_cast %599 : vector<32xf32> to vector<1x32xf32>
    %601 = vector.extract_strided_slice %342 {offsets = [1, 0], sizes = [1, 32], strides = [1, 1]} : vector<3x32xf32> to vector<1x32xf32>
    %602 = vector.shape_cast %601 : vector<1x32xf32> to vector<32xf32>
    %603 = vector.shape_cast %602 : vector<32xf32> to vector<1x32xf32>
    %cst_236 = arith.constant dense<0.000000e+00> : vector<8xf32>
    %604 = vector.multi_reduction <add>, %597, %cst_236 [1] : vector<8x32xf32> to vector<8xf32>
    %605 = vector.shape_cast %604 : vector<8xf32> to vector<8x1xf32>
    %cst_237 = arith.constant 3.200000e+01 : f32
    %606 = vector.broadcast %cst_237 : f32 to vector<8x1xf32>
    %607 = arith.divf %605, %606 : vector<8x1xf32>
    %608 = vector.broadcast %607 : vector<8x1xf32> to vector<8x32xf32>
    %609 = arith.subf %597, %608 : vector<8x32xf32>
    %610 = arith.mulf %609, %609 : vector<8x32xf32>
    %cst_238 = arith.constant dense<0.000000e+00> : vector<8xf32>
    %611 = vector.multi_reduction <add>, %610, %cst_238 [1] : vector<8x32xf32> to vector<8xf32>
    %612 = vector.shape_cast %611 : vector<8xf32> to vector<8x1xf32>
    %cst_239 = arith.constant 3.200000e+01 : f32
    %613 = vector.broadcast %cst_239 : f32 to vector<8x1xf32>
    %614 = arith.divf %612, %613 : vector<8x1xf32>
    %615 = vector.broadcast %607 : vector<8x1xf32> to vector<8x32xf32>
    %616 = arith.subf %597, %615 : vector<8x32xf32>
    %cst_240 = arith.constant 9.99999974E-6 : f32
    %617 = vector.broadcast %cst_240 : f32 to vector<8x1xf32>
    %618 = arith.addf %614, %617 : vector<8x1xf32>
    %619 = math.rsqrt %618 : vector<8x1xf32>
    %620 = vector.broadcast %619 : vector<8x1xf32> to vector<8x32xf32>
    %621 = arith.mulf %616, %620 : vector<8x32xf32>
    %622 = vector.broadcast %600 : vector<1x32xf32> to vector<8x32xf32>
    %623 = arith.mulf %621, %622 : vector<8x32xf32>
    %624 = vector.broadcast %603 : vector<1x32xf32> to vector<8x32xf32>
    %625 = arith.addf %623, %624 : vector<8x32xf32>
    %c1_241 = arith.constant 1 : index
    %c0_242 = arith.constant 0 : index
    %c0_243 = arith.constant 0 : index
    %626 = vector.load %arg15[%c1_241, %c0_242, %c0_243] : memref<2x32x64xf32, #tpu.memory_space<vmem>>, vector<1x32x64xf32>
    %627 = vector.shape_cast %626 : vector<1x32x64xf32> to vector<32x64xf32>
    %cst_244 = arith.constant dense<0.000000e+00> : vector<8x64xf32>
    %628 = tpu.matmul %625, %627, %cst_244 {dimension_numbers = #tpu.dot_dimension_numbers<[1], [0], [0], [1], [0, 0, 1, 1], [], []>} : vector<8x32xf32>, vector<32x64xf32>, vector<8x64xf32> -> vector<8x64xf32>
    %c1_245 = arith.constant 1 : index
    %c0_246 = arith.constant 0 : index
    %c0_247 = arith.constant 0 : index
    %629 = vector.load %arg16[%c1_245, %c0_246, %c0_247] : memref<2x1x64xf32, #tpu.memory_space<vmem>>, vector<1x1x64xf32>
    %630 = vector.shape_cast %629 : vector<1x1x64xf32> to vector<1x64xf32>
    %631 = vector.broadcast %630 : vector<1x64xf32> to vector<8x64xf32>
    %632 = arith.addf %628, %631 : vector<8x64xf32>
    %cst_248 = arith.constant 0.000000e+00 : f32
    %633 = vector.broadcast %cst_248 : f32 to vector<8x64xf32>
    %634 = arith.maximumf %632, %633 : vector<8x64xf32>
    %c1_249 = arith.constant 1 : index
    %c0_250 = arith.constant 0 : index
    %c0_251 = arith.constant 0 : index
    %635 = vector.load %arg17[%c1_249, %c0_250, %c0_251] : memref<2x64x32xf32, #tpu.memory_space<vmem>>, vector<1x64x32xf32>
    %636 = vector.shape_cast %635 : vector<1x64x32xf32> to vector<64x32xf32>
    %cst_252 = arith.constant dense<0.000000e+00> : vector<8x32xf32>
    %637 = tpu.matmul %634, %636, %cst_252 {dimension_numbers = #tpu.dot_dimension_numbers<[1], [0], [0], [1], [0, 0, 1, 1], [], []>} : vector<8x64xf32>, vector<64x32xf32>, vector<8x32xf32> -> vector<8x32xf32>
    %c1_253 = arith.constant 1 : index
    %c0_254 = arith.constant 0 : index
    %c0_255 = arith.constant 0 : index
    %638 = vector.load %arg18[%c1_253, %c0_254, %c0_255] : memref<2x1x32xf32, #tpu.memory_space<vmem>>, vector<1x1x32xf32>
    %639 = vector.shape_cast %638 : vector<1x1x32xf32> to vector<1x32xf32>
    %640 = vector.broadcast %639 : vector<1x32xf32> to vector<8x32xf32>
    %641 = arith.addf %637, %640 : vector<8x32xf32>
    %642 = arith.addf %625, %641 : vector<8x32xf32>
    %643 = vector.extract_strided_slice %340 {offsets = [2, 0], sizes = [1, 32], strides = [1, 1]} : vector<3x32xf32> to vector<1x32xf32>
    %644 = vector.shape_cast %643 : vector<1x32xf32> to vector<32xf32>
    %645 = vector.shape_cast %644 : vector<32xf32> to vector<1x32xf32>
    %646 = vector.extract_strided_slice %342 {offsets = [2, 0], sizes = [1, 32], strides = [1, 1]} : vector<3x32xf32> to vector<1x32xf32>
    %647 = vector.shape_cast %646 : vector<1x32xf32> to vector<32xf32>
    %648 = vector.shape_cast %647 : vector<32xf32> to vector<1x32xf32>
    %cst_256 = arith.constant dense<0.000000e+00> : vector<8xf32>
    %649 = vector.multi_reduction <add>, %642, %cst_256 [1] : vector<8x32xf32> to vector<8xf32>
    %650 = vector.shape_cast %649 : vector<8xf32> to vector<8x1xf32>
    %cst_257 = arith.constant 3.200000e+01 : f32
    %651 = vector.broadcast %cst_257 : f32 to vector<8x1xf32>
    %652 = arith.divf %650, %651 : vector<8x1xf32>
    %653 = vector.broadcast %652 : vector<8x1xf32> to vector<8x32xf32>
    %654 = arith.subf %642, %653 : vector<8x32xf32>
    %655 = arith.mulf %654, %654 : vector<8x32xf32>
    %cst_258 = arith.constant dense<0.000000e+00> : vector<8xf32>
    %656 = vector.multi_reduction <add>, %655, %cst_258 [1] : vector<8x32xf32> to vector<8xf32>
    %657 = vector.shape_cast %656 : vector<8xf32> to vector<8x1xf32>
    %cst_259 = arith.constant 3.200000e+01 : f32
    %658 = vector.broadcast %cst_259 : f32 to vector<8x1xf32>
    %659 = arith.divf %657, %658 : vector<8x1xf32>
    %660 = vector.broadcast %652 : vector<8x1xf32> to vector<8x32xf32>
    %661 = arith.subf %642, %660 : vector<8x32xf32>
    %cst_260 = arith.constant 9.99999974E-6 : f32
    %662 = vector.broadcast %cst_260 : f32 to vector<8x1xf32>
    %663 = arith.addf %659, %662 : vector<8x1xf32>
    %664 = math.rsqrt %663 : vector<8x1xf32>
    %665 = vector.broadcast %664 : vector<8x1xf32> to vector<8x32xf32>
    %666 = arith.mulf %661, %665 : vector<8x32xf32>
    %667 = vector.broadcast %645 : vector<1x32xf32> to vector<8x32xf32>
    %668 = arith.mulf %666, %667 : vector<8x32xf32>
    %669 = vector.broadcast %648 : vector<1x32xf32> to vector<8x32xf32>
    %670 = arith.addf %668, %669 : vector<8x32xf32>
    %c0_261 = arith.constant 0 : index
    %c0_262 = arith.constant 0 : index
    %671 = vector.load %arg21[%c0_261, %c0_262] : memref<32x12xf32, #tpu.memory_space<vmem>>, vector<32x12xf32>
    %cst_263 = arith.constant dense<0.000000e+00> : vector<8x12xf32>
    %672 = tpu.matmul %670, %671, %cst_263 {dimension_numbers = #tpu.dot_dimension_numbers<[1], [0], [0], [1], [0, 0, 1, 1], [], []>} : vector<8x32xf32>, vector<32x12xf32>, vector<8x12xf32> -> vector<8x12xf32>
    %c0_264 = arith.constant 0 : index
    %c0_265 = arith.constant 0 : index
    %673 = vector.load %arg22[%c0_264, %c0_265] : memref<1x12xf32, #tpu.memory_space<vmem>>, vector<1x12xf32>
    %674 = vector.broadcast %673 : vector<1x12xf32> to vector<8x12xf32>
    %675 = arith.addf %672, %674 : vector<8x12xf32>
    %c0_266 = arith.constant 0 : index
    %c0_267 = arith.constant 0 : index
    %c0_268 = arith.constant 0 : index
    %676 = vector.load %arg23[%c0_266, %c0_267, %c0_268] : memref<1x8x12xf32, #tpu.memory_space<vmem>>, vector<1x8x12xf32>
    %677 = vector.shape_cast %676 : vector<1x8x12xf32> to vector<8x12xf32>
    %678 = vector.shape_cast %675 : vector<8x12xf32> to vector<1x8x12xf32>
    tpu.vector_store %arg23[%c0_266, %c0_267, %c0_268], %678 {strides = array<i32>} : memref<1x8x12xf32, #tpu.memory_space<vmem>>, vector<1x8x12xf32>,
    %c0_269 = arith.constant 0 : index
    %c0_270 = arith.constant 0 : index
    %c0_271 = arith.constant 0 : index
    %679 = vector.load %arg24[%c0_269, %c0_270, %c0_271] : memref<1x8x40xf32, #tpu.memory_space<vmem>>, vector<1x8x40xf32>
    %680 = vector.shape_cast %679 : vector<1x8x40xf32> to vector<8x40xf32>
    %681 = vector.shape_cast %596 : vector<8x40xf32> to vector<1x8x40xf32>
    tpu.vector_store %arg24[%c0_269, %c0_270, %c0_271], %681 {strides = array<i32>} : memref<1x8x40xf32, #tpu.memory_space<vmem>>, vector<1x8x40xf32>,
    return
  }
  func.func @transform_0(%arg0: i32) -> (i32, i32, i32) {
    %c0_i32 = arith.constant 0 : i32
    %c0_i32_0 = arith.constant 0 : i32
    %c0_i32_1 = arith.constant 0 : i32
    return %arg0, %c0_i32, %c0_i32_0 : i32, i32, i32
  }
  func.func @transform_1(%arg0: i32) -> (i32, i32, i32) {
    %c0_i32 = arith.constant 0 : i32
    %c0_i32_0 = arith.constant 0 : i32
    %c0_i32_1 = arith.constant 0 : i32
    return %arg0, %c0_i32, %c0_i32_0 : i32, i32, i32
  }
  func.func @transform_2(%arg0: i32) -> (i32, i32, i32, i32) {
    %c0_i32 = arith.constant 0 : i32
    %c0_i32_0 = arith.constant 0 : i32
    %c0_i32_1 = arith.constant 0 : i32
    %c0_i32_2 = arith.constant 0 : i32
    return %arg0, %c0_i32, %c0_i32_0, %c0_i32_1 : i32, i32, i32, i32
  }
  func.func @transform_3(%arg0: i32) -> (i32, i32, i32, i32) {
    %c0_i32 = arith.constant 0 : i32
    %c0_i32_0 = arith.constant 0 : i32
    %c0_i32_1 = arith.constant 0 : i32
    %c0_i32_2 = arith.constant 0 : i32
    return %arg0, %c0_i32, %c0_i32_0, %c0_i32_1 : i32, i32, i32, i32
  }
  func.func @transform_4(%arg0: i32) -> (i32, i32, i32) {
    %c0_i32 = arith.constant 0 : i32
    %c0_i32_0 = arith.constant 0 : i32
    %c0_i32_1 = arith.constant 0 : i32
    %c0_i32_2 = arith.constant 0 : i32
    return %c0_i32, %c0_i32_0, %c0_i32_1 : i32, i32, i32
  }
  func.func @transform_5(%arg0: i32) -> (i32, i32, i32) {
    %c0_i32 = arith.constant 0 : i32
    %c0_i32_0 = arith.constant 0 : i32
    %c0_i32_1 = arith.constant 0 : i32
    %c0_i32_2 = arith.constant 0 : i32
    return %c0_i32, %c0_i32_0, %c0_i32_1 : i32, i32, i32
  }
  func.func @transform_6(%arg0: i32) -> (i32, i32, i32) {
    %c0_i32 = arith.constant 0 : i32
    %c0_i32_0 = arith.constant 0 : i32
    %c0_i32_1 = arith.constant 0 : i32
    %c0_i32_2 = arith.constant 0 : i32
    return %c0_i32, %c0_i32_0, %c0_i32_1 : i32, i32, i32
  }
  func.func @transform_7(%arg0: i32) -> (i32, i32, i32) {
    %c0_i32 = arith.constant 0 : i32
    %c0_i32_0 = arith.constant 0 : i32
    %c0_i32_1 = arith.constant 0 : i32
    %c0_i32_2 = arith.constant 0 : i32
    return %c0_i32, %c0_i32_0, %c0_i32_1 : i32, i32, i32
  }
  func.func @transform_8(%arg0: i32) -> (i32, i32, i32) {
    %c0_i32 = arith.constant 0 : i32
    %c0_i32_0 = arith.constant 0 : i32
    %c0_i32_1 = arith.constant 0 : i32
    %c0_i32_2 = arith.constant 0 : i32
    return %c0_i32, %c0_i32_0, %c0_i32_1 : i32, i32, i32
  }
  func.func @transform_9(%arg0: i32) -> (i32, i32, i32) {
    %c0_i32 = arith.constant 0 : i32
    %c0_i32_0 = arith.constant 0 : i32
    %c0_i32_1 = arith.constant 0 : i32
    %c0_i32_2 = arith.constant 0 : i32
    return %c0_i32, %c0_i32_0, %c0_i32_1 : i32, i32, i32
  }
  func.func @transform_10(%arg0: i32) -> (i32, i32, i32) {
    %c0_i32 = arith.constant 0 : i32
    %c0_i32_0 = arith.constant 0 : i32
    %c0_i32_1 = arith.constant 0 : i32
    %c0_i32_2 = arith.constant 0 : i32
    return %c0_i32, %c0_i32_0, %c0_i32_1 : i32, i32, i32
  }
  func.func @transform_11(%arg0: i32) -> (i32, i32, i32) {
    %c0_i32 = arith.constant 0 : i32
    %c0_i32_0 = arith.constant 0 : i32
    %c0_i32_1 = arith.constant 0 : i32
    %c0_i32_2 = arith.constant 0 : i32
    return %c0_i32, %c0_i32_0, %c0_i32_1 : i32, i32, i32
  }
  func.func @transform_12(%arg0: i32) -> (i32, i32, i32) {
    %c0_i32 = arith.constant 0 : i32
    %c0_i32_0 = arith.constant 0 : i32
    %c0_i32_1 = arith.constant 0 : i32
    %c0_i32_2 = arith.constant 0 : i32
    return %c0_i32, %c0_i32_0, %c0_i32_1 : i32, i32, i32
  }
  func.func @transform_13(%arg0: i32) -> (i32, i32, i32) {
    %c0_i32 = arith.constant 0 : i32
    %c0_i32_0 = arith.constant 0 : i32
    %c0_i32_1 = arith.constant 0 : i32
    %c0_i32_2 = arith.constant 0 : i32
    return %c0_i32, %c0_i32_0, %c0_i32_1 : i32, i32, i32
  }
  func.func @transform_14(%arg0: i32) -> (i32, i32, i32) {
    %c0_i32 = arith.constant 0 : i32
    %c0_i32_0 = arith.constant 0 : i32
    %c0_i32_1 = arith.constant 0 : i32
    %c0_i32_2 = arith.constant 0 : i32
    return %c0_i32, %c0_i32_0, %c0_i32_1 : i32, i32, i32
  }
  func.func @transform_15(%arg0: i32) -> (i32, i32, i32) {
    %c0_i32 = arith.constant 0 : i32
    %c0_i32_0 = arith.constant 0 : i32
    %c0_i32_1 = arith.constant 0 : i32
    %c0_i32_2 = arith.constant 0 : i32
    return %c0_i32, %c0_i32_0, %c0_i32_1 : i32, i32, i32
  }
  func.func @transform_16(%arg0: i32) -> (i32, i32, i32) {
    %c0_i32 = arith.constant 0 : i32
    %c0_i32_0 = arith.constant 0 : i32
    %c0_i32_1 = arith.constant 0 : i32
    %c0_i32_2 = arith.constant 0 : i32
    return %c0_i32, %c0_i32_0, %c0_i32_1 : i32, i32, i32
  }
  func.func @transform_17(%arg0: i32) -> (i32, i32, i32) {
    %c0_i32 = arith.constant 0 : i32
    %c0_i32_0 = arith.constant 0 : i32
    %c0_i32_1 = arith.constant 0 : i32
    %c0_i32_2 = arith.constant 0 : i32
    return %c0_i32, %c0_i32_0, %c0_i32_1 : i32, i32, i32
  }
  func.func @transform_18(%arg0: i32) -> (i32, i32, i32) {
    %c0_i32 = arith.constant 0 : i32
    %c0_i32_0 = arith.constant 0 : i32
    %c0_i32_1 = arith.constant 0 : i32
    %c0_i32_2 = arith.constant 0 : i32
    return %c0_i32, %c0_i32_0, %c0_i32_1 : i32, i32, i32
  }
  func.func @transform_19(%arg0: i32) -> (i32, i32, i32) {
    %c0_i32 = arith.constant 0 : i32
    %c0_i32_0 = arith.constant 0 : i32
    %c0_i32_1 = arith.constant 0 : i32
    %c0_i32_2 = arith.constant 0 : i32
    return %c0_i32, %c0_i32_0, %c0_i32_1 : i32, i32, i32
  }
  func.func @transform_20(%arg0: i32) -> (i32, i32) {
    %c0_i32 = arith.constant 0 : i32
    %c0_i32_0 = arith.constant 0 : i32
    %c0_i32_1 = arith.constant 0 : i32
    return %c0_i32, %c0_i32_0 : i32, i32
  }
  func.func @transform_21(%arg0: i32) -> (i32, i32) {
    %c0_i32 = arith.constant 0 : i32
    %c0_i32_0 = arith.constant 0 : i32
    %c0_i32_1 = arith.constant 0 : i32
    return %c0_i32, %c0_i32_0 : i32, i32
  }
  func.func @transform_22(%arg0: i32) -> (i32, i32, i32) {
    %c0_i32 = arith.constant 0 : i32
    %c0_i32_0 = arith.constant 0 : i32
    %c0_i32_1 = arith.constant 0 : i32
    return %arg0, %c0_i32, %c0_i32_0 : i32, i32, i32
  }
  func.func @transform_23(%arg0: i32) -> (i32, i32, i32) {
    %c0_i32 = arith.constant 0 : i32
    %c0_i32_0 = arith.constant 0 : i32
    %c0_i32_1 = arith.constant 0 : i32
    return %arg0, %c0_i32, %c0_i32_0 : i32, i32, i32
  }
}

</mosaic_0001>

<bundles_post_ra>
// kernel: tpu_custom_call.1
= control target key start
LH: loop header
LB: loop body
LE: loop exit
PB: predicated region body
PF: predicated region fallthrough
CT: control target
= control target key end

     0   :  { %s8918_s0 = inlined_call_operand.hbm [shape: f32[2,8,32], index: 0, kind: input, shape index: {}]   ;;  %s8919_s1 = inlined_call_operand.vmem [shape: f32[2,10,32], index: 1, kind: input, shape index: {}]   ;;  %s8920_s2 = inlined_call_operand.hbm [shape: f32[2,1,8,8], index: 2, kind: input, shape index: {}]   ;;  %s8921_s3 = inlined_call_operand.hbm [shape: f32[2,1,1,10], index: 3, kind: input, shape index: {}]   ;;  %s8922_s4 = inlined_call_operand.vmem [shape: f32[2,32,96], index: 4, kind: input, shape index: {}]   ;;  %s8923_s5 = inlined_call_operand.hbm [shape: f32[2,1,96], index: 5, kind: input, shape index: {}]   ;;  %s8924_s6 = inlined_call_operand.vmem [shape: f32[2,32,32], index: 6, kind: input, shape index: {}]   ;;  %s8925_s7 = inlined_call_operand.vmem [shape: f32[2,1,32], index: 7, kind: input, shape index: {}]   ;;  %s8926_s8 = inlined_call_operand.vmem [shape: f32[2,32,32], index: 8, kind: input, shape index: {}]   ;;  %s8927_s9 = inlined_call_operand.vmem [shape: f32[2,1,32], index: 9, kind: input, shape index: {}]   ;;  %s8928_s10 = inlined_call_operand.vmem [shape: f32[2,32,64], index: 10, kind: input, shape index: {}]   ;;  %s8929_s11 = inlined_call_operand.vmem [shape: f32[2,1,64], index: 11, kind: input, shape index: {}]   ;;  %s8930_s12 = inlined_call_operand.hbm [shape: f32[2,32,32], index: 12, kind: input, shape index: {}]   ;;  %s8931_s13 = inlined_call_operand.vmem [shape: f32[2,1,32], index: 13, kind: input, shape index: {}]   ;;  %s8932_s14 = inlined_call_operand.hbm [shape: f32[2,32,64], index: 14, kind: input, shape index: {}]   ;;  %s8933_s15 = inlined_call_operand.vmem [shape: f32[2,1,64], index: 15, kind: input, shape index: {}]   ;;  %s8934_s16 = inlined_call_operand.vmem [shape: f32[2,64,32], index: 16, kind: input, shape index: {}]   ;;  %s8935_s17 = inlined_call_operand.vmem [shape: f32[2,1,32], index: 17, kind: input, shape index: {}]   ;;  %s8936_s18 = inlined_call_operand.vmem [shape: f32[2,3,32], index: 18, kind: input, shape index: {}]   ;;  %s8937_s19 = inlined_call_operand.vmem [shape: f32[2,3,32], index: 19, kind: input, shape index: {}]   ;;  %s8938_s20 = inlined_call_operand.vmem [shape: f32[32,12], index: 20, kind: input, shape index: {}]   ;;  %s8939_s21 = inlined_call_operand.vmem [shape: f32[1,12], index: 21, kind: input, shape index: {}]   ;;  %s8940_s22 = inlined_call_operand.hbm [shape: f32[2,8,12], index: 22, kind: output, shape index: {0}]   ;;  %s8941_s23 = inlined_call_operand.hbm [shape: f32[2,8,40], index: 23, kind: output, shape index: {1}]  }
   0x1   :  { %9009 = sst [smem:[#allocation28_spill]] %s8918_s0 }
   0x2   :  { %9010 = sst [smem:[#allocation29_spill]] %s8919_s1 }
   0x3   :  { %9011 = sst [smem:[#allocation30_spill]] %s8920_s2 }
   0x4   :  { %9012 = sst [smem:[#allocation31_spill]] %s8921_s3 }
   0x5   :  { %9013 = sst [smem:[#allocation32_spill]] %s8922_s4 }
   0x6   :  { %9014 = sst [smem:[#allocation33_spill]] %s8923_s5 }
   0x7   :  { %9015 = sst [smem:[#allocation34_spill]] %s8924_s6 }
   0x8   :  { %9016 = sst [smem:[#allocation35_spill]] %s8925_s7 }
   0x9   :  { %9017 = sst [smem:[#allocation36_spill]] %s8926_s8 }
   0xa   :  { %9018 = sst [smem:[#allocation37_spill]] %s8927_s9 }
   0xb   :  { %9019 = sst [smem:[#allocation38_spill]] %s8929_s11 }
   0xc   :  { %9020 = sst [smem:[#allocation39_spill]] %s8930_s12 }
   0xd   :  { %9021 = sst [smem:[#allocation40_spill]] %s8931_s13 }
   0xe   :  { %9022 = sst [smem:[#allocation41_spill]] %s8932_s14 }
   0xf   :  { %9023 = sst [smem:[#allocation42_spill]] %s8933_s15 }
  0x10   :  { %9024 = sst [smem:[#allocation43_spill]] %s8934_s16 }
  0x11   :  { %9025 = sst [smem:[#allocation44_spill]] %s8935_s17 }
  0x12   :  { %9026 = sst [smem:[#allocation45_spill]] %s8936_s18 }
  0x13   :  { %9027 = sst [smem:[#allocation46_spill]] %s8937_s19 }
  0x14   :  { %9028 = sst [smem:[#allocation47_spill]] %s8938_s20 }
  0x15   :  { %9029 = sst [smem:[#allocation48_spill]] %s8939_s21 }
  0x16   :  { %9030 = sst [smem:[#allocation49_spill]] %s8940_s22 }
  0x17   :  { %9031 = sst [smem:[#allocation50_spill]] %s8941_s23 }
  0x18   :  { %29 = vsyncpa [#allocation3], 0 }
  0x19   :  { %31 = vsyncpa [#allocation3 + $0x1], 0 }
  0x1a   :  { %32 = vsyncpa [#allocation6], 0 }
  0x1b   :  { %34 = vsyncpa [#allocation6 + $0x1], 0 }
  0x1c   :  { %35 = vsyncpa [#allocation9], 0 }
  0x1d   :  { %36 = vsyncpa [#allocation12], 0 }
  0x1e   :  { %37 = vsyncpa [#allocation4], 0 }
  0x1f   :  { %39 = vsyncpa [#allocation4 + $0x1], 0 }
  0x20   :  { %40 = vsyncpa [#allocation15], 0 }
  0x21   :  { %42 = vsyncpa [#allocation15 + $0x1], 0  ;;  %s7795_s4 = smov 0   ;;  %s7797_s30 = smov 0  }
  0x22   :  { %s7799_s24 = smov 0   ;;  %s7801_s25 = smov 0  }
  0x23 LB: > { %9032 = sst [smem:[#allocation22_spill]] %s7631_s4  ;;  %s7816_s5 = sadd.s32 4294967295, %s7643_s25   ;;  %s7643_s25 = sphi %s7801_s25, %s9110_s25   ;;  %s7639_s24 = sphi %s7799_s24, %s9115_s24   ;;  %s7635_s30 = sphi %s7797_s30, %s9114_s30   ;;  %s7631_s4 = sphi %s7795_s4, %s9113_s4  }
  0x24   : > { %9033 = sst [smem:[#allocation23_spill]] %s7639_s24  ;;  %s6195_s1 = sadd.s32 4294967294, %s7643_s25  }
  0x25   : > { %p68_p0 = scmp.ne.s32.totalorder %s7635_s30, %s7631_s4  ;;  %p8956_p1 = scmp.eq.s32.totalorder %s7816_s5, 0 }
  0x26   : > { %p554_p3 = scmp.eq.s32.totalorder %s6195_s1, 1  ;;  %p6196_p5 = scmp.ge.s32.totalorder %s7643_s25, 1 }
  0x27   : > { %p7825_p4 = por %p8956_p1, %p68_p0  ;;  %p587_p7 = scmp.lt.s32.totalorder %s7643_s25, 3 }
  0x28   : > { %p7830_p6 = por %p554_p3, %p68_p0  ;;  %s7645_s27 = smov [#allocation8]  }
  0x29   : > { %s9034_s26 = scalar_select %p7825_p4, 1, 0 }
  0x2a   : > { %s9035_s2 = scalar_select %p7830_p6, 1, 0 }
  0x2b   : > { %p7835_p8 = pnand %p6196_p5, %p587_p7  ;;  %s602_s7 = sshll.u32 %s7645_s27, 4  ;;  %s7839_s7 = int_to_ptr.vmem [resolvable:$true] %s602_s7 }
  0x2c   : > { %9036 = sst [smem:[#allocation24_spill]] %s9035_s2  ;;  %s7851_s29 = sadd.s32 1, %s7643_s25  }
  0x2d   : > { %s9037_s6 = scalar_select %p7835_p8, 1, 0 }
  0x2e   : > { %p7118_p9 = pneg %p7835_p8  ;;  %9039 = sst [smem:[#allocation25_spill]] %s7851_s29 }
  0x2f   : > { %s55_s3 = sadd.s32 1, %s7639_s24  ;;  %s52_s0 = ssub.s32 %s7643_s25, %s7851_s29 }
  0x30   : > { %p7846_p11 = pnand %p7118_p9, %p8956_p1  ;;  %s9040_s4 = sld [smem:[#allocation33_spill]] }
  0x32   : > { %s9038_s28 = scalar_select %p7846_p11, 1, 0 }
  0x33   : > { %p7864_p13 = pneg %p7846_p11 }
  0x35   : > { %s9042_s20 = scalar_select %p7864_p13, 1, 0 }
  0x36   : > { %s9041_s22 = smov %s9040_s4  ;;  %s7359_s27 = scalar_lea.hbm %s9040_s4, 32 }
  0x37   : > { %p7360_p12 = scmp.ne.s32.totalorder %s9041_s22, %s7359_s27  ;;  %p7366_p5 = scmp.lt.u32.totalorder %s7359_s27, %s9041_s22 }
  0x39   : > { %p7362_p0 = pnand %p7864_p13, %p7360_p12 }
  0x3b   : > { %p7363_p3 = pneg %p7362_p0 }
  0x3d   : > { %p7368_p7 = pnand %p7366_p5, %p7363_p3 }
  0x3f   : > { %7371 = shalt.err (!%p7368_p7)
}
  0x40   : > { %s7372_s21 = scalar_lea.vmem %s7839_s7, 32  ;;  %p7380_p2 = scmp.lt.s32.totalorder %s7839_s7, %s7839_s7 }
  0x41   : > { %p7373_p9 = scmp.ne.s32.totalorder %s7839_s7, %s7372_s21  ;;  %p7381_p6 = scmp.lt.s32.totalorder %s7372_s21, %s7372_s21 }
  0x43   : > { %p7375_p10 = pnand %p7373_p9, %p7864_p13  ;;  %p7382_p12 = por %p7381_p6, %p7380_p2 }
  0x45   : > { %p7376_p1 = pneg %p7375_p10 }
  0x47   : > { %p7383_p0 = pnand %p7382_p12, %p7376_p1 }
  0x49   : > { %7386 = shalt.err (!%p7383_p0)
}
  0x4a   : > { %s7646_s23 = smov 16   ;;  %s7647_s15 = smov 1  }
  0x4b   : > { %7121 = dma.hbm_to_vmem [thread:$0]  (!%p7846_p11), %s9041_s22, 32, %s7839_s7, [#allocation9], %s7646_s23, %s7646_s23, %s7647_s15  }
  0x4c   : > { %p53_p1 = scmp.eq.s32.totalorder %s52_s0, 0  ;;  %p62_p2 = scmp.ne.s32.totalorder %s7639_s24, %s7635_s30 }
  0x4d   : > { %p63_p6 = scmp.eq.s32.totalorder %s7643_s25, 0  ;;  %p7148_p10 = scmp.lt.s32.totalorder %s7643_s25, 2 }
  0x4e   : > { %s7890_s2 = scalar_select %p53_p1, %s7639_s24, %s55_s3  }
  0x4f   : > { %p64_p3 = por %p63_p6, %p62_p2  ;;  %p9044_p5 = scmp.eq.s32.totalorder %s7816_s5, 1 }
  0x50   : > { %9043 = sst [smem:[#allocation26_spill]] %s7890_s2  ;;  %s7899_s27 = sand.u32 1, %s7639_s24  }
  0x51   : > { %p7894_p7 = por %p9044_p5, %p62_p2  ;;  %s8964_s21 = sshll.u32 %s7643_s25, 7 }
  0x52   : > { %s8963_s29 = sshll.u32 %s7899_s27, 3  ;;  %p7903_p9 = pnand %p7148_p10, %p64_p3 }
  0x53   : > { %s9045_s1 = scalar_select %p7894_p7, 1, 0 }
  0x54   : > { %s9047_s7 = scalar_select %p7903_p9, 1, 0 }
  0x55   : > { %9046 = sst [smem:[#allocation27_spill]] %s9045_s1  ;;  %s710_s0 = sand.u32 1, %s7643_s25  }
  0x56   : > { %s9048_s15 = sld [smem:[#allocation30_spill]]  ;;  %s714_s4 = scalar_lea.vmem [#allocation5], %s8963_s29 }
  0x57   : > { %s721_s22 = sshll.u32 %s714_s4, 4  ;;  %s7919_s2 = scalar_lea.sflag [#allocation6], %s710_s0  ;;  %s7917_s22 = int_to_ptr.vmem [resolvable:$true] %s721_s22 }
  0x58   : > { %p7925_p0 = pneg %p7903_p9 }
  0x5a   : > { %s9049_s1 = scalar_select %p7925_p0, 1, 0 }
  0x5c   : > { %s7913_s17 = scalar_lea.hbm %s9048_s15, %s8964_s21  ;;  %s7392_s29 = scalar_lea.hbm %s9048_s15, 256 }
  0x5d   : > { %s7387_s24 = scalar_lea.hbm %s7913_s17, 128  ;;  %p7393_p6 = scmp.lt.u32.totalorder %s7913_s17, %s9048_s15 }
  0x5e   : > { %p7388_p12 = scmp.ne.s32.totalorder %s7913_s17, %s7387_s24  ;;  %p7394_p10 = scmp.lt.u32.totalorder %s7392_s29, %s7387_s24 }
  0x5f   : > { %p7396_p5 = scmp.lt.u32.totalorder %s7387_s24, %s7913_s17 }
  0x60   : > { %p7390_p1 = pnand %p7925_p0, %p7388_p12  ;;  %p7395_p3 = por %p7394_p10, %p7393_p6 }
  0x62   : > { %p7391_p2 = pneg %p7390_p1  ;;  %p7397_p7 = por %p7396_p5, %p7395_p3 }
  0x64   : > { %p7398_p4 = pnand %p7397_p7, %p7391_p2 }
  0x66   : > { %7401 = shalt.err (!%p7398_p4)
}
  0x67   : > { %s7402_s0 = scalar_lea.vmem %s7917_s22, 128  ;;  %s7648_s3 = smov [#allocation5]  }
  0x68   : > { %p7403_p12 = scmp.ne.s32.totalorder %s7917_s22, %s7402_s0  ;;  %s7407_s23 = sshll.u32 %s7648_s3, 4  ;;  %s7408_s23 = int_to_ptr.vmem [resolvable:$false] %s7407_s23 }
  0x69   : > { %s7409_s21 = scalar_lea.vmem %s7408_s23, 256  ;;  %p7410_p11 = scmp.lt.s32.totalorder %s7917_s22, %s7408_s23 }
  0x6a   : > { %p7405_p1 = pnand %p7403_p12, %p7925_p0  ;;  %p7411_p13 = scmp.lt.s32.totalorder %s7409_s21, %s7402_s0 }
  0x6c   : > { %p7406_p8 = pneg %p7405_p1  ;;  %p7412_p6 = por %p7411_p13, %p7410_p11 }
  0x6e   : > { %p7413_p10 = pnand %p7412_p6, %p7406_p8 }
  0x70   : > { %7416 = shalt.err (!%p7413_p10)
}
  0x71   : > { %7134 = dma.hbm_to_vmem [thread:$0]  (!%p7903_p9), %s7913_s17, 128, %s7917_s22, %s7919_s2  }
  0x72   : > { %s7649_s24 = smov [#allocation10]   ;;  %s9050_s12 = sld [smem:[#allocation39_spill]] }
  0x73   : > { %s633_s29 = sshll.u32 %s7649_s24, 4  ;;  %p9051_p8 = scmp.ne.s32.totalorder %s9042_s20, 0  ;;  %s634_s29 = int_to_ptr.vmem [resolvable:$true] %s633_s29 }
  0x78   : > { %s7417_s3 = scalar_lea.hbm %s9050_s12, 1024 }
  0x79   : > { %p7418_p4 = scmp.ne.s32.totalorder %s9050_s12, %s7417_s3  ;;  %p7424_p7 = scmp.lt.u32.totalorder %s7417_s3, %s9050_s12 }
  0x7b   : > { %p7420_p11 = pnand %p7418_p4, %p9051_p8 }
  0x7d   : > { %p7421_p13 = pneg %p7420_p11 }
  0x7f   : > { %p7426_p2 = pnand %p7424_p7, %p7421_p13 }
  0x81   : > { %7429 = shalt.err (!%p7426_p2)
}
  0x82   : > { %s7430_s22 = scalar_lea.vmem %s634_s29, 1024  ;;  %p7438_p1 = scmp.lt.s32.totalorder %s634_s29, %s634_s29 }
  0x83   : > { %p7431_p3 = scmp.ne.s32.totalorder %s634_s29, %s7430_s22  ;;  %p7439_p6 = scmp.lt.s32.totalorder %s7430_s22, %s7430_s22 }
  0x85   : > { %p7433_p5 = pnand %p7431_p3, %p9051_p8  ;;  %p7440_p10 = por %p7439_p6, %p7438_p1 }
  0x87   : > { %p7434_p12 = pneg %p7433_p5 }
  0x89   : > { %p7441_p9 = pnand %p7440_p10, %p7434_p12 }
  0x8b   : > { %7444 = shalt.err (!%p7441_p9)
}
  0x8c   : > { %s7650_s16 = smov 128   ;;  %s7651_s15 = smov 8  }
  0x8d   : > { %p9052_p4 = scmp.ne.s32.totalorder %s9038_s28, 0  ;;  %s7652_s4 = smov [#allocation11]  }
  0x8e   : > { %s649_s3 = sshll.u32 %s7652_s4, 4  ;;  %s9053_s23 = sshll.u32 %s7643_s25, 7  ;;  %s650_s3 = int_to_ptr.vmem [resolvable:$true] %s649_s3 }
  0x8f   : > { %7124 = dma.hbm_to_vmem [thread:$0]  (!%p9052_p4), %s9050_s12, 1024, %s634_s29, [#allocation9], %s7650_s16, %s7650_s16, %s7651_s15  }
  0x90   : > { %s9054_s22 = sld [smem:[#allocation28_spill]]  ;;  %s9055_s14 = sld [smem:[#allocation41_spill]] }
  0x96   : > { %s7972_s13 = scalar_lea.hbm %s9054_s22, %s9053_s23  ;;  %s7445_s19 = scalar_lea.hbm %s9055_s14, 1024 }
  0x97   : > { %p7446_p9 = scmp.ne.s32.totalorder %s9055_s14, %s7445_s19  ;;  %p7452_p7 = scmp.lt.u32.totalorder %s7445_s19, %s9055_s14 }
  0x99   : > { %p7448_p11 = pnand %p7446_p9, %p9051_p8 }
  0x9b   : > { %p7449_p13 = pneg %p7448_p11 }
  0x9d   : > { %p7454_p2 = pnand %p7452_p7, %p7449_p13 }
  0x9f   : > { %7457 = shalt.err (!%p7454_p2)
}
  0xa0   : > { %s7458_s24 = scalar_lea.vmem %s650_s3, 1024  ;;  %p7466_p1 = scmp.lt.s32.totalorder %s650_s3, %s650_s3 }
  0xa1   : > { %p7459_p3 = scmp.ne.s32.totalorder %s650_s3, %s7458_s24  ;;  %p7467_p6 = scmp.lt.s32.totalorder %s7458_s24, %s7458_s24 }
  0xa3   : > { %p7461_p5 = pnand %p7459_p3, %p9051_p8  ;;  %p7468_p10 = por %p7467_p6, %p7466_p1 }
  0xa5   : > { %p7462_p12 = pneg %p7461_p5 }
  0xa7   : > { %p7469_p0 = pnand %p7468_p10, %p7462_p12 }
  0xa9   : > { %7472 = shalt.err (!%p7469_p0)
}
  0xaa   : > { %7127 = dma.hbm_to_vmem [thread:$0]  (!%p9052_p4), %s9055_s14, 1024, %s650_s3, [#allocation12], %s7650_s16, %s7650_s16, %s7651_s15  }
  0xab   : > { %s9056_s11 = sshll.u32 %s7899_s27, 3  ;;  %s6205_s20 = sshll.u32 %s7643_s25, 4 }
  0xac   : > { %s688_s18 = scalar_lea.vmem [#allocation2], %s9056_s11  ;;  %s685_s4 = scalar_lea.sflag [#allocation3], %s7899_s27 }
  0xad   : > { %s695_s19 = sshll.u32 %s688_s18, 4  ;;  %s7473_s28 = scalar_lea.hbm %s7972_s13, 128  ;;  %s7994_s19 = int_to_ptr.vmem [resolvable:$true] %s695_s19 }
  0xae   : > { %p7474_p0 = scmp.ne.s32.totalorder %s7972_s13, %s7473_s28  ;;  %p9057_p8 = scmp.ne.s32.totalorder %s9049_s1, 0 }
  0xaf   : > { %s7478_s21 = scalar_lea.hbm %s9054_s22, 256  ;;  %p7479_p4 = scmp.lt.u32.totalorder %s7972_s13, %s9054_s22 }
  0xb0   : > { %p7476_p9 = pnand %p7474_p0, %p9057_p8  ;;  %p7480_p13 = scmp.lt.u32.totalorder %s7478_s21, %s7473_s28 }
  0xb1   : > { %p7482_p2 = scmp.lt.u32.totalorder %s7473_s28, %s7972_s13 }
  0xb2   : > { %p7477_p11 = pneg %p7476_p9  ;;  %p7481_p7 = por %p7480_p13, %p7479_p4 }
  0xb4   : > { %p7483_p3 = por %p7482_p2, %p7481_p7 }
  0xb6   : > { %p7484_p5 = pnand %p7483_p3, %p7477_p11 }
  0xb8   : > { %7487 = shalt.err (!%p7484_p5)
}
  0xb9   : > { %s7488_s16 = scalar_lea.vmem %s7994_s19, 128  ;;  %s7653_s15 = smov [#allocation2]  }
  0xba   : > { %p7489_p12 = scmp.ne.s32.totalorder %s7994_s19, %s7488_s16  ;;  %s7493_s3 = sshll.u32 %s7653_s15, 4  ;;  %s7494_s3 = int_to_ptr.vmem [resolvable:$false] %s7493_s3 }
  0xbb   : > { %s7495_s24 = scalar_lea.vmem %s7494_s3, 256  ;;  %p7496_p10 = scmp.lt.s32.totalorder %s7994_s19, %s7494_s3 }
  0xbc   : > { %p7491_p1 = pnand %p7489_p12, %p9057_p8  ;;  %p7497_p0 = scmp.lt.s32.totalorder %s7495_s24, %s7488_s16 }
  0xbe   : > { %p7492_p6 = pneg %p7491_p1  ;;  %p7498_p9 = por %p7497_p0, %p7496_p10 }
  0xc0   : > { %p7499_p4 = pnand %p7498_p9, %p7492_p6 }
  0xc2   : > { %7502 = shalt.err (!%p7499_p4)
}
  0xc3   : > { %p9058_p11 = scmp.ne.s32.totalorder %s9047_s7, 0  ;;  %s9059_s11 = sld [smem:[#allocation31_spill]] }
  0xc4   : > { %s731_s28 = scalar_lea.vmem [#allocation7], %s7899_s27 }
  0xc5   : > { %7131 = dma.hbm_to_vmem [thread:$0]  (!%p9058_p11), %s7972_s13, 128, %s7994_s19, %s685_s4  }
  0xc6   : > { %s738_s23 = sshll.u32 %s731_s28, 4  ;;  %s739_s23 = int_to_ptr.vmem [resolvable:$true] %s738_s23 }
  0xc9   : > { %s8024_s18 = scalar_lea.hbm %s9059_s11, %s6205_s20  ;;  %s7508_s19 = scalar_lea.hbm %s9059_s11, 32 }
  0xca   : > { %s7503_s0 = scalar_lea.hbm %s8024_s18, 16  ;;  %p7509_p3 = scmp.lt.u32.totalorder %s8024_s18, %s9059_s11 }
  0xcb   : > { %p7504_p13 = scmp.ne.s32.totalorder %s8024_s18, %s7503_s0  ;;  %p7510_p5 = scmp.lt.u32.totalorder %s7508_s19, %s7503_s0 }
  0xcc   : > { %p7512_p1 = scmp.lt.u32.totalorder %s7503_s0, %s8024_s18 }
  0xcd   : > { %p7506_p7 = pnand %p7504_p13, %p9057_p8  ;;  %p7511_p12 = por %p7510_p5, %p7509_p3 }
  0xcf   : > { %p7507_p2 = pneg %p7506_p7  ;;  %p7513_p6 = por %p7512_p1, %p7511_p12 }
  0xd1   : > { %p7514_p10 = pnand %p7513_p6, %p7507_p2 }
  0xd3   : > { %7517 = shalt.err (!%p7514_p10)
}
  0xd4   : > { %s7518_s27 = scalar_lea.vmem %s739_s23, 16  ;;  %s7654_s20 = smov [#allocation7]  }
  0xd5   : > { %p7519_p0 = scmp.ne.s32.totalorder %s739_s23, %s7518_s27  ;;  %s7523_s17 = sshll.u32 %s7654_s20, 4  ;;  %s7524_s17 = int_to_ptr.vmem [resolvable:$false] %s7523_s17 }
  0xd6   : > { %s7525_s16 = scalar_lea.vmem %s7524_s17, 32  ;;  %p7526_p13 = scmp.lt.s32.totalorder %s739_s23, %s7524_s17 }
  0xd7   : > { %p7521_p9 = pnand %p7519_p0, %p9057_p8  ;;  %p7527_p7 = scmp.lt.s32.totalorder %s7525_s16, %s7518_s27 }
  0xd9   : > { %p7522_p4 = pneg %p7521_p9  ;;  %p7528_p11 = por %p7527_p7, %p7526_p13 }
  0xdb   : > { %p7529_p3 = pnand %p7528_p11, %p7522_p4 }
  0xdd   : > { %7532 = shalt.err (!%p7529_p3)
}
  0xde   : > { %p9060_p5 = scmp.ne.s32.totalorder %s9047_s7, 0  ;;  %p9061_p2 = scmp.ne.s32.totalorder %s9037_s6, 0 }
  0xdf   : > { %s8048_s1 = sand.u32 (!%p9061_p2), 1, %s7635_s30   ;;  %p9062_p8 = scmp.ne.s32.totalorder (!%p9061_p2), %s9034_s26, 0 }
  0xe0   : > { %7137 = dma.hbm_to_vmem [thread:$0]  (!%p9060_p5), %s8024_s18, 16, %s739_s23, %s7919_s2  }
  0xe1   : > { %747 = sbr.rel (%p9061_p2) target bundleno = 13742 (0x35ae), region = 108  ;;  %s8051_s15 = sshll.u32 (!%p9061_p2), %s8048_s1, 3 }
  0xe2   : > { %s750_s3 = scalar_lea.sflag (!%p9061_p2), [#allocation3], %s8048_s1  ;;  %s753_s24 = scalar_lea.vmem (!%p9061_p2), [#allocation2], %s8051_s15 }
  0xe8   : > { %7606 = dma.done.wait (%p9062_p8), %s750_s3, 128  }
  0xe9   : > { %7608 = vsyncadd (%p9062_p8), %s750_s3, 4294967168  ;;  %s758_s6 = sand.u32 1, %s7816_s5   ;;  %s8988_s7 = scalar_lea.vmem [#allocation5], %s8051_s15 }
  0xea   : > { %s759_s2 = scalar_lea.sflag [#allocation6], %s758_s6 }
  0xeb   : > { %7610 = dma.done.wait (%p9062_p8), %s759_s2, 144  }
  0xec   : > { %7612 = vsyncadd (%p9062_p8), %s759_s2, 4294967152  ;;  %s8989_s8 = scalar_lea.vmem [#allocation7], %s8048_s1  ;;  %p9063_p11 = scmp.eq.s32.totalorder %s7816_s5, 0 }
  0xee   : > { %7614 = dma.done.wait (%p9063_p11), [#allocation9], 1056   ;;  %p9064_p12 = pmov %p9063_p11 }
  0xef   : > { %p9065_p1 = pmov %p9063_p11 }
  0xf0   : > { %7616 = vsyncadd (%p9064_p12), [#allocation9], 4294966240 }
  0xf1   : > { %7618 = dma.done.wait (%p9065_p1), [#allocation12], 1024   ;;  %p9066_p6 = pmov %p9065_p1 }
  0xf2   : > { %v7655_v0 = vmov 0.0|0.0   ;;  %vm7656_vm0 = vmmov 0   ;;  %v7657_v1 = vmov 0.0   ;;  %s9067_s18 = sld [smem:[#allocation32_spill]]  ;;  %v8093_v8 = vld [vmem:[%s753_s24] sm:$0xff]  ;;  %vm887_vm1 = vcmask 261120  }
  0xf3   : > { %7620 = vsyncadd (%p9066_p6), [#allocation12], 4294966272  ;;  %6950 = vmatprep.subr.bf16.mxu0 %v7655_v0  ;;  %6549 = vmatprep.mubr.msk.f32.mxu0 %vm7656_vm0, %v7657_v1  ;;  %v6216_v9 = vld [vmem:[#allocation8] ss:$0 sm:$0xff]  ;;  %s8998_s4 = smov 120   ;;  %s9000_s29 = smov 96  }
  0xf4   : > { %6552 = vmatprep.subr.mxu1 %v7657_v1  ;;  %6554 = vmatprep.mubr.msk.f32.mxu1 %vm7656_vm0, %v7657_v1  ;;  %s9002_s27 = smov 88   ;;  %vm969_vm2 = vcmask 64512   ;;  %v8121_v17 = vld [vmem:[%s8988_s7] sm:$0xff]  ;;  %s8986_s20 = smov 56   ;;  %vm2232_vm4 = vcmask 80896   ;;  %vm2253_vm5 = vcmask 1041408  }
  0xf5   : > { %s8987_s17 = smov 64   ;;  %s8996_s16 = smov 80   ;;  %vm8284_vm3 = vmpackc.low %vm969_vm2, %vm969_vm2  ;;  %vm7669_vm6 = vmmov 1   ;;  %vm3279_vm8 = vcmask 523264   ;;  %vm5663_vm9 = vcmask 162816   ;;  %vm5665_vm10 = vcmask 244736  }
  0xf6   : > { %s8994_s3 = smov 112   ;;  %s9068_s2 = sld [smem:[#allocation34_spill]]  ;;  %vm8311_vm7 = vmpackc.low %vm2253_vm5, %vm7669_vm6  ;;  %vm5978_vm11 = vcmask 326656  }
  0xf7   : > { %s8990_s28 = smov 72   ;;  %s8992_s23 = smov 104  }
  0xf8   : > { %v876_v2 = vld [vmem:[%s9067_s18] sm:$0xff]  ;;  %v877_v3 = vld [vmem:[%s9067_s18 + $0x8] sm:$0xff]  ;;  %v878_v4 = vld [vmem:[%s9067_s18 + $0x10] sm:$0xff]  ;;  %s8985_s0 = smov 48   ;;  %s8984_s19 = smov 40  }
  0xf9   : > { %v6951_v5 = vpack.c.bf16 %v877_v3, %v876_v2  ;;  %v879_v6 = vld [vmem:[%s9067_s18 + $0x18] sm:$0xff]  ;;  %s9069_s21 = sld [smem:[#allocation35_spill]]  ;;  %p864_p10 = scmp.lt.s32.totalorder %s7816_s5, 1 }
  0xfa   : > { %v6954_v7 = vpack.c.bf16 %v879_v6, %v878_v4  ;;  %s9070_s26 = sld [smem:[#allocation29_spill]]  ;;  %s9073_s24 = sld [smem:[#allocation46_spill]] }
  0xfb   : > { %6952 = vmatpush3.bf16.msra.mxu0 %v6951_v5  ;;  %s9083_s9 = sld [smem:[#allocation43_spill]]  ;;  %s9098_s11 = smov 40  }
  0xfc   : > { %6953 = vmatprep.subr.bf16.mxu0 %v7655_v0  ;;  %v962_v37 = vld [vmem:[%s9068_s2 + $0x8] sm:$0xff]  ;;  %v961_v46 = vld [vmem:[%s9068_s2] sm:$0xff]  ;;  %s5986_s12 = scalar_lea.sflag [#allocation15], %s8048_s1  ;;  %s7673_s22 = smov [#allocation14]  }
  0xff   : > { %6955 = vmatpush3.bf16.msra.mxu0 %v6954_v7 }
 0x100   : > { %6562 = vmatprep.subr.mxu0 %v7657_v1  ;;  %s9074_s6 = smov %s9073_s24 }
 0x102   : > { %6550 = vmatmul.mubr.msk.f32.vlgmr.msra.gmra.mrb[0].mxu0 %vm887_vm1, %v8093_v8 }
 0x103   : > { %6564 = vmatprep.mubr.msk.f32.mxu0 %vm7656_vm0, %v7657_v1 }
 0x1d5   : > { %v957_v10 = vpop.f32.mrb[0].mxu0 }
 0x1d6   : > { %v8100_v11 = vadd.f32 %v6216_v9, %v957_v10  ;;  %v6551_v12 = vpop.f32.mrb[1].mxu0 }
 0x1d8   : > { %1134 = vrot.lane.b32.xlu1 %v8100_v11, %s8998_s4  ;;  %967 = vrot.lane.b32.xlu0 %v8100_v11, %s9000_s29 }
 0x1dc   : > { %1136 = vrot.lane.b32.xlu0 %v8100_v11, %s9002_s27 }
 0x24a   : > { %v968_v13 = vpop.permute.xlu0 %967  ;;  %v1135_v15 = vpop.permute.xlu1 %1134 }
 0x24b   : > { %6553 = vmatpush3.xpose.msk.msra.mxu1 %vm969_vm2, %v968_v13 }
 0x24c   : > { %6557 = vmatprep.subr.mxu1 %v7657_v1 }
 0x24e   : > { %6555 = vmatmul.mubr.msk.f32.vlgmr.msra.gmra.mrb[0].mxu1 %vm969_vm2, %v8100_v11  ;;  %v1137_v14 = vpop.permute.xlu0 %1136 }
 0x24f   : > { %6563 = vmatpush3.xpose.msk.msra.mxu0 %vm969_vm2, %v1137_v14  ;;  %6559 = vmatprep.mubr.msk.f32.mxu1 %vm7656_vm0, %v7657_v1  ;;  %v963_v14 = vld [vmem:[%s9068_s2 + $0x10] sm:$0xff] }
 0x250   : > { %6572 = vmatprep.subr.mxu0 %v7657_v1 }
 0x252   : > { %6565 = vmatmul.mubr.msk.f32.vlgmr.msra.gmra.mrb[2].mxu0 %vm969_vm2, %v1135_v15 }
 0x253   : > { %6574 = vmatprep.mubr.msk.f32.mxu0 %vm7656_vm0, %v7657_v1  ;;  %6573 = vmatpush3.msra.mxu0 %v962_v37 }
 0x254   : > { %6582 = vmatprep.subr.mxu0 %v7657_v1 }
 0x321   : > { %v1040_v16 = vpop.f32.mrb[0].mxu1 }
 0x322   : > { %v1044_v18 = vmul.f32 0.35355338, %v1040_v16  ;;  %v6556_v19 = vpop.f32.mrb[1].mxu1 }
 0x324   : > { %v1045_v20 = vadd.f32 %v1044_v18, %v8121_v17 }
 0x325   : > { %v1208_v21 = vpop.f32.mrb[2].mxu0 }
 0x326   : > { %v1212_v22 = vmul.f32 0.35355338, %v1208_v21  ;;  %v6566_v23 = vpop.f32.mrb[3].mxu0  ;;  %v1046_v24 = vsel %vm969_vm2, %v1045_v20, -inf }
 0x327   : > { %1047 = vmax.xlane.f32.xlu1 %v1046_v24 }
 0x328   : > { %v1213_v25 = vadd.f32 %v1212_v22, %v8121_v17 }
 0x32a   : > { %v1214_v26 = vsel %vm969_vm2, %v1213_v25, -inf }
 0x32b   : > { %1215 = vmax.xlane.f32.xlu0 %v1214_v26 }
 0x3b4   : > { %v1048_v27 = vpop.xlane.xlu1 %1047 }
 0x3b5   : > { %v1049_v28 = vsub.f32 %v1045_v20, %v1048_v27 }
 0x3b7   : > { %v1050_v29 = vmul.f32 1.442695, %v1049_v28 }
 0x3b8   : > { %v1216_v30 = vpop.xlane.xlu0 %1215 }
 0x3b9   : > { %7280 = vpow2.f32 %v1050_v29  ;;  %v1217_v31 = vsub.f32 %v1213_v25, %v1216_v30 }
 0x3bb   : > { %v1218_v32 = vmul.f32 1.442695, %v1217_v31 }
 0x3bd   : > { %7282 = vpow2.f32 %v1218_v32 }
 0x3c3   : > { %v7281_v33 = vpop.eup %7280 }
 0x3c4   : > { %v1052_v34 = vsel %vm969_vm2, %v7281_v33, 0.0 }
 0x3c5   : > { %1053 = vadd.xlane.f32.xlu0 %v1052_v34 }
 0x3c7   : > { %v7283_v35 = vpop.eup %7282 }
 0x3c8   : > { %v1220_v36 = vsel %vm969_vm2, %v7283_v35, 0.0 }
 0x3c9   : > { %1221 = vadd.xlane.f32.xlu1 %v1220_v36  ;;  %v6234_v36 = vld [vmem:[%s9069_s21] ss:$0 sm:$0xff] }
 0x3da   : > { %1226 = vrot.lane.b32.xlu1 %v8100_v11, %s8986_s20 }
 0x3db   : > { %1058 = vrot.lane.b32.xlu0 %v8100_v11, %s8987_s17  ;;  %s865_s17 = scalar_select %p864_p10, %s7816_s5, 1 }
 0x3dd   : > { %s6363_s13 = sshll.u32 %s865_s17, 4  ;;  %s9075_s17 = sld [smem:[#allocation38_spill]] }
 0x3de   : > { %1450 = vrot.lane.b32.xlu1 %v8100_v11, %s8996_s16  ;;  %s8228_s7 = scalar_lea.vmem %s9070_s26, %s6363_s13  ;;  %s9082_s13 = sld [smem:[#allocation40_spill]] }
 0x3df   : > { %1448 = vrot.lane.b32.xlu0 %v8100_v11, %s8994_s3 }
 0x452   : > { %v1054_v38 = vpop.xlane.xlu0 %1053 }
 0x453   : > { %7284 = vrcp.f32 %v1054_v38 }
 0x456   : > { %v1222_v39 = vpop.xlane.xlu1 %1221  ;;  %v1059_v40 = vpop.permute.xlu0 %1058 }
 0x457   : > { %7286 = vrcp.f32 %v1222_v39  ;;  %6558 = vmatpush3.msra.mxu1 %v1059_v40 }
 0x458   : > { %6567 = vmatprep.subr.mxu1 %v7657_v1 }
 0x45a   : > { %v1227_v43 = vpop.permute.xlu1 %1226  ;;  %v1449_v52 = vpop.permute.xlu0 %1448 }
 0x45d   : > { %v7285_v41 = vpop.eup %7284 }
 0x45e   : > { %v1057_v42 = vmul.f32 %v7285_v41, %v7281_v33  ;;  %v1451_v50 = vpop.permute.xlu1 %1450 }
 0x460   : > { %6560 = vmatmul.mubr.msk.f32.vlgmr.msra.gmra.mrb[2].mxu1 %vm969_vm2, %v1057_v42 }
 0x461   : > { %v7287_v44 = vpop.eup %7286  ;;  %6568 = vmatpush3.msra.mxu1 %v1227_v43  ;;  %6569 = vmatprep.mubr.msk.f32.mxu1 %vm7656_vm0, %v7657_v1 }
 0x462   : > { %v1225_v45 = vmul.f32 %v7287_v44, %v7283_v35  ;;  %6577 = vmatprep.subr.mxu1 %v7657_v1 }
 0x464   : > { %6570 = vmatmul.mubr.msk.f32.vlgmr.msra.gmra.mrb[4].mxu1 %vm969_vm2, %v1225_v45 }
 0x465   : > { %6579 = vmatprep.mubr.msk.f32.mxu1 %vm7656_vm0, %v7657_v1  ;;  %6578 = vmatpush3.msra.mxu1 %v961_v46 }
 0x466   : > { %6587 = vmatprep.subr.mxu1 %v7657_v1 }
 0x533   : > { %v1130_v47 = vpop.f32.mrb[2].mxu1 }
 0x534   : > { %v6561_v48 = vpop.f32.mrb[3].mxu1  ;;  %6580 = vmatmul.mubr.msk.f32.vlgmr.msra.gmra.mrb[6].mxu1 %vm969_vm2, %v1130_v47 }
 0x535   : > { %6589 = vmatprep.mubr.msk.f32.mxu1 %vm7656_vm0, %v7657_v1  ;;  %v2048_v48 = vld [vmem:[%s8928_s10] sm:$0xff] }
 0x537   : > { %v1298_v49 = vpop.f32.mrb[4].mxu1 }
 0x538   : > { %v6571_v51 = vpop.f32.mrb[5].mxu1  ;;  %6575 = vmatmul.mubr.msk.f32.vlgmr.msra.gmra.mrb[4].mxu0 %vm969_vm2, %v1298_v49  ;;  %v2049_v49 = vld [vmem:[%s8928_s10 + $0x8] sm:$0xff] }
 0x539   : > { %6583 = vmatpush3.xpose.msk.msra.mxu0 %vm969_vm2, %v1451_v50  ;;  %6584 = vmatprep.mubr.msk.f32.mxu0 %vm7656_vm0, %v7657_v1  ;;  %v2050_v50 = vld [vmem:[%s8928_s10 + $0x10] sm:$0xff]  ;;  %v2051_v51 = vld [vmem:[%s8928_s10 + $0x18] sm:$0xff] }
 0x53a   : > { %6592 = vmatprep.subr.mxu0 %v7657_v1 }
 0x53c   : > { %6585 = vmatmul.mubr.msk.f32.vlgmr.msra.gmra.mrb[6].mxu0 %vm969_vm2, %v1449_v52  ;;  %v6966_v52 = vpack.c.bf16 %v2051_v51, %v2050_v50 }
 0x53d   : > { %6594 = vmatprep.mubr.msk.f32.mxu0 %vm7656_vm0, %v7657_v1  ;;  %6593 = vmatpush3.msra.mxu0 %v963_v14 }
 0x53e   : > { %6602 = vmatprep.subr.mxu0 %v7657_v1 }
 0x607   : > { %v1444_v53 = vpop.f32.mrb[6].mxu1 }
 0x608   : > { %v6581_v54 = vpop.f32.mrb[7].mxu1 }
 0x609   : > { %v871_v54 = vld [vmem:[%s8228_s7 + $0x8] sm:$0x3] }
 0x60b   : > { %v1371_v55 = vpop.f32.mrb[4].mxu0 }
 0x60c   : > { %v8164_v56 = vadd.f32 %v1444_v53, %v1371_v55  ;;  %v6576_v57 = vpop.f32.mrb[5].mxu0  ;;  %v8231_v53 = vld [vmem:[%s8228_s7] sm:$0xff] }
 0x60f   : > { %v1522_v58 = vpop.f32.mrb[6].mxu0 }
 0x610   : > { %v1526_v59 = vmul.f32 0.35355338, %v1522_v58  ;;  %v6586_v60 = vpop.f32.mrb[7].mxu0 }
 0x612   : > { %v1527_v61 = vadd.f32 %v1526_v59, %v8121_v17 }
 0x614   : > { %v1528_v62 = vsel %vm969_vm2, %v1527_v61, -inf }
 0x615   : > { %1529 = vmax.xlane.f32.xlu1 %v1528_v62 }
 0x626   : > { %1692 = vrot.lane.b32.xlu1 %v8100_v11, %s8990_s28 }
 0x62a   : > { %1690 = vrot.lane.b32.xlu1 %v8100_v11, %s8992_s23 }
 0x6a2   : > { %v1530_v63 = vpop.xlane.xlu1 %1529 }
 0x6a3   : > { %v1531_v2 = vsub.f32 %v1527_v61, %v1530_v63  ;;  %v1954_v63 = vlaneseq }
 0x6a5   : > { %v1532_v3 = vmul.f32 1.442695, %v1531_v2 }
 0x6a6   : > { %v1693_v10 = vpop.permute.xlu1 %1692 }
 0x6a7   : > { %7288 = vpow2.f32 %v1532_v3  ;;  %v8254_v3 = vshrl.u32 %v1954_v63, 7 }
 0x6aa   : > { %v1691_v13 = vpop.permute.xlu1 %1690 }
 0x6b1   : > { %v7289_v4 = vpop.eup %7288 }
 0x6b2   : > { %v1534_v5 = vsel %vm969_vm2, %v7289_v4, 0.0 }
 0x6b3   : > { %1535 = vadd.xlane.f32.xlu0 %v1534_v5 }
 0x6c9   : > { %1540 = vrot.lane.b32.xlu0 %v8100_v11, %s8985_s0  ;;  %s9071_s0 = sld [smem:[#allocation36_spill]] }
 0x6cf   : > { %v1964_v55 = vld [vmem:[%s9071_s0] sm:$0xff]  ;;  %v1966_v58 = vld [vmem:[%s9071_s0 + $0x10] sm:$0xff]  ;;  %v1967_v59 = vld [vmem:[%s9071_s0 + $0x18] sm:$0xff] }
 0x6d0   : > { %v6960_v60 = vpack.c.bf16 %v1967_v59, %v1966_v58 }
 0x740   : > { %v1536_v6 = vpop.xlane.xlu0 %1535 }
 0x741   : > { %7290 = vrcp.f32 %v1536_v6  ;;  %v8267_v6 = vld [vmem:[%s9073_s24] sm:$0x7]  ;;  %s9078_s24 = sld [smem:[#allocation37_spill]] }
 0x744   : > { %v1541_v7 = vpop.permute.xlu0 %1540 }
 0x745   : > { %6588 = vmatpush3.msra.mxu1 %v1541_v7 }
 0x746   : > { %6597 = vmatprep.subr.mxu1 %v7657_v1 }
 0x747   : > { %s9079_s26 = smov %s9078_s24 }
 0x74b   : > { %v7291_v9 = vpop.eup %7290 }
 0x74c   : > { %v1539_v12 = vmul.f32 %v7291_v9, %v7289_v4  ;;  %v8257_v4 = vsub.s32 0, %v8254_v3 }
 0x74e   : > { %6590 = vmatmul.mubr.msk.f32.vlgmr.msra.gmra.mrb[8].mxu1 %vm969_vm2, %v1539_v12  ;;  %v1962_v12 = vrot.slane %v8267_v6, %v8257_v4 }
 0x74f   : > { %6598 = vmatpush3.xpose.msk.msra.mxu1 %vm969_vm2, %v1693_v10  ;;  %6599 = vmatprep.mubr.msk.f32.mxu1 %vm7656_vm0, %v7657_v1 }
 0x750   : > { %6607 = vmatprep.subr.mxu1 %v7657_v1 }
 0x752   : > { %6600 = vmatmul.mubr.msk.f32.vlgmr.msra.gmra.mrb[10].mxu1 %vm969_vm2, %v1691_v13 }
 0x753   : > { %6609 = vmatprep.mubr.msk.f32.mxu1 %vm7656_vm0, %v7657_v1 }
 0x821   : > { %v1612_v15 = vpop.f32.mrb[8].mxu1 }
 0x822   : > { %v6591_v16 = vpop.f32.mrb[9].mxu1  ;;  %6595 = vmatmul.mubr.msk.f32.vlgmr.msra.gmra.mrb[8].mxu0 %vm969_vm2, %v1612_v15  ;;  %v6237_v15 = vld [vmem:[%s9075_s17] ss:$0 sm:$0xff] }
 0x823   : > { %6604 = vmatprep.mubr.msk.f32.mxu0 %vm7656_vm0, %v7657_v1 }
 0x825   : > { %v1764_v18 = vpop.f32.mrb[10].mxu1 }
 0x826   : > { %v1768_v19 = vmul.f32 0.35355338, %v1764_v18  ;;  %v6601_v20 = vpop.f32.mrb[11].mxu1 }
 0x828   : > { %v1769_v21 = vadd.f32 %v1768_v19, %v8121_v17  ;;  %v964_v17 = vld [vmem:[%s9068_s2 + $0x18] sm:$0xff] }
 0x829   : > { %6608 = vmatpush3.msra.mxu1 %v964_v17  ;;  %v8304_v17 = vld [vmem:[%s8989_s8] ss:$0 sm:$0xff]  ;;  %s9093_s8 = smov 112  }
 0x82a   : > { %v1770_v22 = vsel %vm969_vm2, %v1769_v21, -inf }
 0x82b   : > { %1771 = vmax.xlane.f32.xlu0 %v1770_v22 }
 0x841   : > { %1782 = vrot.lane.b32.xlu0 %v8100_v11, %s8984_s19  ;;  %s9072_s19 = sld [smem:[#allocation45_spill]] }
 0x847   : > { %v8262_v5 = vld [vmem:[%s9072_s19] sm:$0x7] }
 0x848   : > { %v1957_v7 = vrot.slane %v8262_v5, %v8257_v4 }
 0x8b8   : > { %v1772_v23 = vpop.xlane.xlu0 %1771 }
 0x8b9   : > { %v1773_v24 = vsub.f32 %v1769_v21, %v1772_v23 }
 0x8bb   : > { %v1774_v25 = vmul.f32 1.442695, %v1773_v24  ;;  %v6235_v24 = vld [vmem:[%s9078_s24] ss:$0 sm:$0xff]  ;;  %s9084_s24 = sld [smem:[#allocation42_spill]] }
 0x8bc   : > { %v1783_v26 = vpop.permute.xlu0 %1782 }
 0x8bd   : > { %7292 = vpow2.f32 %v1774_v25  ;;  %6603 = vmatpush3.msra.mxu0 %v1783_v26 }
 0x8be   : > { %6956 = vmatprep.subr.bf16.mxu0 %v7655_v0 }
 0x8c1   : > { %s9085_s20 = smov %s9084_s24 }
 0x8c7   : > { %v7293_v27 = vpop.eup %7292 }
 0x8c8   : > { %v1776_v28 = vsel %vm969_vm2, %v7293_v27, 0.0 }
 0x8c9   : > { %1777 = vadd.xlane.f32.xlu1 %v1776_v28 }
 0x8f5   : > { %v1685_v29 = vpop.f32.mrb[8].mxu0 }
 0x8f6   : > { %v1689_v11 = vadd.f32 %v1685_v29, %v8164_v56  ;;  %v6596_v30 = vpop.f32.mrb[9].mxu0  ;;  %v1965_v56 = vld [vmem:[%s9071_s0 + $0x8] sm:$0xff] }
 0x8f7   : > { %v6957_v57 = vpack.c.bf16 %v1965_v56, %v1964_v55 }
 0x956   : > { %v1778_v31 = vpop.xlane.xlu1 %1777 }
 0x957   : > { %7294 = vrcp.f32 %v1778_v31 }
 0x961   : > { %v7295_v32 = vpop.eup %7294 }
 0x962   : > { %v1781_v33 = vmul.f32 %v7295_v32, %v7293_v27 }
 0x964   : > { %6605 = vmatmul.mubr.msk.f32.vlgmr.msra.gmra.mrb[10].mxu0 %vm969_vm2, %v1781_v33 }
 0x965   : > { %6620 = vmatprep.mubr.msk.f32.mxu0 %vm7656_vm0, %v7657_v1  ;;  %6958 = vmatpush3.bf16.msra.mxu0 %v6957_v57 }
 0x966   : > { %6959 = vmatprep.subr.bf16.mxu0 %v7655_v0 }
 0x969   : > { %6961 = vmatpush3.bf16.msra.mxu0 %v6960_v60 }
 0x96a   : > { %6970 = vmatprep.subr.bf16.mxu0 %v7655_v0 }
 0xa37   : > { %v1854_v34 = vpop.f32.mrb[10].mxu0 }
 0xa38   : > { %v6606_v35 = vpop.f32.mrb[11].mxu0  ;;  %6610 = vmatmul.mubr.msk.f32.vlgmr.msra.gmra.mrb[12].mxu1 %vm969_vm2, %v1854_v34 }
 0xa39   : > { %6631 = vmatprep.mubr.msk.f32.mxu1 %vm887_vm1, %v8231_v53 }
 0xb0b   : > { %v1927_v37 = vpop.f32.mrb[12].mxu1 }
 0xb0c   : > { %v1931_v38 = vadd.f32 %v1927_v37, %v1689_v11  ;;  %v6611_v39 = vpop.f32.mrb[13].mxu1 }
 0xb0e   : > { %v1938_v40 = vadd.f32 %v6234_v36, %v1931_v38 }
 0xb10   : > { %v1939_v41 = vadd.f32 %v1938_v40, %v8093_v8  ;;  %v6962_v8 = vpack.c.bf16 %v2049_v49, %v2048_v48 }
 0xb12   : > { %v1940_v42 = vsel %vm887_vm1, %v1939_v41, 0.0  ;;  %6963 = vmatprep.subr.bf16.mxu1 %v6962_v8 }
 0xb13   : > { %1941 = vadd.xlane.f32.xlu1 %v1940_v42  ;;  %6965 = vmatpush3.bf16.msra.mxu1 %v6962_v8  ;;  %v2140_v8 = vld [vmem:[#allocation10] sm:$0xff] }
 0xb14   : > { %6967 = vmatprep.subr.bf16.mxu1 %v6966_v52 }
 0xb17   : > { %6969 = vmatpush3.bf16.msra.mxu1 %v6966_v52 }
 0xb18   : > { %6974 = vmatprep.subr.bf16.mxu1 %v7655_v0 }
 0xb1a   : > { %6632 = vmatmul.mubr.msk.f32.vlgmr.msra.gmra.mrb[14].mxu1 %vm887_vm1, %v871_v54 }
 0xb1b   : > { %6645 = vmatprep.mubr.msk.f32.mxu1 %vm7656_vm0, %v7657_v1 }
 0xba0   : > { %v1942_v43 = vpop.xlane.xlu1 %1941 }
 0xba1   : > { %v1944_v44 = vmul.f32 0.03125, %v1942_v43 }
 0xba3   : > { %v1945_v45 = vsub.f32 %v1939_v41, %v1944_v44 }
 0xba5   : > { %v1946_v46 = vmul.f32 %v1945_v45, %v1945_v45 }
 0xba7   : > { %v1947_v47 = vsel %vm887_vm1, %v1946_v46, 0.0 }
 0xba8   : > { %1948 = vadd.xlane.f32.xlu1 %v1947_v47 }
 0xbed   : > { %v6633_v16 = vpop.f32.mrb[14].mxu1 }
 0xbee   : > { %v2137_v18 = vadd.f32 %v6633_v16, %v6237_v15  ;;  %v2131_v19 = vpop.f32.mrb[15].mxu1 }
 0xbef   : > { %v2132_v20 = vadd.f32 %v6237_v15, %v2131_v19 }
 0xbf1   : > { %v8288_v22 = vpack.i.bf16 %v2137_v18, %v2132_v20  ;;  %v6971_v23 = vpack.c.bf16 %v2137_v18, %v2132_v20  ;;  %v2141_v18 = vld [vmem:[#allocation10 + $0x8] sm:$0xff] }
 0xbf3   : > { %7216 = vrot.lane.b32.xlu0 %v8288_v22, %s8998_s4 }
 0xc35   : > { %v1949_v61 = vpop.xlane.xlu1 %1948 }
 0xc36   : > { %v1950_v62 = vmul.f32 0.03125, %v1949_v61 }
 0xc38   : > { %v1951_v2 = vadd.f32 1e-05, %v1950_v62 }
 0xc3a   : > { %7296 = vrsqrt.f32 %v1951_v2 }
 0xc44   : > { %v7297_v9 = vpop.eup %7296 }
 0xc45   : > { %v1953_v10 = vmul.f32 %v7297_v9, %v1945_v45 }
 0xc47   : > { %v1958_v13 = vmul.f32 %v1957_v7, %v1953_v10 }
 0xc49   : > { %v8273_v14 = vadd.f32 %v1962_v12, %v1958_v13 }
 0xc4b   : > { %6621 = vmatmul.mubr.msk.f32.vlgmr.msra.gmra.mrb[12].mxu0 %vm887_vm1, %v8273_v14 }
 0xc4c   : > { %6638 = vmatprep.mubr.msk.f32.mxu0 %vm7656_vm0, %v7657_v1  ;;  %6973 = vmatpush3.bf16.xpose.msk.msra.mxu0 %vm8284_vm3, %v6971_v23 }
 0xc4d   : > { %6982 = vmatprep.subr.bf16.mxu0 %v7655_v0 }
 0xc65   : > { %v7217_v43 = vpop.permute.xlu0 %7216 }
 0xc66   : > { %v7219_v45 = vunpack.i.h.bf16 %v7217_v43  ;;  %v7218_v46 = vunpack.i.l.bf16 %v7217_v43 }
 0xc68   : > { %v6979_v48 = vpack.c.bf16 %v7219_v45, %v7218_v46 }
 0xd1e   : > { %v2044_v25 = vpop.f32.mrb[12].mxu0 }
 0xd1f   : > { %v2045_v26 = vadd.f32 %v6235_v24, %v2044_v25  ;;  %v6622_v27 = vpop.f32.mrb[13].mxu0 }
 0xd21   : > { %2326 = vrot.lane.b32.xlu0 %v2045_v26, %s8998_s4  ;;  %6639 = vmatmul.mubr.msk.f32.vlgmr.msra.gmra.mrb[14].mxu0 %vm969_vm2, %v2045_v26  ;;  %s9094_s4 = smov 56  }
 0xd22   : > { %6659 = vmatprep.mubr.msk.f32.mxu0 %vm7656_vm0, %v7657_v1 }
 0xd93   : > { %v2327_v49 = vpop.permute.xlu0 %2326 }
 0xdf4   : > { %v2220_v28 = vpop.f32.mrb[14].mxu0 }
 0xdf5   : > { %v2224_v29 = vmul.f32 0.35355338, %v2220_v28  ;;  %v6640_v11 = vpop.f32.mrb[15].mxu0 }
 0xdf7   : > { %v2231_v30 = vadd.f32 %v8304_v17, %v2224_v29 }
 0xdf9   : > { %v2233_v31 = vsel %vm2232_vm4, %v2231_v30, -inf }
 0xdfa   : > { %2234 = vmax.xlane.f32.xlu1 %v2233_v31 }
 0xe87   : > { %v2235_v32 = vpop.xlane.xlu1 %2234 }
 0xe88   : > { %v2236_v33 = vsub.f32 %v2231_v30, %v2235_v32 }
 0xe8a   : > { %v2237_v34 = vmul.f32 1.442695, %v2236_v33 }
 0xe8c   : > { %7298 = vpow2.f32 %v2237_v34 }
 0xe96   : > { %v7299_v35 = vpop.eup %7298 }
 0xe97   : > { %v2239_v36 = vsel %vm2232_vm4, %v7299_v35, 0.0 }
 0xe98   : > { %2240 = vadd.xlane.f32.xlu1 %v2239_v36 }
 0xea9   : > { %7211 = vrot.lane.b32.xlu1 %v8288_v22, %s9000_s29  ;;  %s9086_s29 = sld [smem:[#allocation44_spill]] }
 0xf25   : > { %v2241_v37 = vpop.xlane.xlu1 %2240 }
 0xf26   : > { %7300 = vrcp.f32 %v2241_v37 }
 0xf29   : > { %v7212_v38 = vpop.permute.xlu1 %7211 }
 0xf2a   : > { %v7214_v39 = vunpack.i.h.bf16 %v7212_v38  ;;  %v7213_v40 = vunpack.i.l.bf16 %v7212_v38 }
 0xf2c   : > { %v6975_v42 = vpack.c.bf16 %v7214_v39, %v7213_v40 }
 0xf2e   : > { %6977 = vmatpush3.bf16.msk.msra.mxu1 %vm8311_vm7, %v6975_v42 }
 0xf2f   : > { %6978 = vmatprep.subr.bf16.mxu1 %v7655_v0 }
 0xf30   : > { %v7301_v44 = vpop.eup %7300 }
 0xf31   : > { %v2244_v47 = vmul.f32 %v7301_v44, %v7299_v35 }
 0xf33   : > { %6646 = vmatmul.mubr.msk.f32.vlgmr.msra.gmra.mrb[16].mxu1 %vm2232_vm4, %v2244_v47 }
 0xf34   : > { %6652 = vmatprep.mubr.msk.f32.mxu1 %vm7656_vm0, %v7657_v1 }
 0xf37   : > { %6981 = vmatpush3.bf16.xpose.msk.msra.mxu1 %vm8284_vm3, %v6979_v48 }
 0xf38   : > { %6667 = vmatprep.subr.mxu1 %v7657_v1 }
 0xf3e   : > { %6653 = vmatmul.mubr.msk.f32.vlgmr.msra.gmra.mrb[18].mxu1 %vm969_vm2, %v2327_v49 }
 0xf3f   : > { %6669 = vmatprep.mubr.msk.f32.mxu1 %vm7656_vm0, %v7657_v1  ;;  %6668 = vmatpush3.msra.mxu1 %v2140_v8 }
 0xf40   : > { %6990 = vmatprep.subr.bf16.mxu1 %v7655_v0 }
0x1006   : > { %v2322_v50 = vpop.f32.mrb[16].mxu1 }
0x1007   : > { %v6647_v51 = vpop.f32.mrb[17].mxu1  ;;  %6670 = vmatmul.mubr.msk.f32.vlgmr.msra.gmra.mrb[20].mxu1 %vm969_vm2, %v2322_v50 }
0x1008   : > { %6683 = vmatprep.mubr.msk.f32.mxu1 %vm7656_vm0, %v7657_v1 }
0x1011   : > { %v2404_v52 = vpop.f32.mrb[18].mxu1 }
0x1012   : > { %v2408_v54 = vmul.f32 0.35355338, %v2404_v52  ;;  %v6654_v55 = vpop.f32.mrb[19].mxu1 }
0x1014   : > { %v2409_v56 = vadd.f32 %v8304_v17, %v2408_v54 }
0x1016   : > { %v2410_v57 = vsel %vm2232_vm4, %v2409_v56, -inf }
0x1017   : > { %2411 = vmax.xlane.f32.xlu0 %v2410_v57 }
0x102d   : > { %7221 = vrot.lane.b32.xlu0 %v8288_v22, %s9002_s27  ;;  %s9087_s27 = smov 88  }
0x1031   : > { %2648 = vrot.lane.b32.xlu0 %v2045_v26, %s8994_s3 }
0x1035   : > { %7231 = vrot.lane.b32.xlu0 %v8288_v22, %s8992_s23 }
0x1039   : > { %2898 = vrot.lane.b32.xlu0 %v2045_v26, %s8992_s23  ;;  %s9091_s23 = smov 64  }
0x10a4   : > { %v2412_v58 = vpop.xlane.xlu0 %2411 }
0x10a5   : > { %v2413_v59 = vsub.f32 %v2409_v56, %v2412_v58 }
0x10a7   : > { %v2414_v60 = vmul.f32 1.442695, %v2413_v59 }
0x10a8   : > { %v7222_v61 = vpop.permute.xlu0 %7221 }
0x10a9   : > { %7302 = vpow2.f32 %v2414_v60  ;;  %v7224_v62 = vunpack.i.h.bf16 %v7222_v61  ;;  %v7223_v63 = vunpack.i.l.bf16 %v7222_v61 }
0x10ab   : > { %v6983_v2 = vpack.c.bf16 %v7224_v62, %v7223_v63  ;;  %v2142_v62 = vld [vmem:[#allocation10 + $0x10] sm:$0xff] }
0x10ac   : > { %v2649_v20 = vpop.permute.xlu0 %2648 }
0x10ad   : > { %6985 = vmatpush3.bf16.msk.msra.mxu0 %vm8311_vm7, %v6983_v2 }
0x10ae   : > { %6662 = vmatprep.subr.mxu0 %v7657_v1 }
0x10b0   : > { %v7232_v27 = vpop.permute.xlu0 %7231 }
0x10b1   : > { %v7234_v29 = vunpack.i.h.bf16 %v7232_v27  ;;  %v7233_v11 = vunpack.i.l.bf16 %v7232_v27 }
0x10b3   : > { %v7303_v7 = vpop.eup %7302  ;;  %v6995_v30 = vpack.c.bf16 %v7234_v29, %v7233_v11 }
0x10b4   : > { %v2416_v9 = vsel %vm2232_vm4, %v7303_v7, 0.0  ;;  %v2899_v31 = vpop.permute.xlu0 %2898 }
0x10b5   : > { %2417 = vadd.xlane.f32.xlu1 %v2416_v9 }
0x10c6   : > { %7226 = vrot.lane.b32.xlu1 %v8288_v22, %s8994_s3  ;;  %s9089_s3 = smov 120  }
0x10da   : > { %v2644_v10 = vpop.f32.mrb[20].mxu1 }
0x10db   : > { %v6671_v12 = vpop.f32.mrb[21].mxu1 }
0x1142   : > { %v2418_v13 = vpop.xlane.xlu1 %2417 }
0x1143   : > { %7304 = vrcp.f32 %v2418_v13 }
0x1146   : > { %v7227_v19 = vpop.permute.xlu1 %7226 }
0x1147   : > { %v7229_v23 = vunpack.i.h.bf16 %v7227_v19  ;;  %v7228_v24 = vunpack.i.l.bf16 %v7227_v19 }
0x1149   : > { %v6987_v25 = vpack.c.bf16 %v7229_v23, %v7228_v24 }
0x114d   : > { %v7305_v15 = vpop.eup %7304 }
0x114e   : > { %v2421_v16 = vmul.f32 %v7305_v15, %v7303_v7 }
0x1150   : > { %6660 = vmatmul.mubr.msk.f32.vlgmr.msra.gmra.mrb[16].mxu0 %vm2232_vm4, %v2421_v16  ;;  %v2143_v16 = vld [vmem:[#allocation10 + $0x18] sm:$0xff] }
0x1151   : > { %6663 = vmatpush3.msra.mxu0 %v2141_v18  ;;  %6664 = vmatprep.mubr.msk.f32.mxu0 %vm7656_vm0, %v7657_v1 }
0x1152   : > { %6986 = vmatprep.subr.bf16.mxu0 %v7655_v0 }
0x1223   : > { %v2498_v26 = vpop.f32.mrb[16].mxu0 }
0x1224   : > { %v6661_v28 = vpop.f32.mrb[17].mxu0  ;;  %6665 = vmatmul.mubr.msk.f32.vlgmr.msra.gmra.mrb[18].mxu0 %vm969_vm2, %v2498_v26 }
0x1225   : > { %6989 = vmatpush3.bf16.xpose.msk.msra.mxu0 %vm8284_vm3, %v6987_v25  ;;  %6676 = vmatprep.mubr.msk.f32.mxu0 %vm7656_vm0, %v7657_v1  ;;  %v6265_v25 = vld [vmem:[%s9082_s13] ss:$0 sm:$0xff] }
0x1226   : > { %6994 = vmatprep.subr.bf16.mxu0 %v7655_v0 }
0x122c   : > { %6677 = vmatmul.mubr.msk.f32.vlgmr.msra.gmra.mrb[20].mxu0 %vm969_vm2, %v2649_v20 }
0x122d   : > { %6997 = vmatpush3.bf16.xpose.msk.msra.mxu0 %vm8284_vm3, %v6995_v30  ;;  %6695 = vmatprep.mubr.msk.f32.mxu0 %vm7656_vm0, %v7657_v1 }
0x122e   : > { %7002 = vmatprep.subr.bf16.mxu0 %v7655_v0 }
0x1234   : > { %6696 = vmatmul.mubr.msk.f32.vlgmr.msra.gmra.mrb[22].mxu0 %vm969_vm2, %v2899_v31 }
0x1235   : > { %6718 = vmatprep.mubr.msk.f32.mxu0 %vm7656_vm0, %v7657_v1 }
0x12f7   : > { %v2571_v32 = vpop.f32.mrb[18].mxu0 }
0x12f8   : > { %v8364_v33 = vadd.f32 %v2644_v10, %v2571_v32  ;;  %v6666_v34 = vpop.f32.mrb[19].mxu0 }
0x12ff   : > { %v2726_v35 = vpop.f32.mrb[20].mxu0 }
0x1300   : > { %v2730_v36 = vmul.f32 0.35355338, %v2726_v35  ;;  %v6678_v37 = vpop.f32.mrb[21].mxu0 }
0x1301   : > { %v3180_v37 = vld [vmem:[#allocation11 + $0x8] sm:$0xff] }
0x1302   : > { %v2731_v38 = vadd.f32 %v8304_v17, %v2730_v36  ;;  %v3179_v36 = vld [vmem:[#allocation11] sm:$0xff] }
0x1304   : > { %v2732_v39 = vsel %vm2232_vm4, %v2731_v38, -inf }
0x1305   : > { %2733 = vmax.xlane.f32.xlu1 %v2732_v39  ;;  %v3181_v39 = vld [vmem:[#allocation11 + $0x10] sm:$0xff] }
0x1307   : > { %v2976_v40 = vpop.f32.mrb[22].mxu0 }
0x1308   : > { %v2980_v42 = vmul.f32 0.35355338, %v2976_v40  ;;  %v6697_v43 = vpop.f32.mrb[23].mxu0  ;;  %v3182_v40 = vld [vmem:[#allocation11 + $0x18] sm:$0xff] }
0x1309   : > { %v3265_v43 = vld [vmem:[%s9083_s9 + $0x8] sm:$0xff] }
0x130a   : > { %v2981_v44 = vadd.f32 %v8304_v17, %v2980_v42  ;;  %v7006_v42 = vpack.c.bf16 %v3182_v40, %v3181_v39 }
0x130c   : > { %v2982_v45 = vsel %vm2232_vm4, %v2981_v44, -inf }
0x130d   : > { %2983 = vmax.xlane.f32.xlu1 %v2982_v45 }
0x1392   : > { %v2734_v46 = vpop.xlane.xlu1 %2733 }
0x1393   : > { %v2735_v47 = vsub.f32 %v2731_v38, %v2734_v46  ;;  %v7003_v38 = vpack.c.bf16 %v3180_v37, %v3179_v36  ;;  %v3267_v46 = vld [vmem:[%s9083_s9 + $0x18] sm:$0xff] }
0x1395   : > { %v2736_v48 = vmul.f32 1.442695, %v2735_v47  ;;  %7004 = vmatpush3.bf16.msra.mxu0 %v7003_v38 }
0x1396   : > { %7005 = vmatprep.subr.bf16.mxu0 %v7655_v0 }
0x1397   : > { %7306 = vpow2.f32 %v2736_v48  ;;  %v3268_v48 = vld [vmem:[%s9083_s9 + $0x20] sm:$0xff] }
0x1399   : > { %7007 = vmatpush3.bf16.msra.mxu0 %v7006_v42  ;;  %v6276_v42 = vld [vmem:[#allocation8 + $0x1] ss:$0 sm:$0xff] }
0x139a   : > { %v2984_v49 = vpop.xlane.xlu1 %2983  ;;  %7020 = vmatprep.subr.bf16.mxu0 %v7655_v0 }
0x139b   : > { %v2985_v8 = vsub.f32 %v2981_v44, %v2984_v49  ;;  %v3266_v44 = vld [vmem:[%s9083_s9 + $0x10] sm:$0xff]  ;;  %v3269_v49 = vld [vmem:[%s9083_s9 + $0x28] sm:$0xff] }
0x139c   : > { %v7012_v47 = vpack.c.bf16 %v3267_v46, %v3266_v44 }
0x139d   : > { %v2986_v50 = vmul.f32 1.442695, %v2985_v8  ;;  %v7015_v8 = vpack.c.bf16 %v3269_v49, %v3268_v48 }
0x139f   : > { %7308 = vpow2.f32 %v2986_v50 }
0x13a1   : > { %v7307_v51 = vpop.eup %7306 }
0x13a2   : > { %v2738_v52 = vsel %vm2232_vm4, %v7307_v51, 0.0 }
0x13a3   : > { %2739 = vadd.xlane.f32.xlu0 %v2738_v52 }
0x13a9   : > { %v7309_v54 = vpop.eup %7308 }
0x13aa   : > { %v2988_v55 = vsel %vm2232_vm4, %v7309_v54, 0.0 }
0x13ab   : > { %2989 = vadd.xlane.f32.xlu1 %v2988_v55 }
0x13b9   : > { %7236 = vrot.lane.b32.xlu0 %v8288_v22, %s8996_s16  ;;  %s9088_s16 = smov 96  }
0x13bc   : > { %7241 = vrot.lane.b32.xlu1 %v8288_v22, %s8990_s28  ;;  %s9090_s28 = scalar_lea.vmem [#allocation5], %s8051_s15 }
0x13bd   : > { %v8502_v48 = vld [vmem:[%s9090_s28] sm:$0xff]  ;;  %s9097_s28 = smov 72  }
0x1430   : > { %v2740_v17 = vpop.xlane.xlu0 %2739 }
0x1431   : > { %7310 = vrcp.f32 %v2740_v17 }
0x1434   : > { %v7237_v56 = vpop.permute.xlu0 %7236 }
0x1435   : > { %v7239_v57 = vunpack.i.h.bf16 %v7237_v56  ;;  %v7238_v58 = vunpack.i.l.bf16 %v7237_v56 }
0x1437   : > { %v6991_v59 = vpack.c.bf16 %v7239_v57, %v7238_v58 }
0x1438   : > { %v2990_v22 = vpop.xlane.xlu1 %2989 }
0x1439   : > { %6993 = vmatpush3.bf16.msk.msra.mxu1 %vm8311_vm7, %v6991_v59  ;;  %7312 = vrcp.f32 %v2990_v22  ;;  %v6266_v22 = vld [vmem:[%s9084_s24] ss:$0 sm:$0xff]  ;;  %s9092_s24 = smov 80  }
0x143a   : > { %6686 = vmatprep.subr.mxu1 %v7657_v1 }
0x143b   : > { %v7311_v60 = vpop.eup %7310 }
0x143c   : > { %v2743_v61 = vmul.f32 %v7311_v60, %v7307_v51  ;;  %v7242_v63 = vpop.permute.xlu1 %7241  ;;  %v3270_v60 = vld [vmem:[%s9083_s9 + $0x30] sm:$0xff] }
0x143d   : > { %v7244_v2 = vunpack.i.h.bf16 %v7242_v63  ;;  %v7243_v7 = vunpack.i.l.bf16 %v7242_v63 }
0x143e   : > { %6684 = vmatmul.mubr.msk.f32.vlgmr.msra.gmra.mrb[22].mxu1 %vm2232_vm4, %v2743_v61  ;;  %v3271_v61 = vld [vmem:[%s9083_s9 + $0x38] sm:$0xff] }
0x143f   : > { %6687 = vmatpush3.msra.mxu1 %v2142_v62  ;;  %6688 = vmatprep.mubr.msk.f32.mxu1 %vm7656_vm0, %v7657_v1  ;;  %v6999_v10 = vpack.c.bf16 %v7244_v2, %v7243_v7  ;;  %v7018_v62 = vpack.c.bf16 %v3271_v61, %v3270_v60 }
0x1440   : > { %6998 = vmatprep.subr.bf16.mxu1 %v7655_v0 }
0x1443   : > { %v7313_v9 = vpop.eup %7312 }
0x1444   : > { %v2993_v15 = vmul.f32 %v7313_v9, %v7309_v54  ;;  %v8427_v54 = vsub.s32 1, %v8254_v3 }
0x1446   : > { %v3172_v55 = vrot.slane %v8262_v5, %v8427_v54  ;;  %v3177_v57 = vrot.slane %v8267_v6, %v8427_v54 }
0x1511   : > { %v2820_v12 = vpop.f32.mrb[22].mxu1 }
0x1512   : > { %v6685_v13 = vpop.f32.mrb[23].mxu1  ;;  %6689 = vmatmul.mubr.msk.f32.vlgmr.msra.gmra.mrb[24].mxu1 %vm969_vm2, %v2820_v12 }
0x1513   : > { %7001 = vmatpush3.bf16.msk.msra.mxu1 %vm8311_vm7, %v6999_v10  ;;  %6702 = vmatprep.mubr.msk.f32.mxu1 %vm7656_vm0, %v7657_v1  ;;  %v6268_v10 = vld [vmem:[%s9086_s29] ss:$0 sm:$0xff] }
0x1514   : > { %6705 = vmatprep.subr.mxu1 %v7657_v1 }
0x1516   : > { %6703 = vmatmul.mubr.msk.f32.vlgmr.msra.gmra.mrb[26].mxu1 %vm2232_vm4, %v2993_v15 }
0x1517   : > { %6707 = vmatprep.mubr.msk.f32.mxu1 %vm7656_vm0, %v7657_v1  ;;  %6706 = vmatpush3.msra.mxu1 %v2143_v16 }
0x1518   : > { %7008 = vmatprep.subr.bf16.mxu1 %v7655_v0 }
0x15e5   : > { %v2893_v18 = vpop.f32.mrb[24].mxu1 }
0x15e6   : > { %v2897_v19 = vadd.f32 %v2893_v18, %v8364_v33  ;;  %v6690_v20 = vpop.f32.mrb[25].mxu1 }
0x15e9   : > { %v3070_v23 = vpop.f32.mrb[26].mxu1 }
0x15ea   : > { %v6704_v24 = vpop.f32.mrb[27].mxu1  ;;  %6708 = vmatmul.mubr.msk.f32.vlgmr.msra.gmra.mrb[28].mxu1 %vm969_vm2, %v3070_v23 }
0x15eb   : > { %6737 = vmatprep.mubr.msk.f32.mxu1 %vm7656_vm0, %v7657_v1 }
0x16bd   : > { %v3143_v26 = vpop.f32.mrb[28].mxu1 }
0x16be   : > { %v3147_v27 = vadd.f32 %v3143_v26, %v2897_v19  ;;  %v6709_v28 = vpop.f32.mrb[29].mxu1  ;;  %v6272_v26 = vld [vmem:[%s9067_s18 + $0x20] sm:$0xff] }
0x16c0   : > { %v3154_v29 = vadd.f32 %v6265_v25, %v3147_v27  ;;  %v6273_v27 = vld [vmem:[%s9067_s18 + $0x28] sm:$0xff] }
0x16c1   : > { %v7021_v28 = vpack.c.bf16 %v6273_v27, %v6272_v26 }
0x16c2   : > { %v3155_v11 = vadd.f32 %v3154_v29, %v8273_v14  ;;  %v3264_v14 = vld [vmem:[%s9083_s9] sm:$0xff]  ;;  %v6274_v29 = vld [vmem:[%s9067_s18 + $0x30] sm:$0xff] }
0x16c3   : > { %v7009_v45 = vpack.c.bf16 %v3265_v43, %v3264_v14 }
0x16c4   : > { %v3156_v30 = vsel %vm887_vm1, %v3155_v11, 0.0 }
0x16c5   : > { %3157 = vadd.xlane.f32.xlu0 %v3156_v30  ;;  %7010 = vmatpush3.bf16.msra.mxu1 %v7009_v45 }
0x16c6   : > { %7011 = vmatprep.subr.bf16.mxu1 %v7655_v0 }
0x16c9   : > { %7013 = vmatpush3.bf16.msra.mxu1 %v7012_v47 }
0x16ca   : > { %7014 = vmatprep.subr.bf16.mxu1 %v7655_v0 }
0x16cd   : > { %7016 = vmatpush3.bf16.msra.mxu1 %v7015_v8 }
0x16ce   : > { %7017 = vmatprep.subr.bf16.mxu1 %v7655_v0 }
0x16d1   : > { %7019 = vmatpush3.bf16.msra.mxu1 %v7018_v62 }
0x16d2   : > { %6756 = vmatprep.subr.mxu1 %v7657_v1 }
0x1752   : > { %v3158_v31 = vpop.xlane.xlu0 %3157 }
0x1753   : > { %v3159_v32 = vmul.f32 0.03125, %v3158_v31 }
0x1755   : > { %v3160_v33 = vsub.f32 %v3155_v11, %v3159_v32  ;;  %v6275_v11 = vld [vmem:[%s9067_s18 + $0x38] sm:$0xff]  ;;  %s9099_s18 = scalar_lea.vmem [#allocation7], %s8048_s1 }
0x1756   : > { %v7024_v30 = vpack.c.bf16 %v6275_v11, %v6274_v29 }
0x1757   : > { %v3161_v34 = vmul.f32 %v3160_v33, %v3160_v33 }
0x1759   : > { %v3162_v35 = vsel %vm887_vm1, %v3161_v34, 0.0  ;;  %v8469_v34 = vsub.s32 2, %v8254_v3 }
0x175a   : > { %3163 = vadd.xlane.f32.xlu1 %v3162_v35 }
0x175b   : > { %v3370_v35 = vrot.slane %v8262_v5, %v8469_v34  ;;  %v3375_v38 = vrot.slane %v8267_v6, %v8469_v34 }
0x17e7   : > { %v3164_v50 = vpop.xlane.xlu1 %3163 }
0x17e8   : > { %v3165_v51 = vmul.f32 0.03125, %v3164_v50 }
0x17ea   : > { %v3166_v52 = vadd.f32 1e-05, %v3165_v51 }
0x17ec   : > { %7314 = vrsqrt.f32 %v3166_v52 }
0x17f6   : > { %v7315_v17 = vpop.eup %7314 }
0x17f7   : > { %v3168_v56 = vmul.f32 %v7315_v17, %v3160_v33 }
0x17f9   : > { %v3173_v58 = vmul.f32 %v3172_v55, %v3168_v56 }
0x17fb   : > { %v3178_v59 = vadd.f32 %v3177_v57, %v3173_v58 }
0x17fd   : > { %6719 = vmatmul.mubr.msk.f32.vlgmr.msra.gmra.mrb[24].mxu0 %vm887_vm1, %v3178_v59 }
0x17fe   : > { %6748 = vmatprep.mubr.msk.f32.mxu0 %vm7656_vm0, %v7657_v1  ;;  %7022 = vmatpush3.bf16.msra.mxu0 %v7021_v28 }
0x17ff   : > { %7023 = vmatprep.subr.bf16.mxu0 %v7655_v0 }
0x1802   : > { %7025 = vmatpush3.bf16.msra.mxu0 %v7024_v30 }
0x1803   : > { %6751 = vmatprep.subr.mxu0 %v7657_v1 }
0x18d0   : > { %v3259_v63 = vpop.f32.mrb[24].mxu0 }
0x18d1   : > { %v3260_v2 = vadd.f32 %v6266_v22, %v3259_v63  ;;  %v6720_v7 = vpop.f32.mrb[25].mxu0 }
0x18d3   : > { %v3263_v9 = vmax.f32 %v3260_v2, 0.0 }
0x18d5   : > { %6738 = vmatmul.mubr.msk.f32.vlgmr.msra.gmra.mrb[30].mxu1 %vm3279_vm8, %v3263_v9  ;;  %v6279_v9 = vld [vmem:[%s9068_s2 + $0x28] sm:$0xff] }
0x18d6   : > { %6758 = vmatprep.mubr.msk.f32.mxu1 %vm7656_vm0, %v7657_v1 }
0x19a8   : > { %v3349_v12 = vpop.f32.mrb[30].mxu1 }
0x19a9   : > { %v3350_v13 = vadd.f32 %v6268_v10, %v3349_v12  ;;  %v6739_v15 = vpop.f32.mrb[31].mxu1 }
0x19ab   : > { %v3353_v16 = vadd.f32 %v3350_v13, %v3178_v59 }
0x19ad   : > { %v3354_v18 = vsel %vm887_vm1, %v3353_v16, 0.0 }
0x19ae   : > { %3355 = vadd.xlane.f32.xlu0 %v3354_v18 }
0x1a3b   : > { %v3356_v19 = vpop.xlane.xlu0 %3355 }
0x1a3c   : > { %v3357_v20 = vmul.f32 0.03125, %v3356_v19 }
0x1a3e   : > { %v3358_v23 = vsub.f32 %v3353_v16, %v3357_v20  ;;  %v6278_v20 = vld [vmem:[%s9068_s2 + $0x20] sm:$0xff] }
0x1a40   : > { %v3359_v24 = vmul.f32 %v3358_v23, %v3358_v23 }
0x1a42   : > { %v3360_v25 = vsel %vm887_vm1, %v3359_v24, 0.0 }
0x1a43   : > { %3361 = vadd.xlane.f32.xlu0 %v3360_v25 }
0x1ad0   : > { %v3362_v31 = vpop.xlane.xlu0 %3361 }
0x1ad1   : > { %v3363_v32 = vmul.f32 0.03125, %v3362_v31 }
0x1ad3   : > { %v3364_v33 = vadd.f32 1e-05, %v3363_v32 }
0x1ad5   : > { %7316 = vrsqrt.f32 %v3364_v33 }
0x1adf   : > { %v7317_v36 = vpop.eup %7316 }
0x1ae0   : > { %v3366_v37 = vmul.f32 %v7317_v36, %v3358_v23 }
0x1ae2   : > { %v3371_v39 = vmul.f32 %v3370_v35, %v3366_v37 }
0x1ae4   : > { %v8475_v40 = vadd.f32 %v3375_v38, %v3371_v39 }
0x1ae6   : > { %6749 = vmatmul.mubr.msk.f32.vlgmr.msra.gmra.mrb[26].mxu0 %vm887_vm1, %v8475_v40 }
0x1ae7   : > { %6753 = vmatprep.mubr.msk.f32.mxu0 %vm7656_vm0, %v7657_v1 }
0x1bb9   : > { %v3463_v3 = vpop.f32.mrb[26].mxu0 }
0x1bba   : > { %v8481_v14 = vadd.f32 %v6276_v42, %v3463_v3  ;;  %v6750_v43 = vpop.f32.mrb[27].mxu0 }
0x1bbc   : > { %3643 = vrot.lane.b32.xlu1 %v8481_v14, %s9087_s27  ;;  %3475 = vrot.lane.b32.xlu0 %v8481_v14, %s9088_s16 }
0x1bc0   : > { %3641 = vrot.lane.b32.xlu1 %v8481_v14, %s9089_s3 }
0x1c2e   : > { %v3476_v5 = vpop.permute.xlu0 %3475  ;;  %v3644_v6 = vpop.permute.xlu1 %3643 }
0x1c2f   : > { %6752 = vmatpush3.xpose.msk.msra.mxu0 %vm969_vm2, %v3476_v5 }
0x1c30   : > { %6761 = vmatprep.subr.mxu0 %v7657_v1 }
0x1c32   : > { %6754 = vmatmul.mubr.msk.f32.vlgmr.msra.gmra.mrb[28].mxu0 %vm969_vm2, %v8481_v14  ;;  %v3642_v44 = vpop.permute.xlu1 %3641 }
0x1c33   : > { %6762 = vmatpush3.xpose.msk.msra.mxu0 %vm969_vm2, %v3644_v6  ;;  %6763 = vmatprep.mubr.msk.f32.mxu0 %vm7656_vm0, %v7657_v1 }
0x1c34   : > { %6771 = vmatprep.subr.mxu0 %v7657_v1 }
0x1c36   : > { %6764 = vmatmul.mubr.msk.f32.vlgmr.msra.gmra.mrb[30].mxu0 %vm969_vm2, %v3642_v44 }
0x1c37   : > { %6773 = vmatprep.mubr.msk.f32.mxu0 %vm7656_vm0, %v7657_v1  ;;  %6772 = vmatpush3.msra.mxu0 %v6279_v9 }
0x1c38   : > { %6781 = vmatprep.subr.mxu0 %v7657_v1 }
0x1d05   : > { %v3547_v45 = vpop.f32.mrb[28].mxu0 }
0x1d06   : > { %v3551_v46 = vmul.f32 0.35355338, %v3547_v45  ;;  %v6755_v47 = vpop.f32.mrb[29].mxu0 }
0x1d08   : > { %v3552_v49 = vadd.f32 %v8502_v48, %v3551_v46 }
0x1d09   : > { %v3715_v8 = vpop.f32.mrb[30].mxu0 }
0x1d0a   : > { %v3719_v50 = vmul.f32 0.35355338, %v3715_v8  ;;  %v6765_v51 = vpop.f32.mrb[31].mxu0  ;;  %v3553_v52 = vsel %vm969_vm2, %v3552_v49, -inf  ;;  %v6280_v8 = vld [vmem:[%s9068_s2 + $0x30] sm:$0xff] }
0x1d0b   : > { %3554 = vmax.xlane.f32.xlu0 %v3553_v52 }
0x1d0c   : > { %v3720_v55 = vadd.f32 %v8502_v48, %v3719_v50 }
0x1d0e   : > { %v3721_v17 = vsel %vm969_vm2, %v3720_v55, -inf }
0x1d0f   : > { %3722 = vmax.xlane.f32.xlu1 %v3721_v17 }
0x1d20   : > { %3565 = vrot.lane.b32.xlu1 %v8481_v14, %s9091_s23  ;;  %s9095_s23 = smov 48  }
0x1d24   : > { %3957 = vrot.lane.b32.xlu1 %v8481_v14, %s9092_s24 }
0x1d28   : > { %3955 = vrot.lane.b32.xlu1 %v8481_v14, %s9093_s8 }
0x1d98   : > { %v3555_v56 = vpop.xlane.xlu0 %3554 }
0x1d99   : > { %v3556_v57 = vsub.f32 %v3552_v49, %v3555_v56 }
0x1d9b   : > { %v3557_v58 = vmul.f32 1.442695, %v3556_v57 }
0x1d9c   : > { %v3723_v59 = vpop.xlane.xlu1 %3722 }
0x1d9d   : > { %7318 = vpow2.f32 %v3557_v58  ;;  %v3724_v60 = vsub.f32 %v3720_v55, %v3723_v59 }
0x1d9f   : > { %v3725_v61 = vmul.f32 1.442695, %v3724_v60 }
0x1da0   : > { %v3566_v62 = vpop.permute.xlu1 %3565 }
0x1da1   : > { %7320 = vpow2.f32 %v3725_v61  ;;  %6757 = vmatpush3.msra.mxu1 %v3566_v62 }
0x1da2   : > { %6766 = vmatprep.subr.mxu1 %v7657_v1 }
0x1da4   : > { %v3958_v25 = vpop.permute.xlu1 %3957 }
0x1da7   : > { %v7319_v22 = vpop.eup %7318 }
0x1da8   : > { %v3559_v63 = vsel %vm969_vm2, %v7319_v22, 0.0  ;;  %v3956_v28 = vpop.permute.xlu1 %3955 }
0x1da9   : > { %3560 = vadd.xlane.f32.xlu0 %v3559_v63 }
0x1dab   : > { %v7321_v2 = vpop.eup %7320 }
0x1dac   : > { %v3727_v7 = vsel %vm969_vm2, %v7321_v2, 0.0 }
0x1dad   : > { %3728 = vadd.xlane.f32.xlu0 %v3727_v7 }
0x1dc3   : > { %3733 = vrot.lane.b32.xlu0 %v8481_v14, %s9094_s4  ;;  %s9096_s4 = smov 104  }
0x1e36   : > { %v3561_v10 = vpop.xlane.xlu0 %3560 }
0x1e37   : > { %7322 = vrcp.f32 %v3561_v10 }
0x1e3a   : > { %v3729_v12 = vpop.xlane.xlu0 %3728 }
0x1e3b   : > { %7324 = vrcp.f32 %v3729_v12 }
0x1e3e   : > { %v3734_v16 = vpop.permute.xlu0 %3733 }
0x1e41   : > { %v7323_v13 = vpop.eup %7322 }
0x1e42   : > { %v3564_v15 = vmul.f32 %v7323_v13, %v7319_v22  ;;  %v6281_v22 = vld [vmem:[%s9068_s2 + $0x38] sm:$0xff]  ;;  %s7672_s2 = smov 30  }
0x1e44   : > { %6759 = vmatmul.mubr.msk.f32.vlgmr.msra.gmra.mrb[32].mxu1 %vm969_vm2, %v3564_v15  ;;  %v6299_v15 = vld [vmem:[%s9069_s21 + $0x1] ss:$0 sm:$0xff]  ;;  %s7671_s21 = smov 10  }
0x1e45   : > { %v7325_v18 = vpop.eup %7324  ;;  %6767 = vmatpush3.msra.mxu1 %v3734_v16  ;;  %6768 = vmatprep.mubr.msk.f32.mxu1 %vm7656_vm0, %v7657_v1 }
0x1e46   : > { %v3732_v19 = vmul.f32 %v7325_v18, %v7321_v2  ;;  %6776 = vmatprep.subr.mxu1 %v7657_v1 }
0x1e48   : > { %6769 = vmatmul.mubr.msk.f32.vlgmr.msra.gmra.mrb[34].mxu1 %vm969_vm2, %v3732_v19 }
0x1e49   : > { %6778 = vmatprep.mubr.msk.f32.mxu1 %vm7656_vm0, %v7657_v1  ;;  %6777 = vmatpush3.msra.mxu1 %v6278_v20 }
0x1e4a   : > { %6786 = vmatprep.subr.mxu1 %v7657_v1 }
0x1f17   : > { %v3637_v23 = vpop.f32.mrb[32].mxu1 }
0x1f18   : > { %v6760_v24 = vpop.f32.mrb[33].mxu1  ;;  %6779 = vmatmul.mubr.msk.f32.vlgmr.msra.gmra.mrb[36].mxu1 %vm969_vm2, %v3637_v23 }
0x1f19   : > { %6788 = vmatprep.mubr.msk.f32.mxu1 %vm7656_vm0, %v7657_v1 }
0x1f1b   : > { %v3805_v26 = vpop.f32.mrb[34].mxu1 }
0x1f1c   : > { %v6770_v27 = vpop.f32.mrb[35].mxu1  ;;  %6774 = vmatmul.mubr.msk.f32.vlgmr.msra.gmra.mrb[32].mxu0 %vm969_vm2, %v3805_v26 }
0x1f1d   : > { %6782 = vmatpush3.xpose.msk.msra.mxu0 %vm969_vm2, %v3958_v25  ;;  %6783 = vmatprep.mubr.msk.f32.mxu0 %vm7656_vm0, %v7657_v1 }
0x1f1e   : > { %6791 = vmatprep.subr.mxu0 %v7657_v1 }
0x1f20   : > { %6784 = vmatmul.mubr.msk.f32.vlgmr.msra.gmra.mrb[34].mxu0 %vm969_vm2, %v3956_v28 }
0x1f21   : > { %6793 = vmatprep.mubr.msk.f32.mxu0 %vm7656_vm0, %v7657_v1  ;;  %6792 = vmatpush3.msra.mxu0 %v6280_v8 }
0x1f22   : > { %6801 = vmatprep.subr.mxu0 %v7657_v1 }
0x1feb   : > { %v3951_v29 = vpop.f32.mrb[36].mxu1 }
0x1fec   : > { %v6780_v11 = vpop.f32.mrb[37].mxu1 }
0x1fed   : > { %v6308_v11 = vld [vmem:[%s8928_s10 + $0x28] sm:$0xff] }
0x1fef   : > { %v3878_v30 = vpop.f32.mrb[32].mxu0 }
0x1ff0   : > { %v3952_v31 = vadd.f32 %v3951_v29, %v3878_v30  ;;  %v6775_v32 = vpop.f32.mrb[33].mxu0  ;;  %v6307_v29 = vld [vmem:[%s8928_s10 + $0x20] sm:$0xff]  ;;  %v6309_v30 = vld [vmem:[%s8928_s10 + $0x30] sm:$0xff] }
0x1ff3   : > { %v4029_v33 = vpop.f32.mrb[34].mxu0 }
0x1ff4   : > { %v4033_v35 = vmul.f32 0.35355338, %v4029_v33  ;;  %v6785_v36 = vpop.f32.mrb[35].mxu0  ;;  %v7357_v33 = vld [vmem:[%s8228_s7 + $0x8] sm:$0x3]  ;;  %s7537_s7 = sshll.u32 %s7673_s22, 4  ;;  %s7538_s7 = int_to_ptr.vmem [resolvable:$false] %s7537_s7 }
0x1ff5   : > { %v6301_v36 = vld [vmem:[%s9071_s0 + $0x28] sm:$0xff] }
0x1ff6   : > { %v4034_v37 = vadd.f32 %v8502_v48, %v4033_v35  ;;  %v6300_v35 = vld [vmem:[%s9071_s0 + $0x20] sm:$0xff] }
0x1ff8   : > { %v4035_v38 = vsel %vm969_vm2, %v4034_v37, -inf }
0x1ff9   : > { %4036 = vmax.xlane.f32.xlu0 %v4035_v38  ;;  %v6302_v38 = vld [vmem:[%s9071_s0 + $0x30] sm:$0xff] }
0x200f   : > { %4047 = vrot.lane.b32.xlu0 %v8481_v14, %s9095_s23 }
0x2013   : > { %4197 = vrot.lane.b32.xlu0 %v8481_v14, %s9096_s4 }
0x2086   : > { %v4037_v39 = vpop.xlane.xlu0 %4036 }
0x2087   : > { %v4038_v42 = vsub.f32 %v4034_v37, %v4037_v39  ;;  %v7027_v37 = vpack.c.bf16 %v6301_v36, %v6300_v35  ;;  %v6303_v39 = vld [vmem:[%s9071_s0 + $0x38] sm:$0xff] }
0x2089   : > { %v4039_v3 = vmul.f32 1.442695, %v4038_v42  ;;  %v7030_v42 = vpack.c.bf16 %v6303_v39, %v6302_v38 }
0x208a   : > { %v4048_v43 = vpop.permute.xlu0 %4047 }
0x208b   : > { %7326 = vpow2.f32 %v4039_v3  ;;  %6787 = vmatpush3.msra.mxu1 %v4048_v43 }
0x208c   : > { %6796 = vmatprep.subr.mxu1 %v7657_v1 }
0x208e   : > { %v4198_v49 = vpop.permute.xlu0 %4197 }
0x2095   : > { %v7327_v5 = vpop.eup %7326 }
0x2096   : > { %v4041_v6 = vsel %vm969_vm2, %v7327_v5, 0.0 }
0x2097   : > { %4042 = vadd.xlane.f32.xlu1 %v4041_v6  ;;  %v8625_v6 = vld [vmem:[%s9072_s19 + $0x4] sm:$0x7] }
0x20a8   : > { %4199 = vrot.lane.b32.xlu1 %v8481_v14, %s9097_s28 }
0x2124   : > { %v4043_v44 = vpop.xlane.xlu1 %4042 }
0x2125   : > { %7328 = vrcp.f32 %v4043_v44  ;;  %v8630_v44 = vld [vmem:[%s9074_s6 + $0x4] sm:$0x7] }
0x2128   : > { %v4200_v47 = vpop.permute.xlu1 %4199 }
0x212f   : > { %v7329_v45 = vpop.eup %7328 }
0x2130   : > { %v4046_v46 = vmul.f32 %v7329_v45, %v7327_v5  ;;  %v4463_v45 = vrot.slane %v8625_v6, %v8257_v4 }
0x2132   : > { %6789 = vmatmul.mubr.msk.f32.vlgmr.msra.gmra.mrb[38].mxu1 %vm969_vm2, %v4046_v46 }
0x2133   : > { %6797 = vmatpush3.xpose.msk.msra.mxu1 %vm969_vm2, %v4200_v47  ;;  %6798 = vmatprep.mubr.msk.f32.mxu1 %vm7656_vm0, %v7657_v1 }
0x2134   : > { %6806 = vmatprep.subr.mxu1 %v7657_v1 }
0x2136   : > { %6799 = vmatmul.mubr.msk.f32.vlgmr.msra.gmra.mrb[40].mxu1 %vm969_vm2, %v4198_v49  ;;  %v4468_v49 = vrot.slane %v8630_v44, %v8257_v4 }
0x2137   : > { %6808 = vmatprep.mubr.msk.f32.mxu1 %vm7656_vm0, %v7657_v1  ;;  %6807 = vmatpush3.msra.mxu1 %v6281_v22 }
0x2205   : > { %v4119_v50 = vpop.f32.mrb[38].mxu1 }
0x2206   : > { %v6790_v51 = vpop.f32.mrb[39].mxu1  ;;  %6794 = vmatmul.mubr.msk.f32.vlgmr.msra.gmra.mrb[36].mxu0 %vm969_vm2, %v4119_v50 }
0x2207   : > { %6803 = vmatprep.mubr.msk.f32.mxu0 %vm7656_vm0, %v7657_v1  ;;  %v6312_v51 = vld [vmem:[%s9075_s17 + $0x1] ss:$0 sm:$0xff] }
0x2209   : > { %v4271_v52 = vpop.f32.mrb[40].mxu1 }
0x220a   : > { %v4275_v55 = vmul.f32 0.35355338, %v4271_v52  ;;  %v6800_v17 = vpop.f32.mrb[41].mxu1 }
0x220c   : > { %v4276_v56 = vadd.f32 %v8502_v48, %v4275_v55 }
0x220e   : > { %v4277_v57 = vsel %vm969_vm2, %v4276_v56, -inf }
0x220f   : > { %4278 = vmax.xlane.f32.xlu1 %v4277_v57 }
0x229c   : > { %v4279_v58 = vpop.xlane.xlu1 %4278 }
0x229d   : > { %v4280_v59 = vsub.f32 %v4276_v56, %v4279_v58  ;;  %v6305_v58 = vld [vmem:[%s9079_s26 + $0x1] ss:$0 sm:$0xff] }
0x229f   : > { %v4281_v60 = vmul.f32 1.442695, %v4280_v59 }
0x22a1   : > { %7330 = vpow2.f32 %v4281_v60 }
0x22ab   : > { %v7331_v61 = vpop.eup %7330 }
0x22ac   : > { %v4283_v62 = vsel %vm969_vm2, %v7331_v61, 0.0 }
0x22ad   : > { %4284 = vadd.xlane.f32.xlu0 %v4283_v62 }
0x22c3   : > { %4289 = vrot.lane.b32.xlu0 %v8481_v14, %s9098_s11  ;;  %s9100_s11 = sld [smem:[#allocation47_spill]] }
0x22d9   : > { %v4192_v48 = vpop.f32.mrb[36].mxu0 }
0x22da   : > { %v4196_v63 = vadd.f32 %v4192_v48, %v3952_v31  ;;  %v6795_v2 = vpop.f32.mrb[37].mxu0  ;;  %v6310_v31 = vld [vmem:[%s8928_s10 + $0x38] sm:$0xff] }
0x22db   : > { %v7036_v32 = vpack.c.bf16 %v6310_v31, %v6309_v30 }
0x233a   : > { %v4285_v7 = vpop.xlane.xlu0 %4284 }
0x233b   : > { %7332 = vrcp.f32 %v4285_v7 }
0x233e   : > { %v4290_v9 = vpop.permute.xlu0 %4289 }
0x233f   : > { %6802 = vmatpush3.msra.mxu0 %v4290_v9 }
0x2340   : > { %7026 = vmatprep.subr.bf16.mxu0 %v7655_v0 }
0x2345   : > { %v7333_v10 = vpop.eup %7332 }
0x2346   : > { %v4288_v12 = vmul.f32 %v7333_v10, %v7331_v61 }
0x2348   : > { %6804 = vmatmul.mubr.msk.f32.vlgmr.msra.gmra.mrb[38].mxu0 %vm969_vm2, %v4288_v12 }
0x2349   : > { %6819 = vmatprep.mubr.msk.f32.mxu0 %vm7656_vm0, %v7657_v1  ;;  %7028 = vmatpush3.bf16.msra.mxu0 %v7027_v37 }
0x234a   : > { %7029 = vmatprep.subr.bf16.mxu0 %v7655_v0 }
0x234d   : > { %7031 = vmatpush3.bf16.msra.mxu0 %v7030_v42 }
0x234e   : > { %7040 = vmatprep.subr.bf16.mxu0 %v7655_v0 }
0x241b   : > { %v4361_v14 = vpop.f32.mrb[38].mxu0 }
0x241c   : > { %v6805_v13 = vpop.f32.mrb[39].mxu0  ;;  %6809 = vmatmul.mubr.msk.f32.vlgmr.msra.gmra.mrb[42].mxu1 %vm969_vm2, %v4361_v14 }
0x241d   : > { %6830 = vmatprep.mubr.msk.f32.mxu1 %vm887_vm1, %v8231_v53 }
0x24ef   : > { %v4434_v16 = vpop.f32.mrb[42].mxu1 }
0x24f0   : > { %v4438_v18 = vadd.f32 %v4434_v16, %v4196_v63  ;;  %v6810_v19 = vpop.f32.mrb[43].mxu1  ;;  %v8665_v63 = vld [vmem:[%s9099_s18] ss:$0 sm:$0xff]  ;;  %s7539_s18 = scalar_lea.vmem %s7538_s7, 256 }
0x24f2   : > { %v4445_v20 = vadd.f32 %v6299_v15, %v4438_v18 }
0x24f4   : > { %v4446_v23 = vadd.f32 %v4445_v20, %v8475_v40  ;;  %v7032_v40 = vpack.c.bf16 %v6308_v11, %v6307_v29  ;;  %v4645_v29 = vld [vmem:[#allocation10 + $0x20] sm:$0xff] }
0x24f6   : > { %v4447_v24 = vsel %vm887_vm1, %v4446_v23, 0.0  ;;  %7033 = vmatprep.subr.bf16.mxu1 %v7032_v40 }
0x24f7   : > { %4448 = vadd.xlane.f32.xlu1 %v4447_v24  ;;  %7035 = vmatpush3.bf16.msra.mxu1 %v7032_v40 }
0x24f8   : > { %7037 = vmatprep.subr.bf16.mxu1 %v7036_v32 }
0x24fb   : > { %7039 = vmatpush3.bf16.msra.mxu1 %v7036_v32 }
0x24fc   : > { %7044 = vmatprep.subr.bf16.mxu1 %v7655_v0 }
0x24fe   : > { %6831 = vmatmul.mubr.msk.f32.vlgmr.msra.gmra.mrb[44].mxu1 %vm887_vm1, %v7357_v33 }
0x24ff   : > { %6844 = vmatprep.mubr.msk.f32.mxu1 %vm7656_vm0, %v7657_v1 }
0x2584   : > { %v4449_v25 = vpop.xlane.xlu1 %4448 }
0x2585   : > { %v4450_v26 = vmul.f32 0.03125, %v4449_v25 }
0x2587   : > { %v4451_v27 = vsub.f32 %v4446_v23, %v4450_v26 }
0x2589   : > { %v4452_v28 = vmul.f32 %v4451_v27, %v4451_v27 }
0x258b   : > { %v4453_v53 = vsel %vm887_vm1, %v4452_v28, 0.0 }
0x258c   : > { %4454 = vadd.xlane.f32.xlu1 %v4453_v53 }
0x25d1   : > { %v6832_v52 = vpop.f32.mrb[44].mxu1 }
0x25d2   : > { %v4641_v55 = vadd.f32 %v6832_v52, %v6312_v51  ;;  %v4635_v17 = vpop.f32.mrb[45].mxu1  ;;  %v4646_v52 = vld [vmem:[#allocation10 + $0x28] sm:$0xff] }
0x25d3   : > { %v4636_v56 = vadd.f32 %v6312_v51, %v4635_v17 }
0x25d5   : > { %v8645_v57 = vpack.i.bf16 %v4641_v55, %v4636_v56  ;;  %v7041_v4 = vpack.c.bf16 %v4641_v55, %v4636_v56 }
0x25d7   : > { %7251 = vrot.lane.b32.xlu0 %v8645_v57, %s9089_s3 }
0x2619   : > { %v4455_v3 = vpop.xlane.xlu1 %4454 }
0x261a   : > { %v4456_v43 = vmul.f32 0.03125, %v4455_v3 }
0x261c   : > { %v4457_v5 = vadd.f32 1e-05, %v4456_v43 }
0x261e   : > { %7334 = vrsqrt.f32 %v4457_v5 }
0x2628   : > { %v7335_v46 = vpop.eup %7334 }
0x2629   : > { %v4459_v47 = vmul.f32 %v7335_v46, %v4451_v27 }
0x262b   : > { %v4464_v8 = vmul.f32 %v4463_v45, %v4459_v47 }
0x262d   : > { %v8636_v50 = vadd.f32 %v4468_v49, %v4464_v8 }
0x262f   : > { %6820 = vmatmul.mubr.msk.f32.vlgmr.msra.gmra.mrb[40].mxu0 %vm887_vm1, %v8636_v50 }
0x2630   : > { %6837 = vmatprep.mubr.msk.f32.mxu0 %vm7656_vm0, %v7657_v1  ;;  %7043 = vmatpush3.bf16.xpose.msk.msra.mxu0 %vm8284_vm3, %v7041_v4 }
0x2631   : > { %7052 = vmatprep.subr.bf16.mxu0 %v7655_v0 }
0x2649   : > { %v7252_v23 = vpop.permute.xlu0 %7251 }
0x264a   : > { %v7254_v25 = vunpack.i.h.bf16 %v7252_v23  ;;  %v7253_v26 = vunpack.i.l.bf16 %v7252_v23 }
0x264c   : > { %v7049_v28 = vpack.c.bf16 %v7254_v25, %v7253_v26 }
0x2702   : > { %v4552_v59 = vpop.f32.mrb[40].mxu0 }
0x2703   : > { %v8655_v60 = vadd.f32 %v6305_v58, %v4552_v59  ;;  %v6821_v61 = vpop.f32.mrb[41].mxu0 }
0x2705   : > { %4824 = vrot.lane.b32.xlu0 %v8655_v60, %s9089_s3  ;;  %6838 = vmatmul.mubr.msk.f32.vlgmr.msra.gmra.mrb[42].mxu0 %vm969_vm2, %v8655_v60  ;;  %s7670_s3 = smov 20  }
0x2706   : > { %6858 = vmatprep.mubr.msk.f32.mxu0 %vm7656_vm0, %v7657_v1 }
0x2777   : > { %v4825_v53 = vpop.permute.xlu0 %4824 }
0x27d8   : > { %v4726_v62 = vpop.f32.mrb[42].mxu0 }
0x27d9   : > { %v4730_v22 = vmul.f32 0.35355338, %v4726_v62  ;;  %v6839_v48 = vpop.f32.mrb[43].mxu0 }
0x27db   : > { %v4731_v2 = vadd.f32 %v8665_v63, %v4730_v22 }
0x27dd   : > { %v4732_v7 = vsel %vm2232_vm4, %v4731_v2, -inf }
0x27de   : > { %4733 = vmax.xlane.f32.xlu1 %v4732_v7 }
0x286b   : > { %v4734_v9 = vpop.xlane.xlu1 %4733 }
0x286c   : > { %v4735_v10 = vsub.f32 %v4731_v2, %v4734_v9 }
0x286e   : > { %v4736_v12 = vmul.f32 1.442695, %v4735_v10 }
0x2870   : > { %7336 = vpow2.f32 %v4736_v12 }
0x287a   : > { %v7337_v14 = vpop.eup %7336 }
0x287b   : > { %v4738_v13 = vsel %vm2232_vm4, %v7337_v14, 0.0 }
0x287c   : > { %4739 = vadd.xlane.f32.xlu1 %v4738_v13 }
0x288d   : > { %7246 = vrot.lane.b32.xlu1 %v8645_v57, %s9088_s16 }
0x2909   : > { %v4740_v15 = vpop.xlane.xlu1 %4739 }
0x290a   : > { %7338 = vrcp.f32 %v4740_v15 }
0x290d   : > { %v7247_v16 = vpop.permute.xlu1 %7246 }
0x290e   : > { %v7249_v18 = vunpack.i.h.bf16 %v7247_v16  ;;  %v7248_v19 = vunpack.i.l.bf16 %v7247_v16 }
0x2910   : > { %v7045_v20 = vpack.c.bf16 %v7249_v18, %v7248_v19 }
0x2912   : > { %7047 = vmatpush3.bf16.msk.msra.mxu1 %vm8311_vm7, %v7045_v20 }
0x2913   : > { %7048 = vmatprep.subr.bf16.mxu1 %v7655_v0 }
0x2914   : > { %v7339_v24 = vpop.eup %7338 }
0x2915   : > { %v8675_v27 = vmul.f32 %v7339_v24, %v7337_v14 }
0x2917   : > { %6845 = vmatmul.mubr.msk.f32.vlgmr.msra.gmra.mrb[46].mxu1 %vm2232_vm4, %v8675_v27 }
0x2918   : > { %6851 = vmatprep.mubr.msk.f32.mxu1 %vm7656_vm0, %v7657_v1 }
0x291b   : > { %7051 = vmatpush3.bf16.xpose.msk.msra.mxu1 %vm8284_vm3, %v7049_v28 }
0x291c   : > { %6866 = vmatprep.subr.mxu1 %v7657_v1 }
0x2922   : > { %6852 = vmatmul.mubr.msk.f32.vlgmr.msra.gmra.mrb[48].mxu1 %vm969_vm2, %v4825_v53 }
0x2923   : > { %6868 = vmatprep.mubr.msk.f32.mxu1 %vm7656_vm0, %v7657_v1  ;;  %6867 = vmatpush3.msra.mxu1 %v4645_v29 }
0x2924   : > { %7060 = vmatprep.subr.bf16.mxu1 %v7655_v0 }
0x29ea   : > { %v4820_v11 = vpop.f32.mrb[46].mxu1 }
0x29eb   : > { %v6846_v40 = vpop.f32.mrb[47].mxu1  ;;  %6869 = vmatmul.mubr.msk.f32.vlgmr.msra.gmra.mrb[50].mxu1 %vm969_vm2, %v4820_v11 }
0x29ec   : > { %6882 = vmatprep.mubr.msk.f32.mxu1 %vm7656_vm0, %v7657_v1 }
0x29f5   : > { %v4902_v30 = vpop.f32.mrb[48].mxu1 }
0x29f6   : > { %v4906_v31 = vmul.f32 0.35355338, %v4902_v30  ;;  %v6853_v32 = vpop.f32.mrb[49].mxu1 }
0x29f8   : > { %v4907_v33 = vadd.f32 %v8665_v63, %v4906_v31 }
0x29fa   : > { %v4908_v35 = vsel %vm2232_vm4, %v4907_v33, -inf }
0x29fb   : > { %4909 = vmax.xlane.f32.xlu0 %v4908_v35 }
0x2a11   : > { %7256 = vrot.lane.b32.xlu0 %v8645_v57, %s9087_s27 }
0x2a15   : > { %5146 = vrot.lane.b32.xlu0 %v8655_v60, %s9093_s8 }
0x2a19   : > { %7266 = vrot.lane.b32.xlu0 %v8645_v57, %s9096_s4 }
0x2a88   : > { %v4910_v36 = vpop.xlane.xlu0 %4909 }
0x2a89   : > { %v4911_v37 = vsub.f32 %v4907_v33, %v4910_v36 }
0x2a8b   : > { %v4912_v38 = vmul.f32 1.442695, %v4911_v37 }
0x2a8c   : > { %v7257_v39 = vpop.permute.xlu0 %7256 }
0x2a8d   : > { %7340 = vpow2.f32 %v4912_v38  ;;  %v7259_v42 = vunpack.i.h.bf16 %v7257_v39  ;;  %v7258_v3 = vunpack.i.l.bf16 %v7257_v39  ;;  %v4647_v39 = vld [vmem:[#allocation10 + $0x30] sm:$0xff] }
0x2a8f   : > { %v7053_v43 = vpack.c.bf16 %v7259_v42, %v7258_v3 }
0x2a90   : > { %v5147_v17 = vpop.permute.xlu0 %5146 }
0x2a91   : > { %7055 = vmatpush3.bf16.msk.msra.mxu0 %vm8311_vm7, %v7053_v43 }
0x2a92   : > { %6861 = vmatprep.subr.mxu0 %v7657_v1 }
0x2a97   : > { %v7341_v5 = vpop.eup %7340 }
0x2a98   : > { %v4914_v45 = vsel %vm2232_vm4, %v7341_v5, 0.0 }
0x2a99   : > { %4915 = vadd.xlane.f32.xlu1 %v4914_v45 }
0x2aaa   : > { %7261 = vrot.lane.b32.xlu1 %v8645_v57, %s9093_s8  ;;  %s6359_s8 = sshll.u32 %s7816_s5, 7 }
0x2aae   : > { %5396 = vrot.lane.b32.xlu1 %v8655_v60, %s9096_s4  ;;  %v7267_v60 = vpop.permute.xlu0 %7266 }
0x2aaf   : > { %v7269_v62 = vunpack.i.h.bf16 %v7267_v60  ;;  %v7268_v22 = vunpack.i.l.bf16 %v7267_v60 }
0x2ab1   : > { %v7065_v48 = vpack.c.bf16 %v7269_v62, %v7268_v22 }
0x2abe   : > { %v5142_v46 = vpop.f32.mrb[50].mxu1 }
0x2abf   : > { %v6870_v47 = vpop.f32.mrb[51].mxu1 }
0x2b26   : > { %v4916_v49 = vpop.xlane.xlu1 %4915 }
0x2b27   : > { %7342 = vrcp.f32 %v4916_v49 }
0x2b2a   : > { %v7262_v55 = vpop.permute.xlu1 %7261 }
0x2b2b   : > { %v7264_v56 = vunpack.i.h.bf16 %v7262_v55  ;;  %v7263_v4 = vunpack.i.l.bf16 %v7262_v55 }
0x2b2d   : > { %v7057_v58 = vpack.c.bf16 %v7264_v56, %v7263_v4  ;;  %v6340_v4 = vld [vmem:[%s9082_s13 + $0x1] ss:$0 sm:$0xff] }
0x2b2e   : > { %v5397_v2 = vpop.permute.xlu1 %5396 }
0x2b31   : > { %v7343_v8 = vpop.eup %7342 }
0x2b32   : > { %v8707_v51 = vmul.f32 %v7343_v8, %v7341_v5  ;;  %v4648_v8 = vld [vmem:[#allocation10 + $0x38] sm:$0xff] }
0x2b34   : > { %6859 = vmatmul.mubr.msk.f32.vlgmr.msra.gmra.mrb[44].mxu0 %vm2232_vm4, %v8707_v51 }
0x2b35   : > { %6862 = vmatpush3.msra.mxu0 %v4646_v52  ;;  %6863 = vmatprep.mubr.msk.f32.mxu0 %vm7656_vm0, %v7657_v1 }
0x2b36   : > { %7056 = vmatprep.subr.bf16.mxu0 %v7655_v0 }
0x2c07   : > { %v4996_v59 = vpop.f32.mrb[44].mxu0 }
0x2c08   : > { %v6860_v61 = vpop.f32.mrb[45].mxu0  ;;  %6864 = vmatmul.mubr.msk.f32.vlgmr.msra.gmra.mrb[46].mxu0 %vm969_vm2, %v4996_v59 }
0x2c09   : > { %7059 = vmatpush3.bf16.xpose.msk.msra.mxu0 %vm8284_vm3, %v7057_v58  ;;  %6875 = vmatprep.mubr.msk.f32.mxu0 %vm7656_vm0, %v7657_v1 }
0x2c0a   : > { %7064 = vmatprep.subr.bf16.mxu0 %v7655_v0 }
0x2c10   : > { %6876 = vmatmul.mubr.msk.f32.vlgmr.msra.gmra.mrb[48].mxu0 %vm969_vm2, %v5147_v17 }
0x2c11   : > { %7067 = vmatpush3.bf16.xpose.msk.msra.mxu0 %vm8284_vm3, %v7065_v48  ;;  %6894 = vmatprep.mubr.msk.f32.mxu0 %vm7656_vm0, %v7657_v1 }
0x2c12   : > { %7072 = vmatprep.subr.bf16.mxu0 %v7655_v0 }
0x2c18   : > { %6895 = vmatmul.mubr.msk.f32.vlgmr.msra.gmra.mrb[50].mxu0 %vm969_vm2, %v5397_v2 }
0x2c19   : > { %6917 = vmatprep.mubr.msk.f32.mxu0 %vm7656_vm0, %v7657_v1 }
0x2cdb   : > { %v5069_v7 = vpop.f32.mrb[46].mxu0 }
0x2cdc   : > { %v8729_v9 = vadd.f32 %v5142_v46, %v5069_v7  ;;  %v6865_v10 = vpop.f32.mrb[47].mxu0 }
0x2ce3   : > { %v5224_v12 = vpop.f32.mrb[48].mxu0 }
0x2ce4   : > { %v5228_v14 = vmul.f32 0.35355338, %v5224_v12  ;;  %v6877_v13 = vpop.f32.mrb[49].mxu0  ;;  %v5692_v12 = vld [vmem:[#allocation11 + $0x20] sm:$0xff] }
0x2ce6   : > { %v5229_v21 = vadd.f32 %v8665_v63, %v5228_v14  ;;  %v5693_v14 = vld [vmem:[#allocation11 + $0x28] sm:$0xff] }
0x2ce7   : > { %v7073_v13 = vpack.c.bf16 %v5693_v14, %v5692_v12 }
0x2ce8   : > { %v5230_v15 = vsel %vm2232_vm4, %v5229_v21, -inf }
0x2ce9   : > { %5231 = vmax.xlane.f32.xlu0 %v5230_v15  ;;  %7074 = vmatpush3.bf16.msra.mxu0 %v7073_v13  ;;  %v5695_v15 = vld [vmem:[#allocation11 + $0x38] sm:$0xff] }
0x2cea   : > { %7075 = vmatprep.subr.bf16.mxu0 %v7655_v0 }
0x2ceb   : > { %v5474_v16 = vpop.f32.mrb[50].mxu0 }
0x2cec   : > { %v6896_v18 = vpop.f32.mrb[51].mxu0  ;;  %v5478_v53 = vmul.f32 0.35355338, %v5474_v16  ;;  %v6344_v16 = vld [vmem:[%s9083_s9 + $0x40] sm:$0xff] }
0x2ced   : > { %v6345_v18 = vld [vmem:[%s9083_s9 + $0x48] sm:$0xff] }
0x2cee   : > { %v5479_v40 = vadd.f32 %v8665_v63, %v5478_v53 }
0x2cf0   : > { %v5480_v30 = vsel %vm2232_vm4, %v5479_v40, -inf }
0x2cff   : > { %7271 = vrot.lane.b32.xlu0 %v8645_v57, %s9092_s24  ;;  %s9101_s24 = sld [smem:[#allocation27_spill]] }
0x2d05   : > { %p9103_p9 = scmp.ne.s32.totalorder %s9101_s24, 0 }
0x2d76   : > { %v5232_v19 = vpop.xlane.xlu0 %5231 }
0x2d77   : > { %v5233_v20 = vsub.f32 %v5229_v21, %v5232_v19  ;;  %v5694_v21 = vld [vmem:[#allocation11 + $0x30] sm:$0xff] }
0x2d78   : > { %v6346_v19 = vld [vmem:[%s9083_s9 + $0x50] sm:$0xff] }
0x2d79   : > { %v5234_v23 = vmul.f32 1.442695, %v5233_v20  ;;  %v7079_v20 = vpack.c.bf16 %v6345_v18, %v6344_v16 }
0x2d7a   : > { %v7272_v24 = vpop.permute.xlu0 %7271 }
0x2d7b   : > { %7344 = vpow2.f32 %v5234_v23  ;;  %v7274_v25 = vunpack.i.h.bf16 %v7272_v24  ;;  %v7273_v26 = vunpack.i.l.bf16 %v7272_v24  ;;  %v6347_v23 = vld [vmem:[%s9083_s9 + $0x58] sm:$0xff] }
0x2d7c   : > { %v7082_v24 = vpack.c.bf16 %v6347_v23, %v6346_v19 }
0x2d7d   : > { %v7061_v28 = vpack.c.bf16 %v7274_v25, %v7273_v26  ;;  %v6348_v25 = vld [vmem:[%s9083_s9 + $0x60] sm:$0xff]  ;;  %v6349_v26 = vld [vmem:[%s9083_s9 + $0x68] sm:$0xff] }
0x2d7f   : > { %7063 = vmatpush3.bf16.msk.msra.mxu1 %vm8311_vm7, %v7061_v28  ;;  %v7085_v28 = vpack.c.bf16 %v6349_v26, %v6348_v25 }
0x2d80   : > { %6885 = vmatprep.subr.mxu1 %v7657_v1 }
0x2d85   : > { %v7345_v29 = vpop.eup %7344 }
0x2d86   : > { %v5236_v11 = vsel %vm2232_vm4, %v7345_v29, 0.0 }
0x2d87   : > { %5237 = vadd.xlane.f32.xlu1 %v5236_v11 }
0x2d8b   : > { %5481 = vmax.xlane.f32.xlu1 %v5480_v30 }
0x2e14   : > { %v5238_v31 = vpop.xlane.xlu1 %5237 }
0x2e15   : > { %7346 = vrcp.f32 %v5238_v31 }
0x2e18   : > { %v5482_v32 = vpop.xlane.xlu1 %5481 }
0x2e19   : > { %v5483_v33 = vsub.f32 %v5479_v40, %v5482_v32  ;;  %v5684_v40 = vrot.slane %v8625_v6, %v8427_v54  ;;  %v5689_v32 = vrot.slane %v8630_v44, %v8427_v54  ;;  %v6342_v54 = vld [vmem:[%s9085_s20 + $0x1] ss:$0 sm:$0xff] }
0x2e1b   : > { %v5484_v35 = vmul.f32 1.442695, %v5483_v33 }
0x2e1d   : > { %7348 = vpow2.f32 %v5484_v35 }
0x2e1f   : > { %v7347_v36 = vpop.eup %7346 }
0x2e20   : > { %v5241_v37 = vmul.f32 %v7347_v36, %v7345_v29  ;;  %v6350_v36 = vld [vmem:[%s9083_s9 + $0x70] sm:$0xff] }
0x2e22   : > { %6883 = vmatmul.mubr.msk.f32.vlgmr.msra.gmra.mrb[52].mxu1 %vm2232_vm4, %v5241_v37 }
0x2e23   : > { %6887 = vmatprep.mubr.msk.f32.mxu1 %vm7656_vm0, %v7657_v1  ;;  %6886 = vmatpush3.msra.mxu1 %v4647_v39 }
0x2e24   : > { %7068 = vmatprep.subr.bf16.mxu1 %v7655_v0 }
0x2e27   : > { %v7349_v38 = vpop.eup %7348 }
0x2e28   : > { %v5486_v63 = vsel %vm2232_vm4, %v7349_v38, 0.0 }
0x2e29   : > { %5487 = vadd.xlane.f32.xlu1 %v5486_v63 }
0x2e3a   : > { %7276 = vrot.lane.b32.xlu1 %v8645_v57, %s9097_s28 }
0x2eb6   : > { %v5488_v42 = vpop.xlane.xlu1 %5487 }
0x2eb7   : > { %7350 = vrcp.f32 %v5488_v42 }
0x2eba   : > { %v7277_v3 = vpop.permute.xlu1 %7276 }
0x2ebb   : > { %v7279_v43 = vunpack.i.h.bf16 %v7277_v3  ;;  %v7278_v5 = vunpack.i.l.bf16 %v7277_v3 }
0x2ebd   : > { %v7069_v46 = vpack.c.bf16 %v7279_v43, %v7278_v5 }
0x2ec1   : > { %v7351_v45 = vpop.eup %7350 }
0x2ec2   : > { %v8753_v57 = vmul.f32 %v7351_v45, %v7349_v38 }
0x2ef5   : > { %v5318_v47 = vpop.f32.mrb[52].mxu1 }
0x2ef6   : > { %v6884_v49 = vpop.f32.mrb[53].mxu1  ;;  %6888 = vmatmul.mubr.msk.f32.vlgmr.msra.gmra.mrb[54].mxu1 %vm969_vm2, %v5318_v47 }
0x2ef7   : > { %7071 = vmatpush3.bf16.msk.msra.mxu1 %vm8311_vm7, %v7069_v46  ;;  %6901 = vmatprep.mubr.msk.f32.mxu1 %vm7656_vm0, %v7657_v1 }
0x2ef8   : > { %6904 = vmatprep.subr.mxu1 %v7657_v1 }
0x2efa   : > { %6902 = vmatmul.mubr.msk.f32.vlgmr.msra.gmra.mrb[56].mxu1 %vm2232_vm4, %v8753_v57 }
0x2efb   : > { %6906 = vmatprep.mubr.msk.f32.mxu1 %vm7656_vm0, %v7657_v1  ;;  %6905 = vmatpush3.msra.mxu1 %v4648_v8 }
0x2efc   : > { %7078 = vmatprep.subr.bf16.mxu1 %v7655_v0 }
0x2fc9   : > { %v5391_v52 = vpop.f32.mrb[54].mxu1 }
0x2fca   : > { %v5395_v41 = vadd.f32 %v5391_v52, %v8729_v9  ;;  %v6889_v55 = vpop.f32.mrb[55].mxu1 }
0x2fcd   : > { %v5568_v17 = vpop.f32.mrb[56].mxu1 }
0x2fce   : > { %v6903_v56 = vpop.f32.mrb[57].mxu1  ;;  %6907 = vmatmul.mubr.msk.f32.vlgmr.msra.gmra.mrb[58].mxu1 %vm969_vm2, %v5568_v17  ;;  %v5892_v17 = vld [vmem:[%s9100_s11] sm:$0xff] }
0x2fcf   : > { %6936 = vmatprep.mubr.msk.f32.mxu1 %vm7656_vm0, %v7657_v1  ;;  %7080 = vmatpush3.bf16.msra.mxu1 %v7079_v20  ;;  %v5893_v56 = vld [vmem:[%s9100_s11 + $0x8] sm:$0xff] }
0x2fd0   : > { %7081 = vmatprep.subr.bf16.mxu1 %v7655_v0 }
0x2fd3   : > { %7083 = vmatpush3.bf16.msra.mxu1 %v7082_v24 }
0x2fd4   : > { %7084 = vmatprep.subr.bf16.mxu1 %v7655_v0 }
0x2fd7   : > { %7086 = vmatpush3.bf16.msra.mxu1 %v7085_v28 }
0x2fd8   : > { %7087 = vmatprep.subr.bf16.mxu1 %v7655_v0 }
0x30a1   : > { %v5641_v58 = vpop.f32.mrb[58].mxu1 }
0x30a2   : > { %v5645_v59 = vadd.f32 %v5641_v58, %v5395_v41  ;;  %v6908_v60 = vpop.f32.mrb[59].mxu1  ;;  %v5894_v58 = vld [vmem:[%s9100_s11 + $0x10] sm:$0xff] }
0x30a4   : > { %v5652_v61 = vadd.f32 %v6340_v4, %v5645_v59  ;;  %v7091_v4 = vpack.c.bf16 %v5893_v56, %v5892_v17 }
0x30a6   : > { %v5667_v62 = vadd.f32 %v5652_v61, %v8636_v50  ;;  %v7076_v50 = vpack.c.bf16 %v5695_v15, %v5694_v21 }
0x30a8   : > { %v5668_v22 = vsel %vm887_vm1, %v5667_v62, 0.0  ;;  %7077 = vmatpush3.bf16.msra.mxu0 %v7076_v50 }
0x30a9   : > { %5669 = vadd.xlane.f32.xlu0 %v5668_v22  ;;  %7090 = vmatprep.subr.bf16.mxu0 %v7655_v0 }
0x3136   : > { %v5670_v48 = vpop.xlane.xlu0 %5669 }
0x3137   : > { %v5671_v2 = vmul.f32 0.03125, %v5670_v48 }
0x3139   : > { %v5672_v7 = vsub.f32 %v5667_v62, %v5671_v2 }
0x313b   : > { %v5673_v9 = vmul.f32 %v5672_v7, %v5672_v7 }
0x313d   : > { %v5674_v10 = vsel %vm887_vm1, %v5673_v9, 0.0  ;;  %v5885_v9 = vrot.slane %v8625_v6, %v8469_v34 }
0x313e   : > { %5675 = vadd.xlane.f32.xlu1 %v5674_v10 }
0x314f   : > { %5656 = vrot.lane.b32.xlu1 %v5241_v37, %s7670_s3  ;;  %v6351_v37 = vld [vmem:[%s9083_s9 + $0x78] sm:$0xff]  ;;  %s863_s3 = scalar_lea.vmem [#allocation14], %s8051_s15 }
0x3150   : > { %v7088_v38 = vpack.c.bf16 %v6351_v37, %v6350_v36  ;;  %s6012_s23 = sshll.u32 %s863_s3, 4  ;;  %s6013_s23 = int_to_ptr.vmem [resolvable:$true] %s6012_s23 }
0x3151   : > { %s7533_s14 = scalar_lea.vmem %s6013_s23, 128  ;;  %p7540_p7 = scmp.lt.s32.totalorder %s6013_s23, %s7538_s7 }
0x3152   : > { %7089 = vmatpush3.bf16.msra.mxu1 %v7088_v38  ;;  %p7534_p0 = scmp.ne.s32.totalorder %s6013_s23, %s7533_s14  ;;  %p7541_p3 = scmp.lt.s32.totalorder %s7539_s18, %s7533_s14 }
0x3154   : > { %p7535_p4 = pnand %p7534_p0, %p9103_p9  ;;  %p7542_p5 = por %p7541_p3, %p7540_p7 }
0x3156   : > { %p7536_p13 = pneg %p7535_p4 }
0x3158   : > { %p7543_p2 = pnand %p7542_p5, %p7536_p13 }
0x31cb   : > { %v5676_v53 = vpop.xlane.xlu1 %5675 }
0x31cc   : > { %v5677_v29 = vmul.f32 0.03125, %v5676_v53 }
0x31ce   : > { %v5678_v11 = vadd.f32 1e-05, %v5677_v29 }
0x31cf   : > { %v5657_v48 = vpop.permute.xlu1 %5656 }
0x31d0   : > { %7352 = vrsqrt.f32 %v5678_v11 }
0x31da   : > { %v7353_v30 = vpop.eup %7352 }
0x31db   : > { %v5680_v31 = vmul.f32 %v7353_v30, %v5672_v7 }
0x31dd   : > { %v5685_v33 = vmul.f32 %v5684_v40, %v5680_v31 }
0x31df   : > { %v5690_v35 = vadd.f32 %v5689_v32, %v5685_v33 }
0x31e1   : > { %6918 = vmatmul.mubr.msk.f32.vlgmr.msra.gmra.mrb[52].mxu0 %vm887_vm1, %v5690_v35 }
0x31e2   : > { %6947 = vmatprep.mubr.msk.f32.mxu0 %vm7656_vm0, %v7657_v1  ;;  %v6353_v1 = vld [vmem:[%s9086_s29 + $0x1] ss:$0 sm:$0xff]  ;;  %7092 = vmatpush3.bf16.msra.mxu0 %v7091_v4 }
0x31e3   : > { %7093 = vmatprep.subr.bf16.mxu0 %v7655_v0 }
0x32b4   : > { %v5773_v63 = vpop.f32.mrb[52].mxu0 }
0x32b5   : > { %v5774_v39 = vadd.f32 %v6342_v54, %v5773_v63  ;;  %v6919_v42 = vpop.f32.mrb[53].mxu0 }
0x32b7   : > { %v5777_v3 = vmax.f32 %v5774_v39, 0.0 }
0x32b9   : > { %6937 = vmatmul.mubr.msk.f32.vlgmr.msra.gmra.mrb[60].mxu1 %vm3279_vm8, %v5777_v3 }
0x338c   : > { %v5864_v43 = vpop.f32.mrb[60].mxu1 }
0x338d   : > { %v5865_v5 = vadd.f32 %v6353_v1, %v5864_v43  ;;  %v6938_v45 = vpop.f32.mrb[61].mxu1 }
0x338f   : > { %v5868_v46 = vadd.f32 %v5865_v5, %v5690_v35 }
0x3391   : > { %v5869_v47 = vsel %vm887_vm1, %v5868_v46, 0.0 }
0x3392   : > { %5870 = vadd.xlane.f32.xlu0 %v5869_v47 }
0x341f   : > { %v5871_v49 = vpop.xlane.xlu0 %5870 }
0x3420   : > { %v5872_v8 = vmul.f32 0.03125, %v5871_v49 }
0x3422   : > { %v5873_v52 = vsub.f32 %v5868_v46, %v5872_v8 }
0x3424   : > { %v5874_v41 = vmul.f32 %v5873_v52, %v5873_v52 }
0x3426   : > { %v5875_v55 = vsel %vm887_vm1, %v5874_v41, 0.0 }
0x3427   : > { %5876 = vadd.xlane.f32.xlu0 %v5875_v55 }
0x343d   : > { %5653 = vrot.lane.b32.xlu0 %v8707_v51, %s7671_s21  ;;  %v5895_v51 = vld [vmem:[%s9100_s11 + $0x18] sm:$0xff]  ;;  %s9102_s21 = sld [smem:[#allocation50_spill]] }
0x3441   : > { %5659 = vrot.lane.b32.xlu0 %v8753_v57, %s7672_s2  ;;  %v7094_v57 = vpack.c.bf16 %v5895_v51, %v5894_v58 }
0x3443   : > { %7095 = vmatpush3.bf16.msra.mxu0 %v7094_v57  ;;  %s8845_s2 = scalar_lea.hbm %s9102_s21, %s6359_s8 }
0x34b4   : > { %v5877_v59 = vpop.xlane.xlu0 %5876 }
0x34b5   : > { %v5878_v60 = vmul.f32 0.03125, %v5877_v59 }
0x34b7   : > { %v5879_v61 = vadd.f32 1e-05, %v5878_v60 }
0x34b8   : > { %v5654_v62 = vpop.permute.xlu0 %5653 }
0x34b9   : > { %7354 = vrsqrt.f32 %v5879_v61  ;;  %v5662_v22 = vsel %vm2232_vm4, %v8675_v27, %v5654_v62  ;;  %v5890_v27 = vrot.slane %v8630_v44, %v8469_v34 }
0x34ba   : > { %v5664_v2 = vsel %vm5663_vm9, %v5662_v22, %v5657_v48 }
0x34bc   : > { %v5660_v0 = vpop.permute.xlu0 %5659 }
0x34bd   : > { %v5666_v7 = vsel %vm5665_vm10, %v5664_v2, %v5660_v0 }
0x34be   : > { %5979 = vst.msk [vmem:[%s863_s3] sm:$0xff] %vm5978_vm11, %v5666_v7 }
0x34c3   : > { %v7355_v10 = vpop.eup %7354 }
0x34c4   : > { %v5881_v12 = vmul.f32 %v7355_v10, %v5873_v52 }
0x34c6   : > { %v5886_v14 = vmul.f32 %v5885_v9, %v5881_v12 }
0x34c8   : > { %v5891_v13 = vadd.f32 %v5890_v27, %v5886_v14 }
0x34ca   : > { %6948 = vmatmul.mubr.msk.f32.vlgmr.msra.gmra.mrb[54].mxu0 %vm887_vm1, %v5891_v13 }
0x34cb   : > { %7546 = shalt.err (!%p7543_p2)
}
0x34cc   : > { %s7547_s27 = scalar_lea.hbm %s8845_s2, 128  ;;  %s7551_s4 = scalar_lea.hbm %s9102_s21, 256 }
0x34cd   : > { %p7548_p8 = scmp.ne.s32.totalorder %s8845_s2, %s7547_s27  ;;  %p7552_p1 = scmp.lt.u32.totalorder %s8845_s2, %s9102_s21 }
0x34ce   : > { %p7553_p6 = scmp.lt.u32.totalorder %s7551_s4, %s7547_s27  ;;  %p7555_p0 = scmp.lt.u32.totalorder %s7547_s27, %s8845_s2 }
0x34cf   : > { %p7549_p11 = pnand %p7548_p8, %p9103_p9 }
0x34d0   : > { %p7554_p10 = por %p7553_p6, %p7552_p1 }
0x34d1   : > { %p7550_p12 = pneg %p7549_p11 }
0x34d2   : > { %p7556_p4 = por %p7555_p0, %p7554_p10 }
0x34d4   : > { %p7557_p13 = pnand %p7556_p4, %p7550_p12 }
0x34d6   : > { %7560 = shalt.err (!%p7557_p13)
}
0x34d7   : > { %7115 = dma.vmem_to_hbm [thread:$0]  (%p9103_p9), %s6013_s23, 128, %s8845_s2, %s5986_s12   ;;  %vm5976_vm12 = vcmask 97280  }
0x34d8   : > { %s9104_s18 = sld [smem:[#allocation48_spill]]  ;;  %s856_s16 = scalar_lea.vmem [#allocation13], %s8051_s15 }
0x34d9   : > { %s5999_s3 = sshll.u32 %s856_s16, 4  ;;  %s9105_s28 = sld [smem:[#allocation49_spill]]  ;;  %s8876_s3 = int_to_ptr.vmem [resolvable:$true] %s5999_s3 }
0x34da   : > { %s5981_s2 = scalar_lea.sflag [#allocation4], %s8048_s1  ;;  %s7561_s23 = scalar_lea.vmem %s8876_s3, 128 }
0x34db   : > { %p7562_p7 = scmp.ne.s32.totalorder %s8876_s3, %s7561_s23  ;;  %s7674_s15 = smov [#allocation13]  }
0x34dc   : > { %s7565_s12 = sshll.u32 %s7674_s15, 4  ;;  %s7566_s12 = int_to_ptr.vmem [resolvable:$false] %s7565_s12 }
0x34dd   : > { %p7563_p3 = pnand %p7562_p7, %p9103_p9  ;;  %s7567_s5 = scalar_lea.vmem %s7566_s12, 256 }
0x34de   : > { %v6355_v34 = vld [vmem:[%s9104_s18] ss:$0 sm:$0xff]  ;;  %p7568_p2 = scmp.lt.s32.totalorder %s8876_s3, %s7566_s12  ;;  %p7569_p8 = scmp.lt.s32.totalorder %s7567_s5, %s7561_s23 }
0x34df   : > { %s8874_s22 = scalar_lea.hbm %s9105_s28, %s6359_s8  ;;  %p7564_p5 = pneg %p7563_p3 }
0x34e0   : > { %p7570_p11 = por %p7569_p8, %p7568_p2 }
0x34e2   : > { %p7571_p12 = pnand %p7570_p11, %p7564_p5 }
0x359d   : > { %v5972_v6 = vpop.f32.mrb[54].mxu0 }
0x359e   : > { %v5973_v44 = vadd.f32 %v6355_v34, %v5972_v6  ;;  %v6949_v21 = vpop.f32.mrb[55].mxu0 }
0x35a0   : > { %5977 = vst.msk [vmem:[%s856_s16] sm:$0xff] %vm5976_vm12, %v5973_v44 }
0x35a1   : > { %7574 = shalt.err (!%p7571_p12)
}
0x35a2   : > { %s7575_s1 = scalar_lea.hbm %s8874_s22, 128  ;;  %s7579_s7 = scalar_lea.hbm %s9105_s28, 256 }
0x35a3   : > { %p7576_p1 = scmp.ne.s32.totalorder %s8874_s22, %s7575_s1  ;;  %p7580_p0 = scmp.lt.u32.totalorder %s8874_s22, %s9105_s28 }
0x35a4   : > { %p7581_p4 = scmp.lt.u32.totalorder %s7579_s7, %s7575_s1  ;;  %p7583_p7 = scmp.lt.u32.totalorder %s7575_s1, %s8874_s22 }
0x35a5   : > { %p7577_p6 = pnand %p7576_p1, %p9103_p9 }
0x35a6   : > { %p7582_p13 = por %p7581_p4, %p7580_p0 }
0x35a7   : > { %p7578_p10 = pneg %p7577_p6 }
0x35a8   : > { %p7584_p3 = por %p7583_p7, %p7582_p13 }
0x35aa   : > { %p7585_p5 = pnand %p7584_p3, %p7578_p10 }
0x35ac   : > { %7588 = shalt.err (!%p7585_p5)
}
0x35ad   : > { %7114 = dma.vmem_to_hbm [thread:$0]  (%p9103_p9), %s8876_s3, 128, %s8874_s22, %s5981_s2  }
0x35ae PF: > { %s9106_s27 = sld [smem:[#allocation22_spill]]  ;;  %s9107_s4 = sld [smem:[#allocation24_spill]] }
0x35af   : > { %p9109_p8 = scmp.ge.s32.totalorder %s7643_s25, 2 }
0x35b4   : > { %s6024_s23 = sand.u32 1, %s9106_s27   ;;  %p9108_p2 = scmp.ne.s32.totalorder %s9107_s4, 0 }
0x35b5   : > { %s6025_s15 = scalar_lea.sflag [#allocation4], %s6024_s23 }
0x35b6   : > { %p7139_p11 = pnand %p9109_p8, %p9108_p2 }
0x35b8   : > { %7622 = dma.done.wait (!%p7139_p11), %s6025_s15, 128  }
0x35b9   : > { %7624 = vsyncadd (!%p7139_p11), %s6025_s15, 4294967168  ;;  %s6034_s12 = scalar_lea.sflag [#allocation15], %s6024_s23 }
0x35ba   : > { %7626 = dma.done.wait (!%p7139_p11), %s6034_s12, 128  }
0x35bb   : > { %7628 = vsyncadd (!%p7139_p11), %s6034_s12, 4294967168  ;;  %s9110_s25 = sld [smem:[#allocation25_spill]]  ;;  %s9111_s24 = sld [smem:[#allocation23_spill]] }
0x35bc   : > { %s9112_s5 = sld [smem:[#allocation26_spill]]  ;;  %s9113_s4 = smov %s7635_s30 }
0x35c1   : > { %p45_p9 = scmp.ge.s32.totalorder %s9110_s25, 4   ;;  %s9114_s30 = smov %s9111_s24 }
0x35c2   : > { %s9115_s24 = smov %s9112_s5 }
0x35c3   :  { %47 = sbr.rel (!%p45_p9) target bundleno = 35 (0x23), region = 225 }
0x35ca   :  { %6039 = vsyncpa [#allocation3], 1 }
0x35cb   :  { %6041 = vsyncpa [#allocation3 + $0x1], 1 }
0x35cc   :  { %6042 = vsyncpa [#allocation6], 1 }
0x35cd   :  { %6044 = vsyncpa [#allocation6 + $0x1], 1 }
0x35ce   :  { %6045 = vsyncpa [#allocation9], 1 }
0x35cf   :  { %6046 = vsyncpa [#allocation12], 1 }
0x35d0   :  { %6047 = vsyncpa [#allocation4], 1 }
0x35d1   :  { %6049 = vsyncpa [#allocation4 + $0x1], 1 }
0x35d2   :  { %6050 = vsyncpa [#allocation15], 1 }
0x35d3   :  { %6052 = vsyncpa [#allocation15 + $0x1], 1 }

</bundles_post_ra>
